<compile_context>
chip_gen: v6e
topology: v6e:2x2x1
jax: 0.10.0
libtpu: 0.0.40
codegen_flags: <defaults>
</compile_context>

<pallas_src>
import functools

import numpy as np
import jax
import jax.numpy as jnp
from jax import lax
from jax.experimental import pallas as pl
from jax.experimental.pallas import tpu as pltpu

MODALS = ["image", "depth", "event", "nir"]  # 'image' + 3 extra modalities
NUM_EXTRA = len(MODALS) - 1

_LANE = 128        # vreg lane width
_PDIM = 8          # per-modality packed-token stats columns (padded to 8)


# ----------------------------------------------------------------------------
# Generation-gated VMEM budgets
# ----------------------------------------------------------------------------
@functools.lru_cache(maxsize=None)
def _tpu_vmem_capacity():
    try:
        info = pltpu.get_tpu_info()
        return int(getattr(info, "vmem_capacity_bytes", 64 << 20))
    except Exception:
        return 64 << 20


def _tile_budget_bytes():
    # v5e/v6e (128 MiB physical VMEM): big tiles ride the HBM roofline.
    # v7x (64 MiB): conservative budget incl. matmul-boundary temporaries.
    return (40 << 20) if _tpu_vmem_capacity() >= (96 << 20) else (26 << 20)


def _vmem_limit_bytes():
    return (100 << 20) if _tpu_vmem_capacity() >= (96 << 20) else (48 << 20)


# ----------------------------------------------------------------------------
# Pallas kernel: one row tile of one stage.
#   img    (tn, lanes)          packed image tokens
#   oth    (M, tn, lanes)       packed extra-modality tokens
#   segm   (lanes, PD)          per-token-segment mean matrix (1/C block-diag)
#   segb   (PD, lanes)          per-token-segment broadcast matrix
#   segbm  (M, MPD, lanes)      per-modality gate broadcast (zero rows elsewhere)
#   w1p    (M, lanes, HW)       Linear1 (gamma folded), packed across modalities
#   b1a    (1, HW)              Linear1 bias (beta folded), packed
#   s2bd   (HW, MPD)            score head, block-diag over modalities/tokens
#   b2a    (1, MPD)             score head bias
# outputs: feat_mod (tn, lanes), dn partial (8, lanes)
# ----------------------------------------------------------------------------
def _fuse_kernel(img_ref, oth_ref, segm_ref, segb_ref, segbm_ref,
                 w1p_ref, b1a_ref, s2bd_ref, b2a_ref, mod_ref, dn_ref):
    M, tn, lanes = oth_ref.shape

    segm = segm_ref[...]                       # (lanes, PD)
    segb = segb_ref[...]                       # (PD, lanes)

    # ---- LayerNorm (gamma/beta folded into W1/b1) + packed Linear1 (MXU) ----
    h_all = None
    for m in range(M):                         # static unroll over modalities
        x = oth_ref[m]                                                   # (tn, lanes)
        mu = jnp.dot(x, segm, preferred_element_type=jnp.float32)        # (tn, PD)
        mu_b = jnp.dot(mu, segb, preferred_element_type=jnp.float32)     # (tn, lanes)
        d = x - mu_b
        var = jnp.dot(d * d, segm, preferred_element_type=jnp.float32)   # two-pass stats
        rstd = lax.rsqrt(var + 1e-5)
        rstd_b = jnp.dot(rstd, segb, preferred_element_type=jnp.float32)
        xn = d * rstd_b                                                   # gamma/beta folded
        hm = jnp.dot(xn, w1p_ref[m], preferred_element_type=jnp.float32)  # (tn, HW)
        h_all = hm if h_all is None else h_all + hm

    # ---- GELU (tanh approx), ONE pass over the modality-packed activations ----
    h_all = h_all + b1a_ref[...]
    h3 = h_all * h_all * h_all
    t = jnp.tanh(0.7978845608028654 * (h_all + 0.044715 * h3))
    h_all = 0.5 * h_all * (1.0 + t)

    # ---- score head (block-diag over modalities) + sigmoid, packed ----
    score = jnp.dot(h_all, s2bd_ref[...],
                    preferred_element_type=jnp.float32) + b2a_ref[...]    # (tn, MPD)
    sig = jax.nn.sigmoid(score)

    # ---- gate (x*w + x), element-wise max over modalities ----
    fmax = None
    for m in range(M):
        x = oth_ref[m]
        w_b = jnp.dot(sig, segbm_ref[m], preferred_element_type=jnp.float32)
        fused = x * w_b + x                     # "+1" applied after the broadcast dot
        fmax = fused if fmax is None else jnp.maximum(fmax, fused)

    mod_ref[...] = fmax.astype(mod_ref.dtype)

    # ---- per-tile L1 partial: pure vreg adds over sublane groups, full store ----
    ad = jnp.abs(fmax - img_ref[...])
    dn_ref[...] = jnp.sum(ad.reshape(tn // 8, 8, lanes), axis=0)


# ----------------------------------------------------------------------------
# Tiling
# ----------------------------------------------------------------------------
def _choose_tile_rows(rows, lanes, m, hw):
    """Row tile: fits the generation-gated VMEM budget including the kernel's
    full-width temporaries, and forces >=2 (>=4 for large stages) grid steps so
    DMA overlaps compute and the parallel axis can shard across TensorCores."""
    rows8 = -(-rows // 8) * 8
    if rows8 <= 256:
        return rows8
    # double-buffered I/O (img + M oth + out) + ~6 live full-width temporaries
    # (d, mu_b/rstd_b, xn, w_b, fused/fmax, ad) + packed GELU activations, f32.
    per_row = (2 * (m + 2) + 6) * lanes * 4 + 2 * hw * 4
    cap = max(256, min(2048, (_tile_budget_bytes() // per_row) // 8 * 8))
    tn = min(cap, rows8)
    target_steps = 4 if rows8 >= 1024 else 2
    while tn > 256 and -(-rows8 // tn) < target_steps:
        tn = max(256, ((tn // 2) // 8) * 8)
    return tn


def _fuse_stage(img_tok, oth_tok, pk):
    """img_tok: (N, C) f32; oth_tok: (M, N, C) f32; pk: packed stage params."""
    N, C = img_tok.shape
    M = oth_tok.shape[0]
    P, lanes, HW, MPD = pk["P"], pk["lanes"], pk["HW"], pk["MPD"]
    PD = _PDIM

    # --- pack P consecutive tokens per 128-lane row (lane-dense for C < 128) ---
    rows = -(-N // P)
    if rows * P != N:
        padt = rows * P - N
        img_tok = jnp.pad(img_tok, ((0, padt), (0, 0)))
        oth_tok = jnp.pad(oth_tok, ((0, 0), (0, padt), (0, 0)))
    img_p = img_tok.reshape(rows, lanes)
    oth_p = oth_tok.reshape(M, rows, lanes)

    # --- tile rows; zero-pad ragged last tile (zero rows contribute 0 to dn) ---
    tn = _choose_tile_rows(rows, lanes, M, HW)
    rows_p = -(-rows // tn) * tn
    if rows_p != rows:
        img_p = jnp.pad(img_p, ((0, rows_p - rows), (0, 0)))
        oth_p = jnp.pad(oth_p, ((0, 0), (0, rows_p - rows), (0, 0)))
    grid = rows_p // tn

    feat_p, dn_parts = pl.pallas_call(
        _fuse_kernel,
        out_shape=(
            jax.ShapeDtypeStruct((rows_p, lanes), jnp.float32),
            jax.ShapeDtypeStruct((grid * 8, lanes), jnp.float32),
        ),
        grid_spec=pltpu.PrefetchScalarGridSpec(
            num_scalar_prefetch=0,
            grid=(grid,),
            in_specs=[
                pl.BlockSpec((tn, lanes), lambda i: (i, 0)),            # image rows
                pl.BlockSpec((M, tn, lanes), lambda i: (0, i, 0)),      # other-modal rows
                pl.BlockSpec((lanes, PD), lambda i: (0, 0)),            # segment mean matrix
                pl.BlockSpec((PD, lanes), lambda i: (0, 0)),            # segment broadcast
                pl.BlockSpec((M, MPD, lanes), lambda i: (0, 0, 0)),     # per-modality gate bcast
                pl.BlockSpec((M, lanes, HW), lambda i: (0, 0, 0)),      # W1 (gamma folded, packed)
                pl.BlockSpec((1, HW), lambda i: (0, 0)),                # b1 (beta folded, packed)
                pl.BlockSpec((HW, MPD), lambda i: (0, 0)),              # score head (block-diag)
                pl.BlockSpec((1, MPD), lambda i: (0, 0)),               # b2
            ],
            out_specs=[
                pl.BlockSpec((tn, lanes), lambda i: (i, 0)),            # feat_mod rows
                pl.BlockSpec((8, lanes), lambda i: (i, 0)),             # per-tile dn partial
            ],
        ),
        compiler_params=pltpu.CompilerParams(
            dimension_semantics=("parallel",),                          # no cross-tile state
            vmem_limit_bytes=_vmem_limit_bytes()),
    )(img_p, oth_p, pk["segm"], pk["segb"], pk["segbm"],
      pk["w1p"], pk["b1a"], pk["s2bd"], pk["b2a"])

    feat_tok = feat_p[:rows].reshape(rows * P, C)[:N]
    return feat_tok, jnp.sum(dn_parts)


# ----------------------------------------------------------------------------
# Parameter repacking for the lane-dense kernel layout (host-side, once)
# ----------------------------------------------------------------------------
def _pack_stage_params(p):
    w1 = np.asarray(p["w1"]); b1 = np.asarray(p["b1"])
    w2 = np.asarray(p["w2"]); b2 = np.asarray(p["b2"])
    g = np.asarray(p["ln_g"]); bt = np.asarray(p["ln_b"])
    M, C, Ch = w1.shape

    P = _LANE // C if (C < _LANE and _LANE % C == 0) else 1
    lanes = P * C
    pch = P * Ch
    PD = _PDIM
    MPD = M * PD
    HW = -(-(M * pch) // _LANE) * _LANE          # packed hidden width, lane multiple

    segm = np.zeros((lanes, PD), np.float32)
    segb = np.zeros((PD, lanes), np.float32)
    segbm = np.zeros((M, MPD, lanes), np.float32)
    w1p = np.zeros((M, lanes, HW), np.float32)
    b1a = np.zeros((1, HW), np.float32)
    s2bd = np.zeros((HW, MPD), np.float32)
    b2a = np.zeros((1, MPD), np.float32)

    for t in range(P):
        segm[t * C:(t + 1) * C, t] = 1.0 / C
        segb[t, t * C:(t + 1) * C] = 1.0

    for m in range(M):
        w1_eff = g[m][:, None] * w1[m]                    # fold LN gamma into W1
        b1_eff = b1[m] + bt[m] @ w1[m]                    # fold LN beta into b1
        for t in range(P):
            rsl = slice(t * C, (t + 1) * C)
            csl = slice(m * pch + t * Ch, m * pch + (t + 1) * Ch)
            w1p[m, rsl, csl] = w1_eff
            b1a[0, csl] = b1_eff
            s2bd[csl, m * PD + t] = w2[m]
            b2a[0, m * PD + t] = b2[m, 0]
            segbm[m, m * PD + t, rsl] = 1.0

    return dict(P=P, lanes=lanes, HW=HW, MPD=MPD,
                segm=jnp.asarray(segm), segb=jnp.asarray(segb),
                segbm=jnp.asarray(segbm), w1p=jnp.asarray(w1p),
                b1a=jnp.asarray(b1a), s2bd=jnp.asarray(s2bd),
                b2a=jnp.asarray(b2a))


# ----------------------------------------------------------------------------
# Layout glue (plain JAX)
# ----------------------------------------------------------------------------
def _nchw_to_tokens(x):
    B, C, H, W = x.shape
    return jnp.transpose(x, (0, 2, 3, 1)).reshape(B * H * W, C)


def _tokens_to_nchw(t, B, H, W):
    C = t.shape[-1]
    return jnp.transpose(t.reshape(B, H, W, C), (0, 3, 1, 2))


def diff_modal_seg_v4_forward(feats_per_modal, params_per_stage):
    """feats_per_modal: {modal: [4 x NCHW feature maps]} (backbone outputs)."""
    fused_feats = []
    dn_accum = jnp.float32(0.0)
    for i in range(4):
        feat_img = feats_per_modal["image"][i]
        B, C, H, W = feat_img.shape
        img_tok = _nchw_to_tokens(feat_img)
        oth_tok = jnp.stack(
            [_nchw_to_tokens(feats_per_modal[m][i]) for m in MODALS if m != "image"], 0)

        pk = _pack_stage_params(params_per_stage[i])
        feat_mod_tok, dn_sum = _fuse_stage(img_tok, oth_tok, pk)
        feat_mod = _tokens_to_nchw(feat_mod_tok, B, H, W)

        # TODO(synk): frms[i] / ffms[i] / mspa_blocks[i] undefined in reference -> identity.
        fused_feats.append(feat_mod)
        dn_accum = dn_sum / (B * C * H * W) + dn_accum    # F.l1_loss = mean(|.|)

    # TODO(synk): SegFormerHead + bilinear interpolate undefined in reference; no seg logits.
    dn_loss = dn_accum / 4.0
    return fused_feats, dn_loss


# ----------------------------------------------------------------------------
# Pure-JAX reference (exact erf GELU, f32 two-pass LN) for the numerics check
# ----------------------------------------------------------------------------
def _ref_stage(img_tok, oth_tok, p):
    fused = []
    M = oth_tok.shape[0]
    for m in range(M):
        x = oth_tok[m].astype(jnp.float32)
        mu = x.mean(-1, keepdims=True)
        var = jnp.square(x - mu).mean(-1, keepdims=True)
        ln = (x - mu) / jnp.sqrt(var + 1e-5) * p["ln_g"][m] + p["ln_b"][m]
        h = jax.nn.gelu(ln @ p["w1"][m] + p["b1"][m], approximate=False)
        s = jax.nn.sigmoid((h * p["w2"][m]).sum(-1, keepdims=True) + p["b2"][m])
        fused.append(x * s + x)
    fm = jnp.max(jnp.stack(fused, 0), 0)
    dn = jnp.sum(jnp.abs(fm - img_tok))
    return fm, dn


# ----------------------------------------------------------------------------
# Deterministic parameter / input construction
# ----------------------------------------------------------------------------
def _make_stage_params(key, C, M):
    Ch = C // 4
    k1, k2 = jax.random.split(key)
    return {
        "ln_g": jnp.ones((M, C), jnp.float32),                         # LayerNorm weight = 1
        "ln_b": jnp.zeros((M, C), jnp.float32),                        # LayerNorm bias   = 0
        "w1": 0.02 * jax.random.normal(k1, (M, C, Ch), jnp.float32),   # trunc_normal(std=.02)
        "b1": jnp.zeros((M, Ch), jnp.float32),
        "w2": 0.02 * jax.random.normal(k2, (M, Ch), jnp.float32),
        "b2": jnp.zeros((M, 1), jnp.float32),
    }


if __name__ == "__main__":
    key = jax.random.PRNGKey(0)
    B, C0, H0 = 2, 32, 32  # small CMNeXt-style pyramid: C doubles, spatial halves

    # Synthetic per-modal, per-stage backbone features (NCHW).
    feats_per_modal = {}
    for mi, modal in enumerate(MODALS):
        stage_feats = []
        for i in range(4):
            C, H = C0 * 2 ** i, H0 // 2 ** i
            k = jax.random.fold_in(key, 1000 * mi + i)
            stage_feats.append(jax.random.normal(k, (B, C, H, H), jnp.float32))
        feats_per_modal[modal] = stage_feats

    params_per_stage = [
        _make_stage_params(jax.random.fold_in(key, 5000 + i), C0 * 2 ** i, NUM_EXTRA)
        for i in range(4)
    ]

    fused_feats, dn_loss = diff_modal_seg_v4_forward(feats_per_modal, params_per_stage)
    jax.block_until_ready((fused_feats, dn_loss))

    # Cross-check against the f32 / exact-GELU reference.  Tolerances account
    # for default (bf16-operand) MXU precision and tanh-approx GELU.
    ref_dn = jnp.float32(0.0)
    for i in range(4):
        feat_img = feats_per_modal["image"][i]
        B_, C_, H_, W_ = feat_img.shape
        img_tok = _nchw_to_tokens(feat_img)
        oth_tok = jnp.stack(
            [_nchw_to_tokens(feats_per_modal[m][i]) for m in MODALS if m != "image"], 0)
        fm_ref, dn_ref = _ref_stage(img_tok, oth_tok, params_per_stage[i])
        fm_ref_nchw = _tokens_to_nchw(fm_ref, B_, H_, W_)
        np.testing.assert_allclose(np.asarray(fused_feats[i]), np.asarray(fm_ref_nchw),
                                   rtol=3e-3, atol=3e-3)
        ref_dn = dn_ref / (B_ * C_ * H_ * W_) + ref_dn
    ref_dn = ref_dn / 4.0
    np.testing.assert_allclose(np.asarray(dn_loss), np.asarray(ref_dn), rtol=5e-3, atol=1e-4)

    print("KERNEL_OK")
</pallas_src>

<mosaic_0001>
module attributes {stable_mosaic.version = 11 : i64} {
  func.func @_fuse_kernel(%arg0: i32, %arg1: memref<256x128xf32, #tpu.memory_space<vmem>>, %arg2: memref<3x256x128xf32, #tpu.memory_space<vmem>>, %arg3: memref<128x8xf32, #tpu.memory_space<vmem>>, %arg4: memref<8x128xf32, #tpu.memory_space<vmem>>, %arg5: memref<3x24x128xf32, #tpu.memory_space<vmem>>, %arg6: memref<3x128x128xf32, #tpu.memory_space<vmem>>, %arg7: memref<1x128xf32, #tpu.memory_space<vmem>>, %arg8: memref<128x24xf32, #tpu.memory_space<vmem>>, %arg9: memref<1x24xf32, #tpu.memory_space<vmem>>, %arg10: memref<256x128xf32, #tpu.memory_space<vmem>>, %arg11: memref<8x128xf32, #tpu.memory_space<vmem>>) attributes {dimension_semantics = [#tpu.dimension_semantics<parallel>], iteration_bounds = array<i64: 2>, scalar_prefetch = 0 : i64, scratch_operands = 0 : i64, tpu.core_type = #tpu.core_type<tc>, window_params = [{transform_indices = @transform_0, window_bounds = array<i64: 256, 128>}, {transform_indices = @transform_1, window_bounds = array<i64: 3, 256, 128>}, {pipeline_mode = #tpu.pipeline_mode<synchronous>, transform_indices = @transform_2, window_bounds = array<i64: 128, 8>}, {pipeline_mode = #tpu.pipeline_mode<synchronous>, transform_indices = @transform_3, window_bounds = array<i64: 8, 128>}, {pipeline_mode = #tpu.pipeline_mode<synchronous>, transform_indices = @transform_4, window_bounds = array<i64: 3, 24, 128>}, {pipeline_mode = #tpu.pipeline_mode<synchronous>, transform_indices = @transform_5, window_bounds = array<i64: 3, 128, 128>}, {pipeline_mode = #tpu.pipeline_mode<synchronous>, transform_indices = @transform_6, window_bounds = array<i64: 1, 128>}, {pipeline_mode = #tpu.pipeline_mode<synchronous>, transform_indices = @transform_7, window_bounds = array<i64: 128, 24>}, {pipeline_mode = #tpu.pipeline_mode<synchronous>, transform_indices = @transform_8, window_bounds = array<i64: 1, 24>}, {transform_indices = @transform_9, window_bounds = array<i64: 256, 128>}, {transform_indices = @transform_10, window_bounds = array<i64: 8, 128>}]} {
    %c0 = arith.constant 0 : index
    %c0_0 = arith.constant 0 : index
    %0 = vector.load %arg3[%c0, %c0_0] : memref<128x8xf32, #tpu.memory_space<vmem>>, vector<128x8xf32>
    %c0_1 = arith.constant 0 : index
    %c0_2 = arith.constant 0 : index
    %1 = vector.load %arg4[%c0_1, %c0_2] : memref<8x128xf32, #tpu.memory_space<vmem>>, vector<8x128xf32>
    %c0_3 = arith.constant 0 : index
    %c0_4 = arith.constant 0 : index
    %c0_5 = arith.constant 0 : index
    %2 = vector.load %arg2[%c0_3, %c0_4, %c0_5] : memref<3x256x128xf32, #tpu.memory_space<vmem>>, vector<1x256x128xf32>
    %3 = vector.shape_cast %2 : vector<1x256x128xf32> to vector<256x128xf32>
    %cst = arith.constant dense<0.000000e+00> : vector<256x8xf32>
    %4 = tpu.matmul %3, %0, %cst {dimension_numbers = #tpu.dot_dimension_numbers<[1], [0], [0], [1], [0, 0, 1, 1], [], []>} : vector<256x128xf32>, vector<128x8xf32>, vector<256x8xf32> -> vector<256x8xf32>
    %cst_6 = arith.constant dense<0.000000e+00> : vector<256x128xf32>
    %5 = tpu.matmul %4, %1, %cst_6 {dimension_numbers = #tpu.dot_dimension_numbers<[1], [0], [0], [1], [0, 0, 1, 1], [], []>} : vector<256x8xf32>, vector<8x128xf32>, vector<256x128xf32> -> vector<256x128xf32>
    %6 = arith.subf %3, %5 : vector<256x128xf32>
    %7 = arith.mulf %6, %6 : vector<256x128xf32>
    %cst_7 = arith.constant dense<0.000000e+00> : vector<256x8xf32>
    %8 = tpu.matmul %7, %0, %cst_7 {dimension_numbers = #tpu.dot_dimension_numbers<[1], [0], [0], [1], [0, 0, 1, 1], [], []>} : vector<256x128xf32>, vector<128x8xf32>, vector<256x8xf32> -> vector<256x8xf32>
    %cst_8 = arith.constant 9.99999974E-6 : f32
    %9 = vector.broadcast %cst_8 : f32 to vector<256x8xf32>
    %10 = arith.addf %8, %9 : vector<256x8xf32>
    %11 = math.rsqrt %10 : vector<256x8xf32>
    %cst_9 = arith.constant dense<0.000000e+00> : vector<256x128xf32>
    %12 = tpu.matmul %11, %1, %cst_9 {dimension_numbers = #tpu.dot_dimension_numbers<[1], [0], [0], [1], [0, 0, 1, 1], [], []>} : vector<256x8xf32>, vector<8x128xf32>, vector<256x128xf32> -> vector<256x128xf32>
    %13 = arith.mulf %6, %12 : vector<256x128xf32>
    %c0_10 = arith.constant 0 : index
    %c0_11 = arith.constant 0 : index
    %c0_12 = arith.constant 0 : index
    %14 = vector.load %arg6[%c0_10, %c0_11, %c0_12] : memref<3x128x128xf32, #tpu.memory_space<vmem>>, vector<1x128x128xf32>
    %15 = vector.shape_cast %14 : vector<1x128x128xf32> to vector<128x128xf32>
    %cst_13 = arith.constant dense<0.000000e+00> : vector<256x128xf32>
    %16 = tpu.matmul %13, %15, %cst_13 {dimension_numbers = #tpu.dot_dimension_numbers<[1], [0], [0], [1], [0, 0, 1, 1], [], []>} : vector<256x128xf32>, vector<128x128xf32>, vector<256x128xf32> -> vector<256x128xf32>
    %c1 = arith.constant 1 : index
    %c0_14 = arith.constant 0 : index
    %c0_15 = arith.constant 0 : index
    %17 = vector.load %arg2[%c1, %c0_14, %c0_15] : memref<3x256x128xf32, #tpu.memory_space<vmem>>, vector<1x256x128xf32>
    %18 = vector.shape_cast %17 : vector<1x256x128xf32> to vector<256x128xf32>
    %cst_16 = arith.constant dense<0.000000e+00> : vector<256x8xf32>
    %19 = tpu.matmul %18, %0, %cst_16 {dimension_numbers = #tpu.dot_dimension_numbers<[1], [0], [0], [1], [0, 0, 1, 1], [], []>} : vector<256x128xf32>, vector<128x8xf32>, vector<256x8xf32> -> vector<256x8xf32>
    %cst_17 = arith.constant dense<0.000000e+00> : vector<256x128xf32>
    %20 = tpu.matmul %19, %1, %cst_17 {dimension_numbers = #tpu.dot_dimension_numbers<[1], [0], [0], [1], [0, 0, 1, 1], [], []>} : vector<256x8xf32>, vector<8x128xf32>, vector<256x128xf32> -> vector<256x128xf32>
    %21 = arith.subf %18, %20 : vector<256x128xf32>
    %22 = arith.mulf %21, %21 : vector<256x128xf32>
    %cst_18 = arith.constant dense<0.000000e+00> : vector<256x8xf32>
    %23 = tpu.matmul %22, %0, %cst_18 {dimension_numbers = #tpu.dot_dimension_numbers<[1], [0], [0], [1], [0, 0, 1, 1], [], []>} : vector<256x128xf32>, vector<128x8xf32>, vector<256x8xf32> -> vector<256x8xf32>
    %cst_19 = arith.constant 9.99999974E-6 : f32
    %24 = vector.broadcast %cst_19 : f32 to vector<256x8xf32>
    %25 = arith.addf %23, %24 : vector<256x8xf32>
    %26 = math.rsqrt %25 : vector<256x8xf32>
    %cst_20 = arith.constant dense<0.000000e+00> : vector<256x128xf32>
    %27 = tpu.matmul %26, %1, %cst_20 {dimension_numbers = #tpu.dot_dimension_numbers<[1], [0], [0], [1], [0, 0, 1, 1], [], []>} : vector<256x8xf32>, vector<8x128xf32>, vector<256x128xf32> -> vector<256x128xf32>
    %28 = arith.mulf %21, %27 : vector<256x128xf32>
    %c1_21 = arith.constant 1 : index
    %c0_22 = arith.constant 0 : index
    %c0_23 = arith.constant 0 : index
    %29 = vector.load %arg6[%c1_21, %c0_22, %c0_23] : memref<3x128x128xf32, #tpu.memory_space<vmem>>, vector<1x128x128xf32>
    %30 = vector.shape_cast %29 : vector<1x128x128xf32> to vector<128x128xf32>
    %cst_24 = arith.constant dense<0.000000e+00> : vector<256x128xf32>
    %31 = tpu.matmul %28, %30, %cst_24 {dimension_numbers = #tpu.dot_dimension_numbers<[1], [0], [0], [1], [0, 0, 1, 1], [], []>} : vector<256x128xf32>, vector<128x128xf32>, vector<256x128xf32> -> vector<256x128xf32>
    %32 = arith.addf %16, %31 : vector<256x128xf32>
    %c2 = arith.constant 2 : index
    %c0_25 = arith.constant 0 : index
    %c0_26 = arith.constant 0 : index
    %33 = vector.load %arg2[%c2, %c0_25, %c0_26] : memref<3x256x128xf32, #tpu.memory_space<vmem>>, vector<1x256x128xf32>
    %34 = vector.shape_cast %33 : vector<1x256x128xf32> to vector<256x128xf32>
    %cst_27 = arith.constant dense<0.000000e+00> : vector<256x8xf32>
    %35 = tpu.matmul %34, %0, %cst_27 {dimension_numbers = #tpu.dot_dimension_numbers<[1], [0], [0], [1], [0, 0, 1, 1], [], []>} : vector<256x128xf32>, vector<128x8xf32>, vector<256x8xf32> -> vector<256x8xf32>
    %cst_28 = arith.constant dense<0.000000e+00> : vector<256x128xf32>
    %36 = tpu.matmul %35, %1, %cst_28 {dimension_numbers = #tpu.dot_dimension_numbers<[1], [0], [0], [1], [0, 0, 1, 1], [], []>} : vector<256x8xf32>, vector<8x128xf32>, vector<256x128xf32> -> vector<256x128xf32>
    %37 = arith.subf %34, %36 : vector<256x128xf32>
    %38 = arith.mulf %37, %37 : vector<256x128xf32>
    %cst_29 = arith.constant dense<0.000000e+00> : vector<256x8xf32>
    %39 = tpu.matmul %38, %0, %cst_29 {dimension_numbers = #tpu.dot_dimension_numbers<[1], [0], [0], [1], [0, 0, 1, 1], [], []>} : vector<256x128xf32>, vector<128x8xf32>, vector<256x8xf32> -> vector<256x8xf32>
    %cst_30 = arith.constant 9.99999974E-6 : f32
    %40 = vector.broadcast %cst_30 : f32 to vector<256x8xf32>
    %41 = arith.addf %39, %40 : vector<256x8xf32>
    %42 = math.rsqrt %41 : vector<256x8xf32>
    %cst_31 = arith.constant dense<0.000000e+00> : vector<256x128xf32>
    %43 = tpu.matmul %42, %1, %cst_31 {dimension_numbers = #tpu.dot_dimension_numbers<[1], [0], [0], [1], [0, 0, 1, 1], [], []>} : vector<256x8xf32>, vector<8x128xf32>, vector<256x128xf32> -> vector<256x128xf32>
    %44 = arith.mulf %37, %43 : vector<256x128xf32>
    %c2_32 = arith.constant 2 : index
    %c0_33 = arith.constant 0 : index
    %c0_34 = arith.constant 0 : index
    %45 = vector.load %arg6[%c2_32, %c0_33, %c0_34] : memref<3x128x128xf32, #tpu.memory_space<vmem>>, vector<1x128x128xf32>
    %46 = vector.shape_cast %45 : vector<1x128x128xf32> to vector<128x128xf32>
    %cst_35 = arith.constant dense<0.000000e+00> : vector<256x128xf32>
    %47 = tpu.matmul %44, %46, %cst_35 {dimension_numbers = #tpu.dot_dimension_numbers<[1], [0], [0], [1], [0, 0, 1, 1], [], []>} : vector<256x128xf32>, vector<128x128xf32>, vector<256x128xf32> -> vector<256x128xf32>
    %48 = arith.addf %32, %47 : vector<256x128xf32>
    %c0_36 = arith.constant 0 : index
    %c0_37 = arith.constant 0 : index
    %49 = vector.load %arg7[%c0_36, %c0_37] : memref<1x128xf32, #tpu.memory_space<vmem>>, vector<1x128xf32>
    %50 = vector.broadcast %49 : vector<1x128xf32> to vector<256x128xf32>
    %51 = arith.addf %48, %50 : vector<256x128xf32>
    %52 = arith.mulf %51, %51 : vector<256x128xf32>
    %53 = arith.mulf %52, %51 : vector<256x128xf32>
    %cst_38 = arith.constant 4.471500e-02 : f32
    %54 = vector.broadcast %cst_38 : f32 to vector<256x128xf32>
    %55 = arith.mulf %54, %53 : vector<256x128xf32>
    %56 = arith.addf %51, %55 : vector<256x128xf32>
    %cst_39 = arith.constant 0.797884583 : f32
    %57 = vector.broadcast %cst_39 : f32 to vector<256x128xf32>
    %58 = arith.mulf %57, %56 : vector<256x128xf32>
    %59 = math.tanh %58 : vector<256x128xf32>
    %cst_40 = arith.constant 5.000000e-01 : f32
    %60 = vector.broadcast %cst_40 : f32 to vector<256x128xf32>
    %61 = arith.mulf %60, %51 : vector<256x128xf32>
    %cst_41 = arith.constant 1.000000e+00 : f32
    %62 = vector.broadcast %cst_41 : f32 to vector<256x128xf32>
    %63 = arith.addf %62, %59 : vector<256x128xf32>
    %64 = arith.mulf %61, %63 : vector<256x128xf32>
    %c0_42 = arith.constant 0 : index
    %c0_43 = arith.constant 0 : index
    %65 = vector.load %arg8[%c0_42, %c0_43] : memref<128x24xf32, #tpu.memory_space<vmem>>, vector<128x24xf32>
    %cst_44 = arith.constant dense<0.000000e+00> : vector<256x24xf32>
    %66 = tpu.matmul %64, %65, %cst_44 {dimension_numbers = #tpu.dot_dimension_numbers<[1], [0], [0], [1], [0, 0, 1, 1], [], []>} : vector<256x128xf32>, vector<128x24xf32>, vector<256x24xf32> -> vector<256x24xf32>
    %c0_45 = arith.constant 0 : index
    %c0_46 = arith.constant 0 : index
    %67 = vector.load %arg9[%c0_45, %c0_46] : memref<1x24xf32, #tpu.memory_space<vmem>>, vector<1x24xf32>
    %68 = vector.broadcast %67 : vector<1x24xf32> to vector<256x24xf32>
    %69 = arith.addf %66, %68 : vector<256x24xf32>
    %70 = arith.negf %69 : vector<256x24xf32>
    %71 = math.exp %70 : vector<256x24xf32>
    %cst_47 = arith.constant 1.000000e+00 : f32
    %72 = vector.broadcast %cst_47 : f32 to vector<256x24xf32>
    %73 = arith.addf %72, %71 : vector<256x24xf32>
    %74 = arith.divf %72, %73 : vector<256x24xf32>
    %c0_48 = arith.constant 0 : index
    %c0_49 = arith.constant 0 : index
    %c0_50 = arith.constant 0 : index
    %75 = vector.load %arg2[%c0_48, %c0_49, %c0_50] : memref<3x256x128xf32, #tpu.memory_space<vmem>>, vector<1x256x128xf32>
    %76 = vector.shape_cast %75 : vector<1x256x128xf32> to vector<256x128xf32>
    %c0_51 = arith.constant 0 : index
    %c0_52 = arith.constant 0 : index
    %c0_53 = arith.constant 0 : index
    %77 = vector.load %arg5[%c0_51, %c0_52, %c0_53] : memref<3x24x128xf32, #tpu.memory_space<vmem>>, vector<1x24x128xf32>
    %78 = vector.shape_cast %77 : vector<1x24x128xf32> to vector<24x128xf32>
    %cst_54 = arith.constant dense<0.000000e+00> : vector<256x128xf32>
    %79 = tpu.matmul %74, %78, %cst_54 {dimension_numbers = #tpu.dot_dimension_numbers<[1], [0], [0], [1], [0, 0, 1, 1], [], []>} : vector<256x24xf32>, vector<24x128xf32>, vector<256x128xf32> -> vector<256x128xf32>
    %80 = arith.mulf %76, %79 : vector<256x128xf32>
    %81 = arith.addf %80, %76 : vector<256x128xf32>
    %c1_55 = arith.constant 1 : index
    %c0_56 = arith.constant 0 : index
    %c0_57 = arith.constant 0 : index
    %82 = vector.load %arg2[%c1_55, %c0_56, %c0_57] : memref<3x256x128xf32, #tpu.memory_space<vmem>>, vector<1x256x128xf32>
    %83 = vector.shape_cast %82 : vector<1x256x128xf32> to vector<256x128xf32>
    %c1_58 = arith.constant 1 : index
    %c0_59 = arith.constant 0 : index
    %c0_60 = arith.constant 0 : index
    %84 = vector.load %arg5[%c1_58, %c0_59, %c0_60] : memref<3x24x128xf32, #tpu.memory_space<vmem>>, vector<1x24x128xf32>
    %85 = vector.shape_cast %84 : vector<1x24x128xf32> to vector<24x128xf32>
    %cst_61 = arith.constant dense<0.000000e+00> : vector<256x128xf32>
    %86 = tpu.matmul %74, %85, %cst_61 {dimension_numbers = #tpu.dot_dimension_numbers<[1], [0], [0], [1], [0, 0, 1, 1], [], []>} : vector<256x24xf32>, vector<24x128xf32>, vector<256x128xf32> -> vector<256x128xf32>
    %87 = arith.mulf %83, %86 : vector<256x128xf32>
    %88 = arith.addf %87, %83 : vector<256x128xf32>
    %89 = arith.maximumf %81, %88 : vector<256x128xf32>
    %c2_62 = arith.constant 2 : index
    %c0_63 = arith.constant 0 : index
    %c0_64 = arith.constant 0 : index
    %90 = vector.load %arg2[%c2_62, %c0_63, %c0_64] : memref<3x256x128xf32, #tpu.memory_space<vmem>>, vector<1x256x128xf32>
    %91 = vector.shape_cast %90 : vector<1x256x128xf32> to vector<256x128xf32>
    %c2_65 = arith.constant 2 : index
    %c0_66 = arith.constant 0 : index
    %c0_67 = arith.constant 0 : index
    %92 = vector.load %arg5[%c2_65, %c0_66, %c0_67] : memref<3x24x128xf32, #tpu.memory_space<vmem>>, vector<1x24x128xf32>
    %93 = vector.shape_cast %92 : vector<1x24x128xf32> to vector<24x128xf32>
    %cst_68 = arith.constant dense<0.000000e+00> : vector<256x128xf32>
    %94 = tpu.matmul %74, %93, %cst_68 {dimension_numbers = #tpu.dot_dimension_numbers<[1], [0], [0], [1], [0, 0, 1, 1], [], []>} : vector<256x24xf32>, vector<24x128xf32>, vector<256x128xf32> -> vector<256x128xf32>
    %95 = arith.mulf %91, %94 : vector<256x128xf32>
    %96 = arith.addf %95, %91 : vector<256x128xf32>
    %97 = arith.maximumf %89, %96 : vector<256x128xf32>
    %c0_69 = arith.constant 0 : index
    %c0_70 = arith.constant 0 : index
    %98 = vector.load %arg10[%c0_69, %c0_70] : memref<256x128xf32, #tpu.memory_space<vmem>>, vector<256x128xf32>
    tpu.vector_store %arg10[%c0_69, %c0_70], %97 {strides = array<i32>} : memref<256x128xf32, #tpu.memory_space<vmem>>, vector<256x128xf32>,
    %c0_71 = arith.constant 0 : index
    %c0_72 = arith.constant 0 : index
    %99 = vector.load %arg1[%c0_71, %c0_72] : memref<256x128xf32, #tpu.memory_space<vmem>>, vector<256x128xf32>
    %100 = arith.subf %97, %99 : vector<256x128xf32>
    %101 = math.absf %100 : vector<256x128xf32>
    %102 = vector.shape_cast %101 : vector<256x128xf32> to vector<32x8x128xf32>
    %cst_73 = arith.constant dense<0.000000e+00> : vector<8x128xf32>
    %103 = vector.multi_reduction <add>, %102, %cst_73 [0] : vector<32x8x128xf32> to vector<8x128xf32>
    %c0_74 = arith.constant 0 : index
    %c0_75 = arith.constant 0 : index
    %104 = vector.load %arg11[%c0_74, %c0_75] : memref<8x128xf32, #tpu.memory_space<vmem>>, vector<8x128xf32>
    tpu.vector_store %arg11[%c0_74, %c0_75], %103 {strides = array<i32>} : memref<8x128xf32, #tpu.memory_space<vmem>>, vector<8x128xf32>,
    return
  }
  func.func @transform_0(%arg0: i32) -> (i32, i32) {
    %c0_i32 = arith.constant 0 : i32
    %c0_i32_0 = arith.constant 0 : i32
    return %arg0, %c0_i32 : i32, i32
  }
  func.func @transform_1(%arg0: i32) -> (i32, i32, i32) {
    %c0_i32 = arith.constant 0 : i32
    %c0_i32_0 = arith.constant 0 : i32
    %c0_i32_1 = arith.constant 0 : i32
    return %c0_i32, %arg0, %c0_i32_0 : i32, i32, i32
  }
  func.func @transform_2(%arg0: i32) -> (i32, i32) {
    %c0_i32 = arith.constant 0 : i32
    %c0_i32_0 = arith.constant 0 : i32
    %c0_i32_1 = arith.constant 0 : i32
    return %c0_i32, %c0_i32_0 : i32, i32
  }
  func.func @transform_3(%arg0: i32) -> (i32, i32) {
    %c0_i32 = arith.constant 0 : i32
    %c0_i32_0 = arith.constant 0 : i32
    %c0_i32_1 = arith.constant 0 : i32
    return %c0_i32, %c0_i32_0 : i32, i32
  }
  func.func @transform_4(%arg0: i32) -> (i32, i32, i32) {
    %c0_i32 = arith.constant 0 : i32
    %c0_i32_0 = arith.constant 0 : i32
    %c0_i32_1 = arith.constant 0 : i32
    %c0_i32_2 = arith.constant 0 : i32
    return %c0_i32, %c0_i32_0, %c0_i32_1 : i32, i32, i32
  }
  func.func @transform_5(%arg0: i32) -> (i32, i32, i32) {
    %c0_i32 = arith.constant 0 : i32
    %c0_i32_0 = arith.constant 0 : i32
    %c0_i32_1 = arith.constant 0 : i32
    %c0_i32_2 = arith.constant 0 : i32
    return %c0_i32, %c0_i32_0, %c0_i32_1 : i32, i32, i32
  }
  func.func @transform_6(%arg0: i32) -> (i32, i32) {
    %c0_i32 = arith.constant 0 : i32
    %c0_i32_0 = arith.constant 0 : i32
    %c0_i32_1 = arith.constant 0 : i32
    return %c0_i32, %c0_i32_0 : i32, i32
  }
  func.func @transform_7(%arg0: i32) -> (i32, i32) {
    %c0_i32 = arith.constant 0 : i32
    %c0_i32_0 = arith.constant 0 : i32
    %c0_i32_1 = arith.constant 0 : i32
    return %c0_i32, %c0_i32_0 : i32, i32
  }
  func.func @transform_8(%arg0: i32) -> (i32, i32) {
    %c0_i32 = arith.constant 0 : i32
    %c0_i32_0 = arith.constant 0 : i32
    %c0_i32_1 = arith.constant 0 : i32
    return %c0_i32, %c0_i32_0 : i32, i32
  }
  func.func @transform_9(%arg0: i32) -> (i32, i32) {
    %c0_i32 = arith.constant 0 : i32
    %c0_i32_0 = arith.constant 0 : i32
    return %arg0, %c0_i32 : i32, i32
  }
  func.func @transform_10(%arg0: i32) -> (i32, i32) {
    %c0_i32 = arith.constant 0 : i32
    %c0_i32_0 = arith.constant 0 : i32
    return %arg0, %c0_i32 : i32, i32
  }
}

</mosaic_0001>

<bundles_post_ra>
// kernel: tpu_custom_call.1
= control target key start
LH: loop header
LB: loop body
LE: loop exit
PB: predicated region body
PF: predicated region fallthrough
CT: control target
= control target key end

     0   :  { %s13652_s0 = inlined_call_operand.hbm [shape: f32[512,128], index: 0, kind: input, shape index: {}]   ;;  %s13653_s1 = inlined_call_operand.hbm [shape: f32[3,512,128], index: 1, kind: input, shape index: {}]   ;;  %s13654_s2 = inlined_call_operand.vmem [shape: f32[128,8], index: 2, kind: input, shape index: {}]   ;;  %s13655_s3 = inlined_call_operand.vmem [shape: f32[8,128], index: 3, kind: input, shape index: {}]   ;;  %s13656_s4 = inlined_call_operand.vmem [shape: f32[3,24,128], index: 4, kind: input, shape index: {}]   ;;  %s13657_s5 = inlined_call_operand.hbm [shape: f32[3,128,128], index: 5, kind: input, shape index: {}]   ;;  %s13658_s6 = inlined_call_operand.vmem [shape: f32[1,128], index: 6, kind: input, shape index: {}]   ;;  %s13659_s7 = inlined_call_operand.vmem [shape: f32[128,24], index: 7, kind: input, shape index: {}]   ;;  %s13660_s8 = inlined_call_operand.vmem [shape: f32[1,24], index: 8, kind: input, shape index: {}]   ;;  %s13661_s9 = inlined_call_operand.hbm [shape: f32[512,128], index: 9, kind: output, shape index: {0}]   ;;  %s13662_s10 = inlined_call_operand.hbm [shape: f32[16,128], index: 10, kind: output, shape index: {1}]  }
   0x1   :  { %13704 = sst [smem:[#allocation74_spill]] %s13652_s0 }
   0x2   :  { %13705 = sst [smem:[#allocation75_spill]] %s13657_s5 }
   0x3   :  { %16 = vsyncpa [#allocation3], 0 }
   0x4   :  { %18 = vsyncpa [#allocation3 + $0x1], 0 }
   0x5   :  { %19 = vsyncpa [#allocation6], 0 }
   0x6   :  { %21 = vsyncpa [#allocation6 + $0x1], 0 }
   0x7   :  { %22 = vsyncpa [#allocation4], 0 }
   0x8   :  { %24 = vsyncpa [#allocation4 + $0x1], 0 }
   0x9   :  { %25 = vsyncpa [#allocation10], 0 }
   0xa   :  { %27 = vsyncpa [#allocation10 + $0x1], 0  ;;  %s10409_s13 = smov 0   ;;  %s10411_s14 = smov 0  }
   0xb   :  { %s10413_s15 = smov 0   ;;  %s10415_s16 = smov 0  }
   0xc LB: > { %13706 = sst [smem:[#allocation19_spill]] %s10332_s15  ;;  %s10430_s17 = sadd.s32 4294967295, %s10336_s16   ;;  %s10336_s16 = sphi %s10415_s16, %s13961_s16   ;;  %s10332_s15 = sphi %s10413_s15, %s13963_s15   ;;  %s10328_s14 = sphi %s10411_s14, %s13965_s14   ;;  %s10324_s13 = sphi %s10409_s13, %s13964_s13  }
   0xd   : > { %s7139_s18 = sadd.s32 4294967294, %s10336_s16   ;;  %s10434_s19 = sadd.s32 1, %s10336_s16  }
   0xe   : > { %13707 = sst [smem:[#allocation20_spill]] %s10434_s19  ;;  %s40_s20 = sadd.s32 1, %s10332_s15 }
   0xf   : > { %s37_s21 = ssub.s32 %s10336_s16, %s10434_s19  ;;  %p47_p0 = scmp.ne.s32.totalorder %s10332_s15, %s10328_s14 }
  0x10   : > { %p38_p1 = scmp.eq.s32.totalorder %s37_s21, 0  ;;  %p48_p2 = scmp.eq.s32.totalorder %s10336_s16, 0 }
  0x11   : > { %p53_p3 = scmp.ne.s32.totalorder %s10328_s14, %s10324_s13  ;;  %p13670_p4 = scmp.eq.s32.totalorder %s10430_s17, 0 }
  0x12   : > { %s10446_s22 = scalar_select %p38_p1, %s10332_s15, %s40_s20  }
  0x13   : > { %p10448_p5 = por %p48_p2, %p47_p0  ;;  %p10454_p6 = por %p13670_p4, %p53_p3 }
  0x14   : > { %13708 = sst [smem:[#allocation21_spill]] %s10446_s22  ;;  %p250_p7 = scmp.eq.s32.totalorder %s10430_s17, 1 }
  0x15   : > { %s13710_s24 = scalar_select %p10454_p6, 1, 0 }
  0x16   : > { %p256_p8 = scmp.eq.s32.totalorder %s7139_s18, 1  ;;  %p7140_p9 = scmp.ge.s32.totalorder %s10336_s16, 1 }
  0x17   : > { %p289_p10 = scmp.lt.s32.totalorder %s10336_s16, 3  ;;  %p10461_p11 = por %p250_p7, %p47_p0 }
  0x18   : > { %p10465_p12 = por %p256_p8, %p53_p3  ;;  %s10338_s28 = smov [#allocation7]  }
  0x19   : > { %s13711_s25 = scalar_select %p10461_p11, 1, 0 }
  0x1a   : > { %s13712_s26 = scalar_select %p10465_p12, 1, 0 }
  0x1b   : > { %p10469_p13 = pnand %p7140_p9, %p289_p10  ;;  %s310_s29 = sshll.u32 %s10338_s28, 4  ;;  %s311_s29 = int_to_ptr.vmem [resolvable:$true] %s310_s29 }
  0x1c   : > { %13713 = sst [smem:[#allocation22_spill]] %s13712_s26  ;;  %s10193_s30 = scalar_lea.vmem %s311_s29, 6144 }
  0x1d   : > { %p9625_p1 = pneg %p10469_p13  ;;  %p10194_p7 = scmp.ne.s32.totalorder %s311_s29, %s10193_s30 }
  0x1e   : > { %p10201_p8 = scmp.lt.s32.totalorder %s311_s29, %s311_s29  ;;  %p10202_p6 = scmp.lt.s32.totalorder %s10193_s30, %s10193_s30 }
  0x1f   : > { %p9626_p2 = pnand %p9625_p1, %p13670_p4 }
  0x20   : > { %p10203_p12 = por %p10202_p6, %p10201_p8 }
  0x21   : > { %p10184_p0 = pneg %p9626_p2 }
  0x23   : > { %p10196_p11 = pnand %p10194_p7, %p10184_p0 }
  0x25   : > { %p10197_p3 = pneg %p10196_p11 }
  0x27   : > { %p10204_p9 = pnand %p10203_p12, %p10197_p3 }
  0x29   : > { %10207 = shalt.err (!%p10204_p9)
}
  0x2a   : > { %s10339_s11 = smov 128   ;;  %s10340_s12 = smov 8  }
  0x2b   : > { %s13715_s5 = sld [smem:[#allocation75_spill]]  ;;  %p13669_p10 = scmp.ge.s32.totalorder %s10336_s16, 2 }
  0x2c   : > { %s10484_s21 = sand.u32 (!%p13669_p10), 1, %s10332_s15   ;;  %s7554_s28 = sshll.u32 (!%p13669_p10), %s10336_s16, 12 }
  0x2d   : > { %329 = sbr.rel (%p13669_p10) target bundleno = 88 (0x58), region = 44  ;;  %s7143_s30 = sshll.u32 (!%p13669_p10), %s10484_s21, 8 }
  0x2e   : > { %s13716_s0 = sld [smem:[#allocation74_spill]] (!%p13669_p10)  ;;  %s334_s18 = scalar_lea.sflag (!%p13669_p10), [#allocation3], %s10484_s21 }
  0x31   : > { %9628 = dma.hbm_to_vmem [thread:$0]  (!%p9626_p2), %s13715_s5, 6144, %s311_s29, [#allocation6], %s10339_s11, %s10339_s11, %s10340_s12  }
  0x32   : > { %s337_s11 = scalar_lea.vmem [#allocation2], %s7143_s30 }
  0x33   : > { %s344_s12 = sshll.u32 %s337_s11, 4  ;;  %s10495_s12 = int_to_ptr.vmem [resolvable:$true] %s344_s12 }
  0x34   : > { %s10493_s29 = scalar_lea.hbm %s13716_s0, %s7554_s28  ;;  %s10212_s26 = scalar_lea.hbm %s13716_s0, 8192 }
  0x35   : > { %s10208_s20 = scalar_lea.hbm %s10493_s29, 4096  ;;  %p10213_p1 = scmp.lt.s32.totalorder %s10493_s29, %s13716_s0 }
  0x36   : > { %p10209_p6 = scmp.ne.s32.totalorder %s10493_s29, %s10208_s20  ;;  %p10214_p2 = scmp.lt.s32.totalorder %s10212_s26, %s10208_s20 }
  0x38   : > { %p10210_p11 = pnand %p10209_p6, %p10448_p5  ;;  %p10215_p0 = por %p10214_p2, %p10213_p1 }
  0x3a   : > { %p10211_p12 = pneg %p10210_p11 }
  0x3c   : > { %p10216_p7 = pnand %p10215_p0, %p10211_p12 }
  0x3e   : > { %10219 = shalt.err (!%p10216_p7)
}
  0x3f   : > { %s10220_s30 = scalar_lea.vmem %s10495_s12, 4096  ;;  %s10341_s11 = smov [#allocation2]  }
  0x40   : > { %p10221_p3 = scmp.ne.s32.totalorder %s10495_s12, %s10220_s30  ;;  %s10224_s5 = sshll.u32 %s10341_s11, 4  ;;  %s10225_s5 = int_to_ptr.vmem [resolvable:$false] %s10224_s5 }
  0x41   : > { %s10226_s15 = scalar_lea.vmem %s10225_s5, 8192  ;;  %p10227_p6 = scmp.lt.s32.totalorder %s10495_s12, %s10225_s5 }
  0x42   : > { %p10222_p8 = pnand %p10221_p3, %p10448_p5  ;;  %p10228_p11 = scmp.lt.s32.totalorder %s10226_s15, %s10220_s30 }
  0x44   : > { %p10223_p9 = pneg %p10222_p8  ;;  %p10229_p10 = por %p10228_p11, %p10227_p6 }
  0x46   : > { %p10230_p4 = pnand %p10229_p10, %p10223_p9 }
  0x48   : > { %10233 = shalt.err (!%p10230_p4)
}
  0x49   : > { %s10342_s26 = smov 128   ;;  %s10343_s20 = smov 8  }
  0x4a   : > { %9608 = dma.hbm_to_vmem [thread:$0]  (%p10448_p5), %s10493_s29, 4096, %s10495_s12, %s334_s18, %s10342_s26, %s10342_s26, %s10343_s20  }
  0x4b   : > { %s354_s19 = sand.u32 1, %s10336_s16   ;;  %s9604_s22 = smul.u32 768, %s10484_s21 }
  0x4c   : > { %s9609_s30 = scalar_select %p10448_p5, [#allocation0], [#allocation13] }
  0x4d   : > { %s364_s15 = scalar_lea.hbm %s13653_s1, %s7554_s28  ;;  %s10344_s29 = smov 8192  }
  0x4e   : > { %9610 = sst [smem:[#allocation12]] (%p10448_p5), %s10344_s29  ;;  %s358_s18 = scalar_lea.vmem [#allocation5], %s9604_s22 }
  0x4f   : > { %s369_s12 = sld [smem:[%s9609_s30]]   ;;  %s377_s26 = sshll.u32 %s358_s18, 4  ;;  %s378_s26 = int_to_ptr.vmem [resolvable:$true] %s377_s26 }
  0x50   : > { %s10345_s20 = smov 4096   ;;  %s10346_s0 = smov 32  }
  0x51   : > { %9611 = sst [smem:[#allocation12 + $0x1]] (%p10448_p5), %s10345_s20  ;;  %s10347_s21 = smov 128  }
  0x52   : > { %9612 = sst [smem:[#allocation12 + $0x2]] (%p10448_p5), %s10346_s0  ;;  %s10348_s11 = smov 8  }
  0x53   : > { %9613 = sst [smem:[#allocation12 + $0x3]] (%p10448_p5), %s10347_s21  ;;  %s355_s22 = scalar_lea.sflag [#allocation6], %s354_s19 }
  0x54   : > { %9614 = sst [smem:[#allocation12 + $0x4]] (%p10448_p5), %s10347_s21  ;;  %s10349_s5 = smov 131072  }
  0x55   : > { %s7148_s28 = sshll.u32 %s369_s12, 26  ;;  %9615 = sst [smem:[#allocation12 + $0x5]] (%p10448_p5), %s10348_s11 }
  0x56   : > { %s7149_s30 = sadd.s32 134217728, %s7148_s28 }
  0x57   : > { %9616 = dma.general (%p10448_p5), %s364_s15, 12288, %s378_s26, %s355_s22, %s10349_s5, [#allocation12], %s7149_s30, 0  }
  0x58 PF: > { %402 = sbr.rel (%p10469_p13) target bundleno = 3140 (0xc44), region = 56 }
  0x5d   : > { %s10546_s0 = sand.u32 1, %s10328_s14   ;;  %p13717_p4 = scmp.ne.s32.totalorder %s13710_s24, 0 }
  0x5e   : > { %s7151_s29 = sshll.u32 %s10546_s0, 8  ;;  %s405_s12 = scalar_lea.sflag [#allocation3], %s10546_s0 }
  0x5f   : > { %s10552_s18 = scalar_lea.vmem [#allocation2], %s7151_s29 }
  0x60   : > { %10303 = dma.done.wait (%p13717_p4), %s405_s12, 4096  }
  0x61   : > { %10305 = vsyncadd (%p13717_p4), %s405_s12, 4294963200  ;;  %s413_s23 = sand.u32 1, %s10430_s17   ;;  %s9605_s27 = smul.u32 768, %s10546_s0 }
  0x62   : > { %s414_s19 = scalar_lea.sflag [#allocation6], %s413_s23 }
  0x63   : > { %s10560_s15 = scalar_lea.vmem [#allocation5], %s9605_s27 }
  0x64   : > { %10307 = dma.done.wait (%p13717_p4), %s414_s19, 12288  }
  0x65   : > { %10309 = vsyncadd (%p13717_p4), %s414_s19, 4294955008  ;;  %p13718_p5 = scmp.eq.s32.totalorder %s10430_s17, 0 }
  0x67   : > { %10311 = dma.done.wait (%p13718_p5), [#allocation6], 6144   ;;  %p13719_p13 = pmov %p13718_p5 }
  0x68   : > { %v10573_v0 = vld [vmem:[%s13654_s2 + $0x78] sm:$0xff]  ;;  %v10578_v1 = vld [vmem:[%s13654_s2 + $0x70] sm:$0xff]  ;;  %v10585_v2 = vld [vmem:[%s13654_s2 + $0x68] sm:$0xff]  ;;  %vm745_vm0 = vcmask 64512   ;;  %vm5774_vm1 = vcmask 195584   ;;  %s13301_s22 = scalar_lea.vmem [#allocation8], %s7151_s29 }
  0x69   : > { %10313 = vsyncadd (%p13719_p13), [#allocation6], 4294961152  ;;  %8340 = vmatprep.subr.mxu0 %v10573_v0  ;;  %v10592_v3 = vld [vmem:[%s13654_s2 + $0x60] sm:$0xff]  ;;  %v10602_v5 = vld [vmem:[%s13654_s2 + $0x58] sm:$0xff]  ;;  %s7556_s29 = sshll.u32 %s10430_s17, 12  ;;  %s6989_s5 = sshll.u32 %s13301_s22, 4  ;;  %s13588_s5 = int_to_ptr.vmem [resolvable:$true] %s6989_s5 }
  0x6a   : > { %8341 = vmatpush3.msra.mxu0 %v10573_v0  ;;  %v10596_v4 = vld [vmem:[%s10560_s15] sm:$0xff]  ;;  %v10610_v6 = vld [vmem:[%s13654_s2 + $0x50] sm:$0xff]  ;;  %v10617_v7 = vld [vmem:[%s13654_s2 + $0x48] sm:$0xff]  ;;  %s13583_s27 = scalar_lea.hbm %s13661_s9, %s7556_s29  ;;  %s6971_s19 = scalar_lea.sflag [#allocation4], %s10546_s0 }
  0x6b   : > { %8342 = vmatprep.subr.mxu0 %v10578_v1  ;;  %8372 = vmatprep.mubr.f32.mxu0 %v10596_v4  ;;  %v10624_v8 = vld [vmem:[%s13654_s2 + $0x40] sm:$0xff]  ;;  %v10631_v9 = vld [vmem:[%s13654_s2 + $0x38] sm:$0xff]  ;;  %v10638_v10 = vld [vmem:[%s13654_s2 + $0x30] sm:$0xff]  ;;  %s10234_s26 = scalar_lea.vmem %s13588_s5, 4096  ;;  %p13957_p12 = scmp.ne.s32.totalorder %s13711_s25, 0 }
  0x6c   : > { %8343 = vmatpush3.msra.mxu0 %v10578_v1  ;;  %v10643_v11 = vld [vmem:[%s13655_s3] sm:$0xff]  ;;  %v10651_v12 = vld [vmem:[%s13654_s2 + $0x28] sm:$0xff]  ;;  %v10667_v14 = vld [vmem:[%s13654_s2 + $0x18] sm:$0xff]  ;;  %p10235_p10 = scmp.ne.s32.totalorder %s13588_s5, %s10234_s26 }
  0x6d   : > { %8344 = vmatprep.subr.mxu0 %v10585_v2  ;;  %9602 = vmatprep.subr.mxu1 %v10643_v11  ;;  %v10660_v13 = vld [vmem:[%s13654_s2 + $0x20] sm:$0xff]  ;;  %v10674_v15 = vld [vmem:[%s13654_s2 + $0x10] sm:$0xff]  ;;  %v10681_v16 = vld [vmem:[%s13654_s2 + $0x8] sm:$0xff] }
  0x6e   : > { %8345 = vmatpush3.msra.mxu0 %v10585_v2  ;;  %9603 = vmatpush3.msra.mxu1 %v10643_v11  ;;  %v10688_v17 = vld [vmem:[%s13654_s2] sm:$0xff]  ;;  %v10693_v18 = vld [vmem:[%s10560_s15 + $0x8] sm:$0xff]  ;;  %v10697_v19 = vld [vmem:[%s10560_s15 + $0x10] sm:$0xff]  ;;  %p10236_p1 = pnand %p10235_p10, %p13957_p12 }
  0x6f   : > { %8346 = vmatprep.subr.mxu0 %v10592_v3  ;;  %8470 = vmatprep.subr.mxu1 %v10573_v0  ;;  %v10704_v20 = vld [vmem:[%s10560_s15 + $0x18] sm:$0xff]  ;;  %v10708_v21 = vld [vmem:[%s10560_s15 + $0x20] sm:$0xff]  ;;  %v10714_v22 = vld [vmem:[%s10560_s15 + $0x28] sm:$0xff] }
  0x70   : > { %8347 = vmatpush3.msra.mxu0 %v10592_v3  ;;  %v10717_v23 = vld [vmem:[%s10560_s15 + $0x30] sm:$0xff]  ;;  %v10722_v24 = vld [vmem:[%s10560_s15 + $0x38] sm:$0xff]  ;;  %v10725_v25 = vld [vmem:[%s10560_s15 + $0x40] sm:$0xff]  ;;  %p10237_p2 = pneg %p10236_p1 }
  0x71   : > { %8348 = vmatprep.subr.mxu0 %v10602_v5  ;;  %v10730_v26 = vld [vmem:[%s10560_s15 + $0x48] sm:$0xff]  ;;  %v10733_v27 = vld [vmem:[%s10560_s15 + $0x50] sm:$0xff]  ;;  %v10738_v28 = vld [vmem:[%s10560_s15 + $0x58] sm:$0xff] }
  0x72   : > { %8349 = vmatpush3.msra.mxu0 %v10602_v5  ;;  %v10741_v29 = vld [vmem:[%s10560_s15 + $0x60] sm:$0xff]  ;;  %v10746_v30 = vld [vmem:[%s10560_s15 + $0x68] sm:$0xff]  ;;  %v10749_v31 = vld [vmem:[%s10560_s15 + $0x70] sm:$0xff] }
  0x73   : > { %8350 = vmatprep.subr.mxu0 %v10610_v6  ;;  %v10754_v32 = vld [vmem:[%s10560_s15 + $0x78] sm:$0xff]  ;;  %v10757_v33 = vld [vmem:[%s10560_s15 + $0x80] sm:$0xff]  ;;  %v10762_v34 = vld [vmem:[%s10560_s15 + $0x88] sm:$0xff] }
  0x74   : > { %8351 = vmatpush3.msra.mxu0 %v10610_v6  ;;  %v10765_v35 = vld [vmem:[%s10560_s15 + $0x90] sm:$0xff]  ;;  %v10770_v36 = vld [vmem:[%s10560_s15 + $0x98] sm:$0xff]  ;;  %v10773_v37 = vld [vmem:[%s10560_s15 + $0xa0] sm:$0xff] }
  0x75   : > { %8352 = vmatprep.subr.mxu0 %v10617_v7  ;;  %v10778_v38 = vld [vmem:[%s10560_s15 + $0xa8] sm:$0xff]  ;;  %v10781_v39 = vld [vmem:[%s10560_s15 + $0xb0] sm:$0xff]  ;;  %v10786_v40 = vld [vmem:[%s10560_s15 + $0xb8] sm:$0xff] }
  0x76   : > { %8353 = vmatpush3.msra.mxu0 %v10617_v7  ;;  %v10789_v41 = vld [vmem:[%s10560_s15 + $0xc0] sm:$0xff]  ;;  %v10794_v42 = vld [vmem:[%s10560_s15 + $0xc8] sm:$0xff]  ;;  %v10797_v43 = vld [vmem:[%s10560_s15 + $0xd0] sm:$0xff] }
  0x77   : > { %8354 = vmatprep.subr.mxu0 %v10624_v8  ;;  %v10802_v44 = vld [vmem:[%s10560_s15 + $0xd8] sm:$0xff]  ;;  %v10805_v45 = vld [vmem:[%s10560_s15 + $0xe0] sm:$0xff]  ;;  %v10810_v46 = vld [vmem:[%s10560_s15 + $0xe8] sm:$0xff] }
  0x78   : > { %8355 = vmatpush3.msra.mxu0 %v10624_v8  ;;  %v10813_v47 = vld [vmem:[%s10560_s15 + $0xf0] sm:$0xff]  ;;  %v10818_v48 = vld [vmem:[%s10560_s15 + $0xf8] sm:$0xff] }
  0x79   : > { %8356 = vmatprep.subr.mxu0 %v10631_v9 }
  0x7a   : > { %8357 = vmatpush3.msra.mxu0 %v10631_v9 }
  0x7b   : > { %8358 = vmatprep.subr.mxu0 %v10638_v10 }
  0x7c   : > { %8359 = vmatpush3.msra.mxu0 %v10638_v10 }
  0x7d   : > { %8360 = vmatprep.subr.mxu0 %v10651_v12 }
  0x7e   : > { %8361 = vmatpush3.msra.mxu0 %v10651_v12 }
  0x7f   : > { %8362 = vmatprep.subr.mxu0 %v10660_v13 }
  0x80   : > { %8363 = vmatpush3.msra.mxu0 %v10660_v13 }
  0x81   : > { %8364 = vmatprep.subr.mxu0 %v10667_v14 }
  0x82   : > { %8365 = vmatpush3.msra.mxu0 %v10667_v14 }
  0x83   : > { %8366 = vmatprep.subr.mxu0 %v10674_v15 }
  0x84   : > { %8367 = vmatpush3.msra.mxu0 %v10674_v15 }
  0x85   : > { %8368 = vmatprep.subr.mxu0 %v10681_v16 }
  0x86   : > { %8369 = vmatpush3.msra.mxu0 %v10681_v16 }
  0x87   : > { %8370 = vmatprep.subr.mxu0 %v10688_v17 }
  0x88   : > { %8371 = vmatpush3.msra.mxu0 %v10688_v17 }
  0x89   : > { %8373 = vmatmul.mubr.f32.vlgmr.msra.gmra.mxu0 %v10693_v18  ;;  %8420 = vmatprep.subr.mxu0 %v10643_v11 }
  0x8a   : > { %8375 = vmatprep.mubr.f32.mxu0 %v10697_v19  ;;  %8421 = vmatpush3.msra.mxu0 %v10643_v11 }
  0x8b   : > { %8550 = vmatprep.subr.mxu0 %v10643_v11 }
  0x8d   : > { %8376 = vmatmul.mubr.f32.gmra.mxu0 %v10704_v20 }
  0x8e   : > { %8378 = vmatprep.mubr.f32.mxu0 %v10708_v21 }
  0x91   : > { %8379 = vmatmul.mubr.f32.gmra.mxu0 %v10714_v22 }
  0x92   : > { %8381 = vmatprep.mubr.f32.mxu0 %v10717_v23 }
  0x95   : > { %8382 = vmatmul.mubr.f32.gmra.mxu0 %v10722_v24 }
  0x96   : > { %8384 = vmatprep.mubr.f32.mxu0 %v10725_v25 }
  0x99   : > { %8385 = vmatmul.mubr.f32.gmra.mxu0 %v10730_v26 }
  0x9a   : > { %8387 = vmatprep.mubr.f32.mxu0 %v10733_v27 }
  0x9d   : > { %8388 = vmatmul.mubr.f32.gmra.mxu0 %v10738_v28 }
  0x9e   : > { %8390 = vmatprep.mubr.f32.mxu0 %v10741_v29 }
  0xa1   : > { %8391 = vmatmul.mubr.f32.gmra.mxu0 %v10746_v30 }
  0xa2   : > { %8393 = vmatprep.mubr.f32.mxu0 %v10749_v31 }
  0xa5   : > { %8394 = vmatmul.mubr.f32.gmra.mxu0 %v10754_v32 }
  0xa6   : > { %8396 = vmatprep.mubr.f32.mxu0 %v10757_v33 }
  0xa9   : > { %8397 = vmatmul.mubr.f32.gmra.mxu0 %v10762_v34 }
  0xaa   : > { %8399 = vmatprep.mubr.f32.mxu0 %v10765_v35 }
  0xad   : > { %8400 = vmatmul.mubr.f32.gmra.mxu0 %v10770_v36 }
  0xae   : > { %8402 = vmatprep.mubr.f32.mxu0 %v10773_v37 }
  0xb1   : > { %8403 = vmatmul.mubr.f32.gmra.mxu0 %v10778_v38 }
  0xb2   : > { %8405 = vmatprep.mubr.f32.mxu0 %v10781_v39 }
  0xb5   : > { %8406 = vmatmul.mubr.f32.gmra.mxu0 %v10786_v40 }
  0xb6   : > { %8408 = vmatprep.mubr.f32.mxu0 %v10789_v41 }
  0xb9   : > { %8409 = vmatmul.mubr.f32.gmra.mxu0 %v10794_v42 }
  0xba   : > { %8411 = vmatprep.mubr.f32.mxu0 %v10797_v43 }
  0xbd   : > { %8412 = vmatmul.mubr.f32.gmra.mxu0 %v10802_v44 }
  0xbe   : > { %8414 = vmatprep.mubr.f32.mxu0 %v10805_v45 }
  0xc1   : > { %8415 = vmatmul.mubr.f32.gmra.mxu0 %v10810_v46 }
  0xc2   : > { %8417 = vmatprep.mubr.f32.mxu0 %v10813_v47 }
  0xc5   : > { %8418 = vmatmul.mubr.f32.gmra.mxu0 %v10818_v48 }
 0x149   : > { %v8374_v49 = vpop.f32.mrf.mxu0 }
 0x14b   : > { %v586_v50 = vpop.f32.mrf.mxu0 }
 0x14c   : > { %8422 = vmatprep.mubr.msk.f32.mxu0 %vm745_vm0, %v586_v50 }
 0x14d   : > { %v8377_v51 = vpop.f32.mrf.mxu0  ;;  %8423 = vmatmul.mubr.msk.f32.vlgmr.msra.gmra.mxu0 %vm745_vm0, %v8374_v49 }
 0x14e   : > { %8551 = vmatpush3.msra.mxu0 %v10643_v11 }
 0x14f   : > { %v596_v52 = vpop.f32.mrf.mxu0  ;;  %8680 = vmatprep.subr.mxu0 %v10643_v11 }
 0x150   : > { %8425 = vmatprep.mubr.msk.f32.mxu0 %vm745_vm0, %v596_v52 }
 0x151   : > { %v8380_v53 = vpop.f32.mrf.mxu0  ;;  %8426 = vmatmul.mubr.msk.f32.gmra.mxu0 %vm745_vm0, %v8377_v51 }
 0x153   : > { %v606_v54 = vpop.f32.mrf.mxu0 }
 0x154   : > { %8428 = vmatprep.mubr.msk.f32.mxu0 %vm745_vm0, %v606_v54 }
 0x155   : > { %v8383_v55 = vpop.f32.mrf.mxu0  ;;  %8429 = vmatmul.mubr.msk.f32.gmra.mxu0 %vm745_vm0, %v8380_v53 }
 0x157   : > { %v616_v56 = vpop.f32.mrf.mxu0 }
 0x158   : > { %8431 = vmatprep.mubr.msk.f32.mxu0 %vm745_vm0, %v616_v56 }
 0x159   : > { %v8386_v57 = vpop.f32.mrf.mxu0  ;;  %8432 = vmatmul.mubr.msk.f32.gmra.mxu0 %vm745_vm0, %v8383_v55 }
 0x15b   : > { %v626_v58 = vpop.f32.mrf.mxu0 }
 0x15c   : > { %8434 = vmatprep.mubr.msk.f32.mxu1 %vm745_vm0, %v626_v58 }
 0x15d   : > { %v8389_v59 = vpop.f32.mrf.mxu0  ;;  %8435 = vmatmul.mubr.msk.f32.vlgmr.msra.gmra.mxu1 %vm745_vm0, %v8386_v57 }
 0x15e   : > { %8471 = vmatpush3.msra.mxu1 %v10573_v0 }
 0x15f   : > { %v636_v60 = vpop.f32.mrf.mxu0  ;;  %8472 = vmatprep.subr.mxu1 %v10578_v1 }
 0x160   : > { %8437 = vmatprep.mubr.msk.f32.mxu1 %vm745_vm0, %v636_v60  ;;  %8473 = vmatpush3.msra.mxu1 %v10578_v1 }
 0x161   : > { %v8392_v61 = vpop.f32.mrf.mxu0  ;;  %8438 = vmatmul.mubr.msk.f32.gmra.mxu1 %vm745_vm0, %v8389_v59  ;;  %8474 = vmatprep.subr.mxu1 %v10585_v2 }
 0x162   : > { %8475 = vmatpush3.msra.mxu1 %v10585_v2 }
 0x163   : > { %v646_v62 = vpop.f32.mrf.mxu0  ;;  %8476 = vmatprep.subr.mxu1 %v10592_v3 }
 0x164   : > { %8440 = vmatprep.mubr.msk.f32.mxu1 %vm745_vm0, %v646_v62  ;;  %8477 = vmatpush3.msra.mxu1 %v10592_v3 }
 0x165   : > { %v8395_v63 = vpop.f32.mrf.mxu0  ;;  %8441 = vmatmul.mubr.msk.f32.gmra.mxu1 %vm745_vm0, %v8392_v61  ;;  %8478 = vmatprep.subr.mxu1 %v10602_v5 }
 0x166   : > { %8479 = vmatpush3.msra.mxu1 %v10602_v5 }
 0x167   : > { %v656_v49 = vpop.f32.mrf.mxu0  ;;  %8480 = vmatprep.subr.mxu1 %v10610_v6 }
 0x168   : > { %8443 = vmatprep.mubr.msk.f32.mxu1 %vm745_vm0, %v656_v49  ;;  %8481 = vmatpush3.msra.mxu1 %v10610_v6 }
 0x169   : > { %v8398_v50 = vpop.f32.mrf.mxu0  ;;  %8444 = vmatmul.mubr.msk.f32.gmra.mxu1 %vm745_vm0, %v8395_v63  ;;  %8482 = vmatprep.subr.mxu1 %v10617_v7 }
 0x16a   : > { %8483 = vmatpush3.msra.mxu1 %v10617_v7 }
 0x16b   : > { %v666_v51 = vpop.f32.mrf.mxu0  ;;  %8484 = vmatprep.subr.mxu1 %v10624_v8 }
 0x16c   : > { %8446 = vmatprep.mubr.msk.f32.mxu1 %vm745_vm0, %v666_v51  ;;  %8485 = vmatpush3.msra.mxu1 %v10624_v8 }
 0x16d   : > { %v8401_v52 = vpop.f32.mrf.mxu0  ;;  %8447 = vmatmul.mubr.msk.f32.gmra.mxu1 %vm745_vm0, %v8398_v50  ;;  %8486 = vmatprep.subr.mxu1 %v10631_v9 }
 0x16e   : > { %8487 = vmatpush3.msra.mxu1 %v10631_v9 }
 0x16f   : > { %v676_v53 = vpop.f32.mrf.mxu0  ;;  %8488 = vmatprep.subr.mxu1 %v10638_v10 }
 0x170   : > { %8449 = vmatprep.mubr.msk.f32.mxu1 %vm745_vm0, %v676_v53  ;;  %8489 = vmatpush3.msra.mxu1 %v10638_v10 }
 0x171   : > { %v8404_v54 = vpop.f32.mrf.mxu0  ;;  %8450 = vmatmul.mubr.msk.f32.gmra.mxu1 %vm745_vm0, %v8401_v52  ;;  %8490 = vmatprep.subr.mxu1 %v10651_v12 }
 0x172   : > { %8491 = vmatpush3.msra.mxu1 %v10651_v12 }
 0x173   : > { %v686_v55 = vpop.f32.mrf.mxu0  ;;  %8492 = vmatprep.subr.mxu1 %v10660_v13 }
 0x174   : > { %8452 = vmatprep.mubr.msk.f32.mxu1 %vm745_vm0, %v686_v55  ;;  %8493 = vmatpush3.msra.mxu1 %v10660_v13 }
 0x175   : > { %v8407_v56 = vpop.f32.mrf.mxu0  ;;  %8453 = vmatmul.mubr.msk.f32.gmra.mxu1 %vm745_vm0, %v8404_v54  ;;  %8494 = vmatprep.subr.mxu1 %v10667_v14 }
 0x176   : > { %8495 = vmatpush3.msra.mxu1 %v10667_v14 }
 0x177   : > { %v696_v57 = vpop.f32.mrf.mxu0  ;;  %8496 = vmatprep.subr.mxu1 %v10674_v15 }
 0x178   : > { %8455 = vmatprep.mubr.msk.f32.mxu1 %vm745_vm0, %v696_v57  ;;  %8497 = vmatpush3.msra.mxu1 %v10674_v15 }
 0x179   : > { %v8410_v58 = vpop.f32.mrf.mxu0  ;;  %8456 = vmatmul.mubr.msk.f32.gmra.mxu1 %vm745_vm0, %v8407_v56  ;;  %8498 = vmatprep.subr.mxu1 %v10681_v16 }
 0x17a   : > { %8499 = vmatpush3.msra.mxu1 %v10681_v16 }
 0x17b   : > { %v706_v59 = vpop.f32.mrf.mxu0  ;;  %8500 = vmatprep.subr.mxu1 %v10688_v17 }
 0x17c   : > { %8458 = vmatprep.mubr.msk.f32.mxu1 %vm745_vm0, %v706_v59  ;;  %8501 = vmatpush3.msra.mxu1 %v10688_v17 }
 0x17d   : > { %v8413_v60 = vpop.f32.mrf.mxu0  ;;  %8459 = vmatmul.mubr.msk.f32.gmra.mxu1 %vm745_vm0, %v8410_v58  ;;  %8600 = vmatprep.subr.mxu1 %v10573_v0 }
 0x17f   : > { %v716_v61 = vpop.f32.mrf.mxu0 }
 0x180   : > { %8461 = vmatprep.mubr.msk.f32.mxu1 %vm745_vm0, %v716_v61 }
 0x181   : > { %v8416_v62 = vpop.f32.mrf.mxu0  ;;  %8462 = vmatmul.mubr.msk.f32.gmra.mxu1 %vm745_vm0, %v8413_v60 }
 0x183   : > { %v726_v63 = vpop.f32.mrf.mxu0 }
 0x184   : > { %8464 = vmatprep.mubr.msk.f32.mxu1 %vm745_vm0, %v726_v63 }
 0x185   : > { %v8419_v49 = vpop.f32.mrf.mxu0  ;;  %8465 = vmatmul.mubr.msk.f32.gmra.mxu1 %vm745_vm0, %v8416_v62 }
 0x187   : > { %v736_v50 = vpop.f32.mrf.mxu0 }
 0x188   : > { %8467 = vmatprep.mubr.msk.f32.mxu1 %vm745_vm0, %v736_v50 }
 0x189   : > { %8468 = vmatmul.mubr.msk.f32.gmra.mxu1 %vm745_vm0, %v8419_v49 }
 0x20d   : > { %v8424_v51 = vpop.f32.mrf.mxu0 }
 0x20e   : > { %v10888_v52 = vsub.f32 %v10693_v18, %v8424_v51 }
 0x20f   : > { %v908_v53 = vpop.f32.mrf.mxu0 }
 0x210   : > { %v10891_v54 = vsub.f32 %v10596_v4, %v908_v53  ;;  %v1100_v57 = vmul.f32 %v10888_v52, %v10888_v52 }
 0x211   : > { %v8427_v55 = vpop.f32.mrf.mxu0 }
 0x212   : > { %v1099_v56 = vmul.f32 %v10891_v54, %v10891_v54  ;;  %v10898_v58 = vsub.f32 %v10704_v20, %v8427_v55 }
 0x213   : > { %v918_v59 = vpop.f32.mrf.mxu0 }
 0x214   : > { %v10901_v60 = vsub.f32 %v10697_v19, %v918_v59  ;;  %8502 = vmatprep.mubr.f32.mxu1 %v1099_v56  ;;  %v1102_v61 = vmul.f32 %v10898_v58, %v10898_v58 }
 0x215   : > { %v8430_v18 = vpop.f32.mrf.mxu0  ;;  %8503 = vmatmul.mubr.f32.vlgmr.msra.gmra.mxu1 %v1100_v57 }
 0x216   : > { %v1101_v4 = vmul.f32 %v10901_v60, %v10901_v60  ;;  %8601 = vmatpush3.msra.mxu1 %v10573_v0  ;;  %v10909_v62 = vsub.f32 %v10714_v22, %v8430_v18 }
 0x217   : > { %v928_v20 = vpop.f32.mrf.mxu0  ;;  %8602 = vmatprep.subr.mxu1 %v10578_v1 }
 0x218   : > { %v10913_v19 = vsub.f32 %v10708_v21, %v928_v20  ;;  %8505 = vmatprep.mubr.f32.mxu1 %v1101_v4  ;;  %8603 = vmatpush3.msra.mxu1 %v10578_v1  ;;  %v1104_v22 = vmul.f32 %v10909_v62, %v10909_v62 }
 0x219   : > { %v8433_v63 = vpop.f32.mrf.mxu0  ;;  %8506 = vmatmul.mubr.f32.gmra.mxu1 %v1102_v61  ;;  %8604 = vmatprep.subr.mxu1 %v10585_v2 }
 0x21a   : > { %v1103_v49 = vmul.f32 %v10913_v19, %v10913_v19  ;;  %8605 = vmatpush3.msra.mxu1 %v10585_v2  ;;  %v10923_v50 = vsub.f32 %v10722_v24, %v8433_v63 }
 0x21b   : > { %v938_v21 = vpop.f32.mrf.mxu0  ;;  %8606 = vmatprep.subr.mxu1 %v10592_v3 }
 0x21c   : > { %v10927_v51 = vsub.f32 %v10717_v23, %v938_v21  ;;  %8508 = vmatprep.mubr.f32.mxu1 %v1103_v49  ;;  %8607 = vmatpush3.msra.mxu1 %v10592_v3  ;;  %v1106_v24 = vmul.f32 %v10923_v50, %v10923_v50 }
 0x21d   : > { %v8436_v53 = vpop.f32.mrf.mxu1  ;;  %8509 = vmatmul.mubr.f32.gmra.mxu1 %v1104_v22  ;;  %8608 = vmatprep.subr.mxu1 %v10602_v5 }
 0x21e   : > { %v1105_v55 = vmul.f32 %v10927_v51, %v10927_v51  ;;  %8609 = vmatpush3.msra.mxu1 %v10602_v5  ;;  %v10937_v56 = vsub.f32 %v10730_v26, %v8436_v53 }
 0x21f   : > { %v948_v23 = vpop.f32.mrf.mxu1  ;;  %8610 = vmatprep.subr.mxu1 %v10610_v6 }
 0x220   : > { %v10941_v57 = vsub.f32 %v10725_v25, %v948_v23  ;;  %8511 = vmatprep.mubr.f32.mxu1 %v1105_v55  ;;  %8611 = vmatpush3.msra.mxu1 %v10610_v6  ;;  %v1108_v26 = vmul.f32 %v10937_v56, %v10937_v56 }
 0x221   : > { %v8439_v59 = vpop.f32.mrf.mxu1  ;;  %8512 = vmatmul.mubr.f32.gmra.mxu1 %v1106_v24  ;;  %8612 = vmatprep.subr.mxu1 %v10617_v7 }
 0x222   : > { %v1107_v18 = vmul.f32 %v10941_v57, %v10941_v57  ;;  %8613 = vmatpush3.msra.mxu1 %v10617_v7  ;;  %v10951_v4 = vsub.f32 %v10738_v28, %v8439_v59 }
 0x223   : > { %v958_v25 = vpop.f32.mrf.mxu1  ;;  %8614 = vmatprep.subr.mxu1 %v10624_v8 }
 0x224   : > { %13720 = vst [vmem:[#allocation23_spill] sm:$0xff] %v10951_v4  ;;  %v10955_v61 = vsub.f32 %v10733_v27, %v958_v25  ;;  %8514 = vmatprep.mubr.f32.mxu1 %v1107_v18  ;;  %8615 = vmatpush3.msra.mxu1 %v10624_v8  ;;  %v1110_v28 = vmul.f32 %v10951_v4, %v10951_v4 }
 0x225   : > { %v8442_v20 = vpop.f32.mrf.mxu1  ;;  %8515 = vmatmul.mubr.f32.gmra.mxu1 %v1108_v26  ;;  %8616 = vmatprep.subr.mxu1 %v10631_v9 }
 0x226   : > { %13721 = vst [vmem:[#allocation24_spill] sm:$0xff] %v10955_v61  ;;  %v1109_v63 = vmul.f32 %v10955_v61, %v10955_v61  ;;  %8617 = vmatpush3.msra.mxu1 %v10631_v9  ;;  %v10965_v49 = vsub.f32 %v10746_v30, %v8442_v20 }
 0x227   : > { %v968_v27 = vpop.f32.mrf.mxu1  ;;  %8618 = vmatprep.subr.mxu1 %v10638_v10 }
 0x228   : > { %13722 = vst [vmem:[#allocation25_spill] sm:$0xff] %v10965_v49  ;;  %v10969_v22 = vsub.f32 %v10741_v29, %v968_v27  ;;  %8517 = vmatprep.mubr.f32.mxu1 %v1109_v63  ;;  %8619 = vmatpush3.msra.mxu1 %v10638_v10  ;;  %v1112_v30 = vmul.f32 %v10965_v49, %v10965_v49 }
 0x229   : > { %v8445_v21 = vpop.f32.mrf.mxu1  ;;  %8518 = vmatmul.mubr.f32.gmra.mxu1 %v1110_v28  ;;  %8620 = vmatprep.subr.mxu1 %v10651_v12 }
 0x22a   : > { %13723 = vst [vmem:[#allocation26_spill] sm:$0xff] %v10969_v22  ;;  %v1111_v53 = vmul.f32 %v10969_v22, %v10969_v22  ;;  %8621 = vmatpush3.msra.mxu1 %v10651_v12  ;;  %v10979_v55 = vsub.f32 %v10754_v32, %v8445_v21 }
 0x22b   : > { %v978_v29 = vpop.f32.mrf.mxu1  ;;  %8622 = vmatprep.subr.mxu1 %v10660_v13 }
 0x22c   : > { %13724 = vst [vmem:[#allocation27_spill] sm:$0xff] %v10979_v55  ;;  %v10983_v24 = vsub.f32 %v10749_v31, %v978_v29  ;;  %8520 = vmatprep.mubr.f32.mxu1 %v1111_v53  ;;  %8623 = vmatpush3.msra.mxu1 %v10660_v13  ;;  %v1114_v32 = vmul.f32 %v10979_v55, %v10979_v55 }
 0x22d   : > { %v8448_v23 = vpop.f32.mrf.mxu1  ;;  %8521 = vmatmul.mubr.f32.gmra.mxu1 %v1112_v30  ;;  %8624 = vmatprep.subr.mxu1 %v10667_v14 }
 0x22e   : > { %13725 = vst [vmem:[#allocation28_spill] sm:$0xff] %v10983_v24  ;;  %v1113_v59 = vmul.f32 %v10983_v24, %v10983_v24  ;;  %8625 = vmatpush3.msra.mxu1 %v10667_v14  ;;  %v10993_v18 = vsub.f32 %v10762_v34, %v8448_v23 }
 0x22f   : > { %v988_v31 = vpop.f32.mrf.mxu1  ;;  %8626 = vmatprep.subr.mxu1 %v10674_v15 }
 0x230   : > { %13726 = vst [vmem:[#allocation29_spill] sm:$0xff] %v10993_v18  ;;  %v10997_v26 = vsub.f32 %v10757_v33, %v988_v31  ;;  %8523 = vmatprep.mubr.f32.mxu1 %v1113_v59  ;;  %8627 = vmatpush3.msra.mxu1 %v10674_v15  ;;  %v1116_v34 = vmul.f32 %v10993_v18, %v10993_v18 }
 0x231   : > { %v8451_v25 = vpop.f32.mrf.mxu1  ;;  %8524 = vmatmul.mubr.f32.gmra.mxu1 %v1114_v32  ;;  %8628 = vmatprep.subr.mxu1 %v10681_v16 }
 0x232   : > { %13727 = vst [vmem:[#allocation30_spill] sm:$0xff] %v10997_v26  ;;  %v1115_v20 = vmul.f32 %v10997_v26, %v10997_v26  ;;  %8629 = vmatpush3.msra.mxu1 %v10681_v16  ;;  %v11007_v63 = vsub.f32 %v10770_v36, %v8451_v25 }
 0x233   : > { %v998_v33 = vpop.f32.mrf.mxu1  ;;  %8630 = vmatprep.subr.mxu1 %v10688_v17 }
 0x234   : > { %13728 = vst [vmem:[#allocation31_spill] sm:$0xff] %v11007_v63  ;;  %v11011_v28 = vsub.f32 %v10765_v35, %v998_v33  ;;  %8526 = vmatprep.mubr.f32.mxu1 %v1115_v20  ;;  %8631 = vmatpush3.msra.mxu1 %v10688_v17  ;;  %v1118_v36 = vmul.f32 %v11007_v63, %v11007_v63 }
 0x235   : > { %v8454_v27 = vpop.f32.mrf.mxu1  ;;  %8527 = vmatmul.mubr.f32.gmra.mxu1 %v1116_v34  ;;  %8730 = vmatprep.subr.mxu1 %v10573_v0 }
 0x236   : > { %13729 = vst [vmem:[#allocation32_spill] sm:$0xff] %v11011_v28  ;;  %v1117_v21 = vmul.f32 %v11011_v28, %v11011_v28  ;;  %v11020_v53 = vsub.f32 %v10778_v38, %v8454_v27 }
 0x237   : > { %v1008_v30 = vpop.f32.mrf.mxu1 }
 0x238   : > { %13730 = vst [vmem:[#allocation33_spill] sm:$0xff] %v11020_v53  ;;  %v11023_v35 = vsub.f32 %v10773_v37, %v1008_v30  ;;  %8529 = vmatprep.mubr.f32.mxu1 %v1117_v21  ;;  %v1120_v59 = vmul.f32 %v11020_v53, %v11020_v53 }
 0x239   : > { %v8457_v29 = vpop.f32.mrf.mxu1  ;;  %8530 = vmatmul.mubr.f32.gmra.mxu1 %v1118_v36 }
 0x23a   : > { %13731 = vst [vmem:[#allocation34_spill] sm:$0xff] %v11023_v35  ;;  %v1119_v23 = vmul.f32 %v11023_v35, %v11023_v35  ;;  %v11030_v32 = vsub.f32 %v10786_v40, %v8457_v29 }
 0x23b   : > { %v1018_v31 = vpop.f32.mrf.mxu1 }
 0x23c   : > { %13732 = vst [vmem:[#allocation35_spill] sm:$0xff] %v11030_v32  ;;  %v11033_v38 = vsub.f32 %v10781_v39, %v1018_v31  ;;  %8532 = vmatprep.mubr.f32.mxu1 %v1119_v23  ;;  %v1122_v20 = vmul.f32 %v11030_v32, %v11030_v32 }
 0x23d   : > { %v8460_v25 = vpop.f32.mrf.mxu1  ;;  %8533 = vmatmul.mubr.f32.gmra.mxu1 %v1120_v59 }
 0x23e   : > { %13733 = vst [vmem:[#allocation36_spill] sm:$0xff] %v11033_v38  ;;  %v1121_v37 = vmul.f32 %v11033_v38, %v11033_v38  ;;  %v11040_v34 = vsub.f32 %v10794_v42, %v8460_v25 }
 0x23f   : > { %v1028_v33 = vpop.f32.mrf.mxu1 }
 0x240   : > { %13734 = vst [vmem:[#allocation37_spill] sm:$0xff] %v11040_v34  ;;  %v11043_v40 = vsub.f32 %v10789_v41, %v1028_v33  ;;  %8535 = vmatprep.mubr.f32.mxu1 %v1121_v37  ;;  %v1124_v21 = vmul.f32 %v11040_v34, %v11040_v34 }
 0x241   : > { %v8463_v27 = vpop.f32.mrf.mxu1  ;;  %8536 = vmatmul.mubr.f32.gmra.mxu1 %v1122_v20 }
 0x242   : > { %13735 = vst [vmem:[#allocation38_spill] sm:$0xff] %v11043_v40  ;;  %v1123_v39 = vmul.f32 %v11043_v40, %v11043_v40  ;;  %v11050_v36 = vsub.f32 %v10802_v44, %v8463_v27 }
 0x243   : > { %v1038_v30 = vpop.f32.mrf.mxu1 }
 0x244   : > { %13736 = vst [vmem:[#allocation39_spill] sm:$0xff] %v11050_v36  ;;  %v11053_v42 = vsub.f32 %v10797_v43, %v1038_v30  ;;  %8538 = vmatprep.mubr.f32.mxu1 %v1123_v39  ;;  %v1126_v23 = vmul.f32 %v11050_v36, %v11050_v36  ;;  %v11080_v39 = vld [vmem:[%s10560_s15 + $0x100] sm:$0xff] }
 0x245   : > { %v8466_v29 = vpop.f32.mrf.mxu1  ;;  %8539 = vmatmul.mubr.f32.gmra.mxu1 %v1124_v21  ;;  %v11092_v21 = vld [vmem:[%s10560_s15 + $0x118] sm:$0xff]  ;;  %v11096_v30 = vld [vmem:[%s10560_s15 + $0x120] sm:$0xff] }
 0x246   : > { %13737 = vst [vmem:[#allocation40_spill] sm:$0xff] %v11053_v42  ;;  %v1125_v41 = vmul.f32 %v11053_v42, %v11053_v42  ;;  %v11060_v59 = vsub.f32 %v10810_v46, %v8466_v29  ;;  %v11104_v29 = vld [vmem:[%s10560_s15 + $0x128] sm:$0xff] }
 0x247   : > { %v1048_v31 = vpop.f32.mrf.mxu1 }
 0x248   : > { %13738 = vst [vmem:[#allocation41_spill] sm:$0xff] %v11060_v59  ;;  %v11063_v44 = vsub.f32 %v10805_v45, %v1048_v31  ;;  %8541 = vmatprep.mubr.f32.mxu1 %v1125_v41  ;;  %v1128_v37 = vmul.f32 %v11060_v59, %v11060_v59  ;;  %v11108_v41 = vld [vmem:[%s10560_s15 + $0x130] sm:$0xff]  ;;  %v11206_v31 = vld [vmem:[%s10560_s15 + $0x1c0] sm:$0xff] }
 0x249   : > { %v8469_v43 = vpop.f32.mrf.mxu1  ;;  %8542 = vmatmul.mubr.f32.gmra.mxu1 %v1126_v23  ;;  %v11198_v23 = vld [vmem:[%s10560_s15 + $0x1b0] sm:$0xff] }
 0x24a   : > { %13739 = vst [vmem:[#allocation42_spill] sm:$0xff] %v11063_v44  ;;  %v1127_v25 = vmul.f32 %v11063_v44, %v11063_v44  ;;  %v11070_v20 = vsub.f32 %v10818_v48, %v8469_v43  ;;  %v11084_v48 = vld [vmem:[%s10560_s15 + $0x108] sm:$0xff] }
 0x24b   : > { %v1058_v46 = vpop.f32.mrf.mxu1  ;;  %v11211_v43 = vld [vmem:[%s10560_s15 + $0x1c8] sm:$0xff] }
 0x24c   : > { %13740 = vst [vmem:[#allocation43_spill] sm:$0xff] %v11070_v20  ;;  %v11073_v45 = vsub.f32 %v10813_v47, %v1058_v46  ;;  %8544 = vmatprep.mubr.f32.mxu1 %v1127_v25  ;;  %v1130_v27 = vmul.f32 %v11070_v20, %v11070_v20  ;;  %v11087_v47 = vld [vmem:[%s10560_s15 + $0x110] sm:$0xff]  ;;  %v11222_v46 = vld [vmem:[%s10560_s15 + $0x1e0] sm:$0xff]  ;;  %v11235_v20 = vld [vmem:[%s10560_s15 + $0x1f8] sm:$0xff] }
 0x24d   : > { %8545 = vmatmul.mubr.f32.gmra.mxu1 %v1128_v37  ;;  %v11214_v25 = vld [vmem:[%s10560_s15 + $0x1d0] sm:$0xff]  ;;  %v11219_v37 = vld [vmem:[%s10560_s15 + $0x1d8] sm:$0xff] }
 0x24e   : > { %13741 = vst [vmem:[#allocation44_spill] sm:$0xff] %v11073_v45  ;;  %v1129_v33 = vmul.f32 %v11073_v45, %v11073_v45 }
 0x250   : > { %8547 = vmatprep.mubr.f32.mxu1 %v1129_v33  ;;  %v11227_v33 = vld [vmem:[%s10560_s15 + $0x1e8] sm:$0xff] }
 0x251   : > { %8548 = vmatmul.mubr.f32.gmra.mxu1 %v1130_v27  ;;  %v11230_v27 = vld [vmem:[%s10560_s15 + $0x1f0] sm:$0xff] }
 0x252   : > { %8632 = vmatprep.mubr.f32.mxu1 %v11080_v39 }
 0x255   : > { %8633 = vmatmul.mubr.f32.vlgmr.msra.gmra.mxu1 %v11084_v48 }
 0x256   : > { %8635 = vmatprep.mubr.f32.mxu1 %v11087_v47  ;;  %8731 = vmatpush3.msra.mxu1 %v10573_v0  ;;  %v11116_v0 = vld [vmem:[%s10560_s15 + $0x138] sm:$0xff] }
 0x257   : > { %8732 = vmatprep.subr.mxu1 %v10578_v1 }
 0x258   : > { %8733 = vmatpush3.msra.mxu1 %v10578_v1  ;;  %v11120_v1 = vld [vmem:[%s10560_s15 + $0x140] sm:$0xff] }
 0x259   : > { %8636 = vmatmul.mubr.f32.gmra.mxu1 %v11092_v21  ;;  %8734 = vmatprep.subr.mxu1 %v10585_v2 }
 0x25a   : > { %8638 = vmatprep.mubr.f32.mxu1 %v11096_v30  ;;  %8735 = vmatpush3.msra.mxu1 %v10585_v2  ;;  %v11128_v2 = vld [vmem:[%s10560_s15 + $0x148] sm:$0xff] }
 0x25b   : > { %8736 = vmatprep.subr.mxu1 %v10592_v3 }
 0x25c   : > { %8737 = vmatpush3.msra.mxu1 %v10592_v3  ;;  %v11132_v3 = vld [vmem:[%s10560_s15 + $0x150] sm:$0xff] }
 0x25d   : > { %8639 = vmatmul.mubr.f32.gmra.mxu1 %v11104_v29  ;;  %8738 = vmatprep.subr.mxu1 %v10602_v5 }
 0x25e   : > { %8641 = vmatprep.mubr.f32.mxu1 %v11108_v41  ;;  %8739 = vmatpush3.msra.mxu1 %v10602_v5  ;;  %v11140_v5 = vld [vmem:[%s10560_s15 + $0x158] sm:$0xff] }
 0x25f   : > { %8740 = vmatprep.subr.mxu1 %v10610_v6 }
 0x260   : > { %8741 = vmatpush3.msra.mxu1 %v10610_v6  ;;  %v11144_v6 = vld [vmem:[%s10560_s15 + $0x160] sm:$0xff] }
 0x261   : > { %8642 = vmatmul.mubr.f32.gmra.mxu1 %v11116_v0  ;;  %8742 = vmatprep.subr.mxu1 %v10617_v7 }
 0x262   : > { %8644 = vmatprep.mubr.f32.mxu1 %v11120_v1  ;;  %8743 = vmatpush3.msra.mxu1 %v10617_v7  ;;  %v11152_v7 = vld [vmem:[%s10560_s15 + $0x168] sm:$0xff] }
 0x263   : > { %8744 = vmatprep.subr.mxu1 %v10624_v8 }
 0x264   : > { %8745 = vmatpush3.msra.mxu1 %v10624_v8  ;;  %v11156_v8 = vld [vmem:[%s10560_s15 + $0x170] sm:$0xff] }
 0x265   : > { %8645 = vmatmul.mubr.f32.gmra.mxu1 %v11128_v2  ;;  %8746 = vmatprep.subr.mxu1 %v10631_v9 }
 0x266   : > { %8647 = vmatprep.mubr.f32.mxu1 %v11132_v3  ;;  %8747 = vmatpush3.msra.mxu1 %v10631_v9  ;;  %v11164_v9 = vld [vmem:[%s10560_s15 + $0x178] sm:$0xff] }
 0x267   : > { %8748 = vmatprep.subr.mxu1 %v10638_v10 }
 0x268   : > { %8749 = vmatpush3.msra.mxu1 %v10638_v10  ;;  %v11168_v10 = vld [vmem:[%s10560_s15 + $0x180] sm:$0xff] }
 0x269   : > { %8648 = vmatmul.mubr.f32.gmra.mxu1 %v11140_v5  ;;  %8750 = vmatprep.subr.mxu1 %v10651_v12 }
 0x26a   : > { %8650 = vmatprep.mubr.f32.mxu1 %v11144_v6  ;;  %8751 = vmatpush3.msra.mxu1 %v10651_v12  ;;  %v11176_v12 = vld [vmem:[%s10560_s15 + $0x188] sm:$0xff] }
 0x26b   : > { %8752 = vmatprep.subr.mxu1 %v10660_v13 }
 0x26c   : > { %8753 = vmatpush3.msra.mxu1 %v10660_v13  ;;  %v11180_v13 = vld [vmem:[%s10560_s15 + $0x190] sm:$0xff] }
 0x26d   : > { %8651 = vmatmul.mubr.f32.gmra.mxu1 %v11152_v7  ;;  %8754 = vmatprep.subr.mxu1 %v10667_v14 }
 0x26e   : > { %8653 = vmatprep.mubr.f32.mxu1 %v11156_v8  ;;  %8755 = vmatpush3.msra.mxu1 %v10667_v14  ;;  %v11187_v14 = vld [vmem:[%s10560_s15 + $0x198] sm:$0xff] }
 0x26f   : > { %8756 = vmatprep.subr.mxu1 %v10674_v15 }
 0x270   : > { %8757 = vmatpush3.msra.mxu1 %v10674_v15  ;;  %v11190_v15 = vld [vmem:[%s10560_s15 + $0x1a0] sm:$0xff] }
 0x271   : > { %8654 = vmatmul.mubr.f32.gmra.mxu1 %v11164_v9  ;;  %8758 = vmatprep.subr.mxu1 %v10681_v16 }
 0x272   : > { %8656 = vmatprep.mubr.f32.mxu1 %v11168_v10  ;;  %8759 = vmatpush3.msra.mxu1 %v10681_v16  ;;  %v11195_v16 = vld [vmem:[%s10560_s15 + $0x1a8] sm:$0xff] }
 0x273   : > { %8760 = vmatprep.subr.mxu1 %v10688_v17 }
 0x274   : > { %8761 = vmatpush3.msra.mxu1 %v10688_v17  ;;  %v11203_v17 = vld [vmem:[%s10560_s15 + $0x1b8] sm:$0xff] }
 0x275   : > { %8657 = vmatmul.mubr.f32.gmra.mxu1 %v11176_v12 }
 0x276   : > { %8659 = vmatprep.mubr.f32.mxu1 %v11180_v13 }
 0x279   : > { %8660 = vmatmul.mubr.f32.gmra.mxu1 %v11187_v14 }
 0x27a   : > { %8662 = vmatprep.mubr.f32.mxu1 %v11190_v15 }
 0x27d   : > { %8663 = vmatmul.mubr.f32.gmra.mxu1 %v11195_v16 }
 0x27e   : > { %8665 = vmatprep.mubr.f32.mxu1 %v11198_v23 }
 0x281   : > { %8666 = vmatmul.mubr.f32.gmra.mxu1 %v11203_v17 }
 0x282   : > { %8668 = vmatprep.mubr.f32.mxu1 %v11206_v31 }
 0x285   : > { %8669 = vmatmul.mubr.f32.gmra.mxu1 %v11211_v43 }
 0x286   : > { %8671 = vmatprep.mubr.f32.mxu1 %v11214_v25 }
 0x289   : > { %8672 = vmatmul.mubr.f32.gmra.mxu1 %v11219_v37 }
 0x28a   : > { %8674 = vmatprep.mubr.f32.mxu1 %v11222_v46 }
 0x28d   : > { %8675 = vmatmul.mubr.f32.gmra.mxu1 %v11227_v33 }
 0x28e   : > { %8677 = vmatprep.mubr.f32.mxu1 %v11230_v27 }
 0x291   : > { %8678 = vmatmul.mubr.f32.gmra.mxu1 %v11235_v20 }
 0x2d5   : > { %v8504_v45 = vpop.f32.mrf.mxu1 }
 0x2d6   : > { %v1203_v59 = vadd.f32 1e-05, %v8504_v45 }
 0x2d7   : > { %v1197_v44 = vpop.f32.mrf.mxu1 }
 0x2d8   : > { %v1198_v36 = vadd.f32 1e-05, %v1197_v44 }
 0x2d9   : > { %v8507_v42 = vpop.f32.mrf.mxu1 }
 0x2da   : > { %9684 = vrsqrt.f32 %v1198_v36  ;;  %v1213_v34 = vadd.f32 1e-05, %v8507_v42 }
 0x2db   : > { %9686 = vrsqrt.f32 %v1203_v59  ;;  %v1207_v40 = vpop.f32.mrf.mxu1 }
 0x2dc   : > { %v1208_v32 = vadd.f32 1e-05, %v1207_v40 }
 0x2dd   : > { %v8510_v38 = vpop.f32.mrf.mxu1 }
 0x2de   : > { %9688 = vrsqrt.f32 %v1208_v32  ;;  %v1223_v53 = vadd.f32 1e-05, %v8510_v38 }
 0x2df   : > { %9690 = vrsqrt.f32 %v1213_v34  ;;  %v1217_v35 = vpop.f32.mrf.mxu1 }
 0x2e0   : > { %v1218_v63 = vadd.f32 1e-05, %v1217_v35 }
 0x2e1   : > { %v8513_v28 = vpop.f32.mrf.mxu1 }
 0x2e2   : > { %9692 = vrsqrt.f32 %v1218_v63  ;;  %v1233_v18 = vadd.f32 1e-05, %v8513_v28 }
 0x2e3   : > { %9694 = vrsqrt.f32 %v1223_v53  ;;  %v1227_v26 = vpop.f32.mrf.mxu1 }
 0x2e4   : > { %v1228_v45 = vadd.f32 1e-05, %v1227_v26 }
 0x2e5   : > { %v8516_v55 = vpop.f32.mrf.mxu1 }
 0x2e6   : > { %9696 = vrsqrt.f32 %v1228_v45  ;;  %v1243_v36 = vadd.f32 1e-05, %v8516_v55 }
 0x2e7   : > { %v9685_v44 = vpop.eup %9684  ;;  %9698 = vrsqrt.f32 %v1233_v18  ;;  %v1237_v42 = vpop.f32.mrf.mxu1 }
 0x2e8   : > { %v9687_v59 = vpop.eup %9686  ;;  %v1238_v40 = vadd.f32 1e-05, %v1237_v42  ;;  %8552 = vmatprep.mubr.msk.f32.mxu0 %vm745_vm0, %v9685_v44 }
 0x2e9   : > { %v8519_v32 = vpop.f32.mrf.mxu1  ;;  %8553 = vmatmul.mubr.msk.f32.vlgmr.msra.gmra.mxu0 %vm745_vm0, %v9687_v59 }
 0x2ea   : > { %9700 = vrsqrt.f32 %v1238_v40  ;;  %8681 = vmatpush3.msra.mxu0 %v10643_v11  ;;  %v1253_v28 = vadd.f32 1e-05, %v8519_v32 }
 0x2eb   : > { %v9689_v63 = vpop.eup %9688  ;;  %9702 = vrsqrt.f32 %v1243_v36  ;;  %v1247_v26 = vpop.f32.mrf.mxu1  ;;  %8810 = vmatprep.subr.mxu0 %v10643_v11 }
 0x2ec   : > { %v9691_v53 = vpop.eup %9690  ;;  %v1248_v18 = vadd.f32 1e-05, %v1247_v26  ;;  %8555 = vmatprep.mubr.msk.f32.mxu0 %vm745_vm0, %v9689_v63 }
 0x2ed   : > { %v8522_v55 = vpop.f32.mrf.mxu1  ;;  %8556 = vmatmul.mubr.msk.f32.gmra.mxu0 %vm745_vm0, %v9691_v53 }
 0x2ee   : > { %9704 = vrsqrt.f32 %v1248_v18  ;;  %v1263_v38 = vadd.f32 1e-05, %v8522_v55 }
 0x2ef   : > { %v9693_v35 = vpop.eup %9692  ;;  %9706 = vrsqrt.f32 %v1253_v28  ;;  %v1257_v34 = vpop.f32.mrf.mxu1 }
 0x2f0   : > { %v9695_v45 = vpop.eup %9694  ;;  %v1258_v44 = vadd.f32 1e-05, %v1257_v34  ;;  %8558 = vmatprep.mubr.msk.f32.mxu0 %vm745_vm0, %v9693_v35 }
 0x2f1   : > { %v8525_v36 = vpop.f32.mrf.mxu1  ;;  %8559 = vmatmul.mubr.msk.f32.gmra.mxu0 %vm745_vm0, %v9695_v45 }
 0x2f2   : > { %9708 = vrsqrt.f32 %v1258_v44  ;;  %v1273_v42 = vadd.f32 1e-05, %v8525_v36 }
 0x2f3   : > { %v9697_v11 = vpop.eup %9696  ;;  %9710 = vrsqrt.f32 %v1263_v38  ;;  %v1267_v59 = vpop.f32.mrf.mxu1 }
 0x2f4   : > { %v9699_v40 = vpop.eup %9698  ;;  %v1268_v32 = vadd.f32 1e-05, %v1267_v59  ;;  %8561 = vmatprep.mubr.msk.f32.mxu0 %vm745_vm0, %v9697_v11 }
 0x2f5   : > { %v8528_v63 = vpop.f32.mrf.mxu1  ;;  %8562 = vmatmul.mubr.msk.f32.gmra.mxu0 %vm745_vm0, %v9699_v40 }
 0x2f6   : > { %9712 = vrsqrt.f32 %v1268_v32  ;;  %v1283_v26 = vadd.f32 1e-05, %v8528_v63 }
 0x2f7   : > { %v9701_v28 = vpop.eup %9700  ;;  %9714 = vrsqrt.f32 %v1273_v42  ;;  %v1277_v53 = vpop.f32.mrf.mxu1 }
 0x2f8   : > { %v9703_v18 = vpop.eup %9702  ;;  %v1278_v55 = vadd.f32 1e-05, %v1277_v53  ;;  %8564 = vmatprep.mubr.msk.f32.mxu0 %vm745_vm0, %v9701_v28 }
 0x2f9   : > { %v8531_v35 = vpop.f32.mrf.mxu1  ;;  %8565 = vmatmul.mubr.msk.f32.gmra.mxu0 %vm745_vm0, %v9703_v18 }
 0x2fa   : > { %9716 = vrsqrt.f32 %v1278_v55  ;;  %v1293_v34 = vadd.f32 1e-05, %v8531_v35 }
 0x2fb   : > { %v9705_v38 = vpop.eup %9704  ;;  %9718 = vrsqrt.f32 %v1283_v26  ;;  %v1287_v45 = vpop.f32.mrf.mxu1 }
 0x2fc   : > { %v9707_v44 = vpop.eup %9706  ;;  %v1288_v36 = vadd.f32 1e-05, %v1287_v45  ;;  %8567 = vmatprep.mubr.msk.f32.mxu0 %vm745_vm0, %v9705_v38 }
 0x2fd   : > { %v8534_v11 = vpop.f32.mrf.mxu1  ;;  %8568 = vmatmul.mubr.msk.f32.gmra.mxu0 %vm745_vm0, %v9707_v44 }
 0x2fe   : > { %9720 = vrsqrt.f32 %v1288_v36  ;;  %v1303_v59 = vadd.f32 1e-05, %v8534_v11 }
 0x2ff   : > { %v9709_v42 = vpop.eup %9708  ;;  %9722 = vrsqrt.f32 %v1293_v34  ;;  %v1297_v40 = vpop.f32.mrf.mxu1 }
 0x300   : > { %v9711_v32 = vpop.eup %9710  ;;  %v1298_v63 = vadd.f32 1e-05, %v1297_v40  ;;  %8570 = vmatprep.mubr.msk.f32.mxu0 %vm745_vm0, %v9709_v42 }
 0x301   : > { %v8537_v28 = vpop.f32.mrf.mxu1  ;;  %8571 = vmatmul.mubr.msk.f32.gmra.mxu0 %vm745_vm0, %v9711_v32 }
 0x302   : > { %9724 = vrsqrt.f32 %v1298_v63  ;;  %v1313_v53 = vadd.f32 1e-05, %v8537_v28 }
 0x303   : > { %v9713_v26 = vpop.eup %9712  ;;  %9726 = vrsqrt.f32 %v1303_v59  ;;  %v1307_v18 = vpop.f32.mrf.mxu1 }
 0x304   : > { %v9715_v55 = vpop.eup %9714  ;;  %v1308_v35 = vadd.f32 1e-05, %v1307_v18  ;;  %8573 = vmatprep.mubr.msk.f32.mxu0 %vm745_vm0, %v9713_v26 }
 0x305   : > { %v8540_v38 = vpop.f32.mrf.mxu1  ;;  %8574 = vmatmul.mubr.msk.f32.gmra.mxu0 %vm745_vm0, %v9715_v55 }
 0x306   : > { %9728 = vrsqrt.f32 %v1308_v35  ;;  %v1323_v45 = vadd.f32 1e-05, %v8540_v38 }
 0x307   : > { %v9717_v34 = vpop.eup %9716  ;;  %9730 = vrsqrt.f32 %v1313_v53  ;;  %v1317_v44 = vpop.f32.mrf.mxu1 }
 0x308   : > { %v9719_v36 = vpop.eup %9718  ;;  %v1318_v11 = vadd.f32 1e-05, %v1317_v44  ;;  %8576 = vmatprep.mubr.msk.f32.mxu0 %vm745_vm0, %v9717_v34 }
 0x309   : > { %v8543_v42 = vpop.f32.mrf.mxu1  ;;  %8577 = vmatmul.mubr.msk.f32.gmra.mxu0 %vm745_vm0, %v9719_v36 }
 0x30a   : > { %9732 = vrsqrt.f32 %v1318_v11  ;;  %v1333_v40 = vadd.f32 1e-05, %v8543_v42 }
 0x30b   : > { %v9721_v59 = vpop.eup %9720  ;;  %9734 = vrsqrt.f32 %v1323_v45  ;;  %v1327_v32 = vpop.f32.mrf.mxu1 }
 0x30c   : > { %v9723_v63 = vpop.eup %9722  ;;  %v1328_v28 = vadd.f32 1e-05, %v1327_v32  ;;  %8579 = vmatprep.mubr.msk.f32.mxu0 %vm745_vm0, %v9721_v59 }
 0x30d   : > { %v8546_v26 = vpop.f32.mrf.mxu1  ;;  %8580 = vmatmul.mubr.msk.f32.gmra.mxu0 %vm745_vm0, %v9723_v63 }
 0x30e   : > { %9736 = vrsqrt.f32 %v1328_v28  ;;  %v1343_v18 = vadd.f32 1e-05, %v8546_v26 }
 0x30f   : > { %v9725_v53 = vpop.eup %9724  ;;  %9738 = vrsqrt.f32 %v1333_v40  ;;  %v1337_v55 = vpop.f32.mrf.mxu1 }
 0x310   : > { %v9727_v35 = vpop.eup %9726  ;;  %v1338_v38 = vadd.f32 1e-05, %v1337_v55  ;;  %8582 = vmatprep.mubr.msk.f32.mxu0 %vm745_vm0, %v9725_v53 }
 0x311   : > { %v8549_v34 = vpop.f32.mrf.mxu1  ;;  %8583 = vmatmul.mubr.msk.f32.gmra.mxu0 %vm745_vm0, %v9727_v35 }
 0x312   : > { %9740 = vrsqrt.f32 %v1338_v38  ;;  %v1353_v44 = vadd.f32 1e-05, %v8549_v34 }
 0x313   : > { %v9729_v45 = vpop.eup %9728  ;;  %9742 = vrsqrt.f32 %v1343_v18  ;;  %v1347_v36 = vpop.f32.mrf.mxu1 }
 0x314   : > { %v9731_v11 = vpop.eup %9730  ;;  %v1348_v42 = vadd.f32 1e-05, %v1347_v36  ;;  %8585 = vmatprep.mubr.msk.f32.mxu0 %vm745_vm0, %v9729_v45 }
 0x315   : > { %8586 = vmatmul.mubr.msk.f32.gmra.mxu0 %vm745_vm0, %v9731_v11  ;;  %v8634_v59 = vpop.f32.mrf.mxu1 }
 0x316   : > { %9744 = vrsqrt.f32 %v1348_v42 }
 0x317   : > { %v9733_v40 = vpop.eup %9732  ;;  %9746 = vrsqrt.f32 %v1353_v44  ;;  %v1856_v32 = vpop.f32.mrf.mxu1 }
 0x318   : > { %v9735_v63 = vpop.eup %9734  ;;  %8588 = vmatprep.mubr.msk.f32.mxu0 %vm745_vm0, %v9733_v40 }
 0x319   : > { %8589 = vmatmul.mubr.msk.f32.gmra.mxu0 %vm745_vm0, %v9735_v63  ;;  %v8637_v28 = vpop.f32.mrf.mxu1 }
 0x31b   : > { %v9737_v26 = vpop.eup %9736  ;;  %v1866_v53 = vpop.f32.mrf.mxu1 }
 0x31c   : > { %v9739_v18 = vpop.eup %9738  ;;  %8591 = vmatprep.mubr.msk.f32.mxu0 %vm745_vm0, %v9737_v26  ;;  %v11278_v26 = vld [vmem:[%s13655_s3] sm:$0xff] }
 0x31d   : > { %8592 = vmatmul.mubr.msk.f32.gmra.mxu0 %vm745_vm0, %v9739_v18  ;;  %v8640_v55 = vpop.f32.mrf.mxu1 }
 0x31f   : > { %v9741_v35 = vpop.eup %9740  ;;  %v1876_v38 = vpop.f32.mrf.mxu1 }
 0x320   : > { %v9743_v34 = vpop.eup %9742  ;;  %8594 = vmatprep.mubr.msk.f32.mxu0 %vm745_vm0, %v9741_v35 }
 0x321   : > { %8595 = vmatmul.mubr.msk.f32.gmra.mxu0 %vm745_vm0, %v9743_v34  ;;  %v8643_v45 = vpop.f32.mrf.mxu1 }
 0x323   : > { %v9745_v44 = vpop.eup %9744  ;;  %v1886_v36 = vpop.f32.mrf.mxu1 }
 0x324   : > { %v9747_v11 = vpop.eup %9746  ;;  %8597 = vmatprep.mubr.msk.f32.mxu0 %vm745_vm0, %v9745_v44 }
 0x325   : > { %8598 = vmatmul.mubr.msk.f32.gmra.mxu0 %vm745_vm0, %v9747_v11  ;;  %v8646_v42 = vpop.f32.mrf.mxu1 }
 0x326   : > { %8682 = vmatprep.mubr.msk.f32.mxu0 %vm745_vm0, %v1856_v32 }
 0x327   : > { %v1896_v40 = vpop.f32.mrf.mxu1 }
 0x329   : > { %8683 = vmatmul.mubr.msk.f32.vlgmr.msra.gmra.mxu0 %vm745_vm0, %v8634_v59  ;;  %v8649_v63 = vpop.f32.mrf.mxu1 }
 0x32a   : > { %8685 = vmatprep.mubr.msk.f32.mxu0 %vm745_vm0, %v1866_v53  ;;  %8811 = vmatpush3.msra.mxu0 %v11278_v26 }
 0x32b   : > { %v1906_v18 = vpop.f32.mrf.mxu1 }
 0x32d   : > { %8686 = vmatmul.mubr.msk.f32.gmra.mxu0 %vm745_vm0, %v8637_v28  ;;  %v8652_v35 = vpop.f32.mrf.mxu1 }
 0x32e   : > { %8688 = vmatprep.mubr.msk.f32.mxu0 %vm745_vm0, %v1876_v38 }
 0x32f   : > { %v1916_v32 = vpop.f32.mrf.mxu1 }
 0x331   : > { %8689 = vmatmul.mubr.msk.f32.gmra.mxu0 %vm745_vm0, %v8640_v55  ;;  %v8655_v59 = vpop.f32.mrf.mxu1 }
 0x332   : > { %8691 = vmatprep.mubr.msk.f32.mxu0 %vm745_vm0, %v1886_v36 }
 0x333   : > { %v1926_v53 = vpop.f32.mrf.mxu1 }
 0x335   : > { %8692 = vmatmul.mubr.msk.f32.gmra.mxu0 %vm745_vm0, %v8643_v45  ;;  %v8658_v34 = vpop.f32.mrf.mxu1 }
 0x336   : > { %8694 = vmatprep.mubr.msk.f32.mxu0 %vm745_vm0, %v1896_v40 }
 0x337   : > { %v1936_v44 = vpop.f32.mrf.mxu1 }
 0x339   : > { %8695 = vmatmul.mubr.msk.f32.gmra.mxu0 %vm745_vm0, %v8646_v42  ;;  %v8661_v11 = vpop.f32.mrf.mxu1 }
 0x33a   : > { %8697 = vmatprep.mubr.msk.f32.mxu0 %vm745_vm0, %v1906_v18 }
 0x33b   : > { %v1946_v28 = vpop.f32.mrf.mxu1 }
 0x33d   : > { %8698 = vmatmul.mubr.msk.f32.gmra.mxu0 %vm745_vm0, %v8649_v63  ;;  %v8664_v38 = vpop.f32.mrf.mxu1 }
 0x33e   : > { %8700 = vmatprep.mubr.msk.f32.mxu0 %vm745_vm0, %v1916_v32 }
 0x33f   : > { %v1956_v55 = vpop.f32.mrf.mxu1 }
 0x341   : > { %8701 = vmatmul.mubr.msk.f32.gmra.mxu0 %vm745_vm0, %v8652_v35  ;;  %v8667_v36 = vpop.f32.mrf.mxu1 }
 0x342   : > { %8703 = vmatprep.mubr.msk.f32.mxu0 %vm745_vm0, %v1926_v53 }
 0x343   : > { %v1966_v45 = vpop.f32.mrf.mxu1 }
 0x345   : > { %8704 = vmatmul.mubr.msk.f32.gmra.mxu0 %vm745_vm0, %v8655_v59  ;;  %v8670_v40 = vpop.f32.mrf.mxu1 }
 0x346   : > { %8706 = vmatprep.mubr.msk.f32.mxu0 %vm745_vm0, %v1936_v44 }
 0x347   : > { %v1976_v42 = vpop.f32.mrf.mxu1 }
 0x349   : > { %8707 = vmatmul.mubr.msk.f32.gmra.mxu0 %vm745_vm0, %v8658_v34  ;;  %v8673_v63 = vpop.f32.mrf.mxu1 }
 0x34a   : > { %8709 = vmatprep.mubr.msk.f32.mxu0 %vm745_vm0, %v1946_v28 }
 0x34b   : > { %v1986_v18 = vpop.f32.mrf.mxu1 }
 0x34d   : > { %8710 = vmatmul.mubr.msk.f32.gmra.mxu0 %vm745_vm0, %v8661_v11  ;;  %v8676_v35 = vpop.f32.mrf.mxu1 }
 0x34e   : > { %8712 = vmatprep.mubr.msk.f32.mxu0 %vm745_vm0, %v1956_v55 }
 0x34f   : > { %v1996_v32 = vpop.f32.mrf.mxu1 }
 0x351   : > { %8713 = vmatmul.mubr.msk.f32.gmra.mxu0 %vm745_vm0, %v8664_v38  ;;  %v8679_v59 = vpop.f32.mrf.mxu1 }
 0x352   : > { %8715 = vmatprep.mubr.msk.f32.mxu0 %vm745_vm0, %v1966_v45 }
 0x353   : > { %v2006_v53 = vpop.f32.mrf.mxu1 }
 0x355   : > { %8716 = vmatmul.mubr.msk.f32.gmra.mxu0 %vm745_vm0, %v8667_v36 }
 0x356   : > { %8718 = vmatprep.mubr.msk.f32.mxu0 %vm745_vm0, %v1976_v42 }
 0x359   : > { %8719 = vmatmul.mubr.msk.f32.gmra.mxu0 %vm745_vm0, %v8670_v40 }
 0x35a   : > { %8721 = vmatprep.mubr.msk.f32.mxu0 %vm745_vm0, %v1986_v18 }
 0x35d   : > { %8722 = vmatmul.mubr.msk.f32.gmra.mxu0 %vm745_vm0, %v8673_v63 }
 0x35e   : > { %8724 = vmatprep.mubr.msk.f32.mxu0 %vm745_vm0, %v1996_v32 }
 0x361   : > { %8725 = vmatmul.mubr.msk.f32.gmra.mxu0 %vm745_vm0, %v8676_v35 }
 0x362   : > { %8727 = vmatprep.mubr.msk.f32.mxu0 %vm745_vm0, %v2006_v53 }
 0x365   : > { %8728 = vmatmul.mubr.msk.f32.gmra.mxu0 %vm745_vm0, %v8679_v59 }
 0x3a9   : > { %v11310_v34 = vpop.f32.mrf.mxu0 }
 0x3ab   : > { %v11312_v44 = vpop.f32.mrf.mxu0 }
 0x3ad   : > { %v11314_v11 = vpop.f32.mrf.mxu0 }
 0x3af   : > { %v11316_v28 = vpop.f32.mrf.mxu0 }
 0x3b1   : > { %v11318_v38 = vpop.f32.mrf.mxu0 }
 0x3b3   : > { %v11320_v55 = vpop.f32.mrf.mxu0 }
 0x3b5   : > { %v11322_v36 = vpop.f32.mrf.mxu0 }
 0x3b7   : > { %v11324_v45 = vpop.f32.mrf.mxu0 }
 0x3b9   : > { %v11326_v40 = vpop.f32.mrf.mxu0 }
 0x3bb   : > { %v11328_v42 = vpop.f32.mrf.mxu0 }
 0x3bd   : > { %v11330_v63 = vpop.f32.mrf.mxu0 }
 0x3be   : > { %13742 = vst [vmem:[#allocation45_spill] sm:$0xff] %v11330_v63 }
 0x3bf   : > { %v11332_v18 = vpop.f32.mrf.mxu0 }
 0x3c0   : > { %13743 = vst [vmem:[#allocation46_spill] sm:$0xff] %v11332_v18 }
 0x3c1   : > { %v11334_v35 = vpop.f32.mrf.mxu0 }
 0x3c2   : > { %13744 = vst [vmem:[#allocation47_spill] sm:$0xff] %v11334_v35 }
 0x3c3   : > { %v11336_v32 = vpop.f32.mrf.mxu0 }
 0x3c4   : > { %13745 = vst [vmem:[#allocation48_spill] sm:$0xff] %v11336_v32 }
 0x3c5   : > { %v11338_v59 = vpop.f32.mrf.mxu0 }
 0x3c6   : > { %13746 = vst [vmem:[#allocation49_spill] sm:$0xff] %v11338_v59 }
 0x3c7   : > { %v11340_v53 = vpop.f32.mrf.mxu0 }
 0x3c8   : > { %13747 = vst [vmem:[#allocation50_spill] sm:$0xff] %v11340_v53 }
 0x3c9   : > { %v11342_v24 = vpop.f32.mrf.mxu0 }
 0x3ca   : > { %13748 = vst [vmem:[#allocation51_spill] sm:$0xff] %v11342_v24 }
 0x3cb   : > { %v11344_v49 = vpop.f32.mrf.mxu0 }
 0x3cc   : > { %13749 = vst [vmem:[#allocation52_spill] sm:$0xff] %v11344_v49 }
 0x3cd   : > { %v11346_v22 = vpop.f32.mrf.mxu0 }
 0x3ce   : > { %13750 = vst [vmem:[#allocation53_spill] sm:$0xff] %v11346_v22 }
 0x3cf   : > { %v11348_v4 = vpop.f32.mrf.mxu0 }
 0x3d0   : > { %13751 = vst [vmem:[#allocation54_spill] sm:$0xff] %v11348_v4 }
 0x3d1   : > { %v11350_v61 = vpop.f32.mrf.mxu0 }
 0x3d2   : > { %13752 = vst [vmem:[#allocation55_spill] sm:$0xff] %v11350_v61 }
 0x3d3   : > { %v11352_v63 = vpop.f32.mrf.mxu0 }
 0x3d4   : > { %13753 = vst [vmem:[#allocation56_spill] sm:$0xff] %v11352_v63 }
 0x3d5   : > { %v11354_v18 = vpop.f32.mrf.mxu0 }
 0x3d6   : > { %13754 = vst [vmem:[#allocation57_spill] sm:$0xff] %v11354_v18 }
 0x3d7   : > { %v11356_v35 = vpop.f32.mrf.mxu0 }
 0x3d8   : > { %13755 = vst [vmem:[#allocation58_spill] sm:$0xff] %v11356_v35 }
 0x3d9   : > { %v11358_v32 = vpop.f32.mrf.mxu0 }
 0x3da   : > { %13756 = vst [vmem:[#allocation59_spill] sm:$0xff] %v11358_v32 }
 0x3db   : > { %v11360_v59 = vpop.f32.mrf.mxu0 }
 0x3dc   : > { %13757 = vst [vmem:[#allocation60_spill] sm:$0xff] %v11360_v59 }
 0x3dd   : > { %v11362_v53 = vpop.f32.mrf.mxu0 }
 0x3de   : > { %13758 = vst [vmem:[#allocation61_spill] sm:$0xff] %v11362_v53 }
 0x3df   : > { %v11364_v24 = vpop.f32.mrf.mxu0 }
 0x3e1   : > { %v11366_v49 = vpop.f32.mrf.mxu0 }
 0x3e2   : > { %13759 = vst [vmem:[#allocation62_spill] sm:$0xff] %v11366_v49 }
 0x3e3   : > { %v11368_v22 = vpop.f32.mrf.mxu0 }
 0x3e4   : > { %13760 = vst [vmem:[#allocation63_spill] sm:$0xff] %v11368_v22 }
 0x3e5   : > { %v11370_v4 = vpop.f32.mrf.mxu0 }
 0x3e6   : > { %13761 = vst [vmem:[#allocation64_spill] sm:$0xff] %v11370_v4 }
 0x3e7   : > { %v11372_v61 = vpop.f32.mrf.mxu0 }
 0x3e8   : > { %13762 = vst [vmem:[#allocation65_spill] sm:$0xff] %v11372_v61 }
 0x3e9   : > { %v8684_v63 = vpop.f32.mrf.mxu0 }
 0x3ea   : > { %v11375_v18 = vsub.f32 %v11084_v48, %v8684_v63 }
 0x3eb   : > { %v2177_v35 = vpop.f32.mrf.mxu0 }
 0x3ec   : > { %13763 = vst [vmem:[#allocation66_spill] sm:$0xff] %v11375_v18  ;;  %v11378_v32 = vsub.f32 %v11080_v39, %v2177_v35  ;;  %v2369_v49 = vmul.f32 %v11375_v18, %v11375_v18 }
 0x3ed   : > { %v8687_v59 = vpop.f32.mrf.mxu0 }
 0x3ee   : > { %v2368_v53 = vmul.f32 %v11378_v32, %v11378_v32  ;;  %v11385_v22 = vsub.f32 %v11092_v21, %v8687_v59 }
 0x3ef   : > { %v2187_v4 = vpop.f32.mrf.mxu0 }
 0x3f0   : > { %v11388_v61 = vsub.f32 %v11087_v47, %v2187_v4  ;;  %8762 = vmatprep.mubr.f32.mxu1 %v2368_v53  ;;  %v2371_v63 = vmul.f32 %v11385_v22, %v11385_v22 }
 0x3f1   : > { %v8690_v48 = vpop.f32.mrf.mxu0  ;;  %8763 = vmatmul.mubr.f32.vlgmr.msra.gmra.mxu1 %v2369_v49 }
 0x3f2   : > { %v2370_v39 = vmul.f32 %v11388_v61, %v11388_v61  ;;  %v11395_v35 = vsub.f32 %v11104_v29, %v8690_v48 }
 0x3f3   : > { %v2197_v18 = vpop.f32.mrf.mxu0 }
 0x3f4   : > { %v11398_v21 = vsub.f32 %v11096_v30, %v2197_v18  ;;  %8765 = vmatprep.mubr.f32.mxu1 %v2370_v39  ;;  %v2373_v49 = vmul.f32 %v11395_v35, %v11395_v35 }
 0x3f5   : > { %v8693_v59 = vpop.f32.mrf.mxu0  ;;  %8766 = vmatmul.mubr.f32.gmra.mxu1 %v2371_v63 }
 0x3f6   : > { %v2372_v4 = vmul.f32 %v11398_v21, %v11398_v21  ;;  %v11405_v47 = vsub.f32 %v11116_v0, %v8693_v59 }
 0x3f7   : > { %v2207_v53 = vpop.f32.mrf.mxu0 }
 0x3f8   : > { %v11408_v29 = vsub.f32 %v11108_v41, %v2207_v53  ;;  %8768 = vmatprep.mubr.f32.mxu1 %v2372_v4  ;;  %v2375_v18 = vmul.f32 %v11405_v47, %v11405_v47 }
 0x3f9   : > { %v8696_v48 = vpop.f32.mrf.mxu0  ;;  %8769 = vmatmul.mubr.f32.gmra.mxu1 %v2373_v49 }
 0x3fa   : > { %v2374_v30 = vmul.f32 %v11408_v29, %v11408_v29  ;;  %v11415_v39 = vsub.f32 %v11128_v2, %v8696_v48 }
 0x3fb   : > { %v2217_v63 = vpop.f32.mrf.mxu0 }
 0x3fc   : > { %v11418_v0 = vsub.f32 %v11120_v1, %v2217_v63  ;;  %8771 = vmatprep.mubr.f32.mxu1 %v2374_v30  ;;  %v2377_v4 = vmul.f32 %v11415_v39, %v11415_v39 }
 0x3fd   : > { %v8699_v59 = vpop.f32.mrf.mxu0  ;;  %8772 = vmatmul.mubr.f32.gmra.mxu1 %v2375_v18 }
 0x3fe   : > { %v2376_v41 = vmul.f32 %v11418_v0, %v11418_v0  ;;  %v11425_v49 = vsub.f32 %v11140_v5, %v8699_v59 }
 0x3ff   : > { %v2227_v53 = vpop.f32.mrf.mxu0 }
 0x400   : > { %v11428_v2 = vsub.f32 %v11132_v3, %v2227_v53  ;;  %8774 = vmatprep.mubr.f32.mxu1 %v2376_v41  ;;  %v2379_v30 = vmul.f32 %v11425_v49, %v11425_v49 }
 0x401   : > { %v8702_v48 = vpop.f32.mrf.mxu0  ;;  %8775 = vmatmul.mubr.f32.gmra.mxu1 %v2377_v4 }
 0x402   : > { %v2378_v1 = vmul.f32 %v11428_v2, %v11428_v2  ;;  %v11435_v18 = vsub.f32 %v11152_v7, %v8702_v48 }
 0x403   : > { %v2237_v63 = vpop.f32.mrf.mxu0 }
 0x404   : > { %v11438_v5 = vsub.f32 %v11144_v6, %v2237_v63  ;;  %8777 = vmatprep.mubr.f32.mxu1 %v2378_v1  ;;  %v2381_v41 = vmul.f32 %v11435_v18, %v11435_v18 }
 0x405   : > { %v8705_v59 = vpop.f32.mrf.mxu0  ;;  %8778 = vmatmul.mubr.f32.gmra.mxu1 %v2379_v30 }
 0x406   : > { %v2380_v3 = vmul.f32 %v11438_v5, %v11438_v5  ;;  %v11445_v4 = vsub.f32 %v11164_v9, %v8705_v59 }
 0x407   : > { %v2247_v53 = vpop.f32.mrf.mxu0 }
 0x408   : > { %v11448_v7 = vsub.f32 %v11156_v8, %v2247_v53  ;;  %8780 = vmatprep.mubr.f32.mxu1 %v2380_v3  ;;  %v2383_v1 = vmul.f32 %v11445_v4, %v11445_v4 }
 0x409   : > { %v8708_v48 = vpop.f32.mrf.mxu0  ;;  %8781 = vmatmul.mubr.f32.gmra.mxu1 %v2381_v41 }
 0x40a   : > { %v2382_v6 = vmul.f32 %v11448_v7, %v11448_v7  ;;  %v11455_v30 = vsub.f32 %v11176_v12, %v8708_v48 }
 0x40b   : > { %v2257_v63 = vpop.f32.mrf.mxu0 }
 0x40c   : > { %v11458_v9 = vsub.f32 %v11168_v10, %v2257_v63  ;;  %8783 = vmatprep.mubr.f32.mxu1 %v2382_v6  ;;  %v2385_v3 = vmul.f32 %v11455_v30, %v11455_v30 }
 0x40d   : > { %v8711_v59 = vpop.f32.mrf.mxu0  ;;  %8784 = vmatmul.mubr.f32.gmra.mxu1 %v2383_v1 }
 0x40e   : > { %v2384_v8 = vmul.f32 %v11458_v9, %v11458_v9  ;;  %v11465_v41 = vsub.f32 %v11187_v14, %v8711_v59 }
 0x40f   : > { %v2267_v53 = vpop.f32.mrf.mxu0 }
 0x410   : > { %v11468_v12 = vsub.f32 %v11180_v13, %v2267_v53  ;;  %8786 = vmatprep.mubr.f32.mxu1 %v2384_v8  ;;  %v2387_v6 = vmul.f32 %v11465_v41, %v11465_v41 }
 0x411   : > { %v8714_v48 = vpop.f32.mrf.mxu0  ;;  %8787 = vmatmul.mubr.f32.gmra.mxu1 %v2385_v3 }
 0x412   : > { %v2386_v10 = vmul.f32 %v11468_v12, %v11468_v12  ;;  %v11475_v1 = vsub.f32 %v11195_v16, %v8714_v48 }
 0x413   : > { %v2277_v63 = vpop.f32.mrf.mxu0 }
 0x414   : > { %v11478_v14 = vsub.f32 %v11190_v15, %v2277_v63  ;;  %8789 = vmatprep.mubr.f32.mxu1 %v2386_v10  ;;  %v2389_v8 = vmul.f32 %v11475_v1, %v11475_v1 }
 0x415   : > { %v8717_v59 = vpop.f32.mrf.mxu0  ;;  %8790 = vmatmul.mubr.f32.gmra.mxu1 %v2387_v6 }
 0x416   : > { %v2388_v13 = vmul.f32 %v11478_v14, %v11478_v14  ;;  %v11485_v3 = vsub.f32 %v11203_v17, %v8717_v59 }
 0x417   : > { %v2287_v53 = vpop.f32.mrf.mxu0 }
 0x418   : > { %v11488_v16 = vsub.f32 %v11198_v23, %v2287_v53  ;;  %8792 = vmatprep.mubr.f32.mxu1 %v2388_v13  ;;  %v2391_v10 = vmul.f32 %v11485_v3, %v11485_v3 }
 0x419   : > { %v8720_v48 = vpop.f32.mrf.mxu0  ;;  %8793 = vmatmul.mubr.f32.gmra.mxu1 %v2389_v8 }
 0x41a   : > { %v2390_v15 = vmul.f32 %v11488_v16, %v11488_v16  ;;  %v11495_v6 = vsub.f32 %v11211_v43, %v8720_v48 }
 0x41b   : > { %v2297_v63 = vpop.f32.mrf.mxu0 }
 0x41c   : > { %13764 = vst [vmem:[#allocation67_spill] sm:$0xff] %v11495_v6  ;;  %v11498_v17 = vsub.f32 %v11206_v31, %v2297_v63  ;;  %8795 = vmatprep.mubr.f32.mxu1 %v2390_v15  ;;  %v2393_v13 = vmul.f32 %v11495_v6, %v11495_v6  ;;  %v3025_v6 = vld [vmem:[#allocation7 + $0xf0] sm:$0xff] }
 0x41d   : > { %v8723_v59 = vpop.f32.mrf.mxu0  ;;  %8796 = vmatmul.mubr.f32.gmra.mxu1 %v2391_v10 }
 0x41e   : > { %v2392_v23 = vmul.f32 %v11498_v17, %v11498_v17  ;;  %v11505_v8 = vsub.f32 %v11219_v37, %v8723_v59 }
 0x41f   : > { %v2307_v53 = vpop.f32.mrf.mxu0 }
 0x420   : > { %13765 = vst [vmem:[#allocation68_spill] sm:$0xff] %v11505_v8  ;;  %v11508_v43 = vsub.f32 %v11214_v25, %v2307_v53  ;;  %8798 = vmatprep.mubr.f32.mxu1 %v2392_v23  ;;  %v2395_v15 = vmul.f32 %v11505_v8, %v11505_v8 }
 0x421   : > { %v8726_v48 = vpop.f32.mrf.mxu0  ;;  %8799 = vmatmul.mubr.f32.gmra.mxu1 %v2393_v13 }
 0x422   : > { %13766 = vst [vmem:[#allocation69_spill] sm:$0xff] %v11508_v43  ;;  %v2394_v31 = vmul.f32 %v11508_v43, %v11508_v43  ;;  %v11515_v10 = vsub.f32 %v11227_v33, %v8726_v48 }
 0x423   : > { %v2317_v63 = vpop.f32.mrf.mxu0 }
 0x424   : > { %13767 = vst [vmem:[#allocation70_spill] sm:$0xff] %v11515_v10  ;;  %v11518_v37 = vsub.f32 %v11222_v46, %v2317_v63  ;;  %8801 = vmatprep.mubr.f32.mxu1 %v2394_v31  ;;  %v2397_v23 = vmul.f32 %v11515_v10, %v11515_v10  ;;  %v1756_v31 = vld [vmem:[#allocation7 + $0x78] sm:$0xff] }
 0x425   : > { %v8729_v59 = vpop.f32.mrf.mxu0  ;;  %8802 = vmatmul.mubr.f32.gmra.mxu1 %v2395_v15  ;;  %8940 = vmatprep.subr.mxu0 %v1756_v31 }
 0x426   : > { %13768 = vst [vmem:[#allocation71_spill] sm:$0xff] %v11518_v37  ;;  %v2396_v25 = vmul.f32 %v11518_v37, %v11518_v37  ;;  %v11525_v13 = vsub.f32 %v11235_v20, %v8729_v59 }
 0x427   : > { %v2327_v53 = vpop.f32.mrf.mxu0 }
 0x428   : > { %13769 = vst [vmem:[#allocation72_spill] sm:$0xff] %v11525_v13  ;;  %v11528_v33 = vsub.f32 %v11230_v27, %v2327_v53  ;;  %8804 = vmatprep.mubr.f32.mxu1 %v2396_v25  ;;  %v2399_v48 = vmul.f32 %v11525_v13, %v11525_v13 }
 0x429   : > { %8805 = vmatmul.mubr.f32.gmra.mxu1 %v2397_v23 }
 0x42a   : > { %13770 = vst [vmem:[#allocation73_spill] sm:$0xff] %v11528_v33  ;;  %v2398_v46 = vmul.f32 %v11528_v33, %v11528_v33 }
 0x42c   : > { %8807 = vmatprep.mubr.f32.mxu1 %v2398_v46 }
 0x42d   : > { %8808 = vmatmul.mubr.f32.gmra.mxu1 %v2399_v48 }
 0x4b1   : > { %v8764_v15 = vpop.f32.mrf.mxu1 }
 0x4b2   : > { %v2472_v63 = vadd.f32 1e-05, %v8764_v15 }
 0x4b3   : > { %v2466_v20 = vpop.f32.mrf.mxu1 }
 0x4b4   : > { %v2467_v59 = vadd.f32 1e-05, %v2466_v20  ;;  %v3026_v20 = vld [vmem:[#allocation7 + $0xf8] sm:$0xff] }
 0x4b5   : > { %v8767_v10 = vpop.f32.mrf.mxu1  ;;  %8860 = vmatprep.subr.mxu1 %v3026_v20 }
 0x4b6   : > { %9748 = vrsqrt.f32 %v2467_v59  ;;  %v2482_v27 = vadd.f32 1e-05, %v8767_v10  ;;  %8861 = vmatpush3.msra.mxu1 %v3026_v20  ;;  %v1753_v20 = vld [vmem:[#allocation7 + $0x60] sm:$0xff] }
 0x4b7   : > { %9750 = vrsqrt.f32 %v2472_v63  ;;  %v2476_v25 = vpop.f32.mrf.mxu1  ;;  %8862 = vmatprep.subr.mxu1 %v3025_v6 }
 0x4b8   : > { %v2477_v23 = vadd.f32 1e-05, %v2476_v25  ;;  %8863 = vmatpush3.msra.mxu1 %v3025_v6  ;;  %v1752_v6 = vld [vmem:[#allocation7 + $0x58] sm:$0xff] }
 0x4b9   : > { %v8770_v53 = vpop.f32.mrf.mxu1 }
 0x4ba   : > { %9752 = vrsqrt.f32 %v2477_v23  ;;  %v2492_v33 = vadd.f32 1e-05, %v8770_v53 }
 0x4bb   : > { %9754 = vrsqrt.f32 %v2482_v27  ;;  %v2486_v37 = vpop.f32.mrf.mxu1  ;;  %v3024_v27 = vld [vmem:[#allocation7 + $0xe8] sm:$0xff] }
 0x4bc   : > { %v2487_v13 = vadd.f32 1e-05, %v2486_v37  ;;  %v1755_v37 = vld [vmem:[#allocation7 + $0x70] sm:$0xff]  ;;  %8864 = vmatprep.subr.mxu1 %v3024_v27 }
 0x4bd   : > { %v8773_v46 = vpop.f32.mrf.mxu1  ;;  %8865 = vmatpush3.msra.mxu1 %v3024_v27  ;;  %v3022_v27 = vld [vmem:[#allocation7 + $0xd8] sm:$0xff] }
 0x4be   : > { %9756 = vrsqrt.f32 %v2487_v13  ;;  %v2502_v48 = vadd.f32 1e-05, %v8773_v46  ;;  %v3023_v46 = vld [vmem:[#allocation7 + $0xe0] sm:$0xff] }
 0x4bf   : > { %9758 = vrsqrt.f32 %v2492_v33  ;;  %v2496_v8 = vpop.f32.mrf.mxu1  ;;  %8866 = vmatprep.subr.mxu1 %v3023_v46 }
 0x4c0   : > { %v2497_v15 = vadd.f32 1e-05, %v2496_v8  ;;  %v1754_v8 = vld [vmem:[#allocation7 + $0x68] sm:$0xff]  ;;  %8867 = vmatpush3.msra.mxu1 %v3023_v46  ;;  %v3021_v46 = vld [vmem:[#allocation7 + $0xd0] sm:$0xff] }
 0x4c1   : > { %v8776_v43 = vpop.f32.mrf.mxu1  ;;  %8868 = vmatprep.subr.mxu1 %v3022_v27 }
 0x4c2   : > { %9760 = vrsqrt.f32 %v2497_v15  ;;  %v2512_v63 = vadd.f32 1e-05, %v8776_v43  ;;  %8869 = vmatpush3.msra.mxu1 %v3022_v27  ;;  %v3020_v27 = vld [vmem:[#allocation7 + $0xc8] sm:$0xff] }
 0x4c3   : > { %v9749_v10 = vpop.eup %9748  ;;  %9762 = vrsqrt.f32 %v2502_v48  ;;  %v2506_v59 = vpop.f32.mrf.mxu1  ;;  %8870 = vmatprep.subr.mxu1 %v3021_v46 }
 0x4c4   : > { %v9751_v25 = vpop.eup %9750  ;;  %v2507_v23 = vadd.f32 1e-05, %v2506_v59  ;;  %8812 = vmatprep.mubr.msk.f32.mxu0 %vm745_vm0, %v9749_v10  ;;  %8871 = vmatpush3.msra.mxu1 %v3021_v46  ;;  %v3019_v46 = vld [vmem:[#allocation7 + $0xc0] sm:$0xff] }
 0x4c5   : > { %v8779_v13 = vpop.f32.mrf.mxu1  ;;  %8813 = vmatmul.mubr.msk.f32.vlgmr.msra.gmra.mxu0 %vm745_vm0, %v9751_v25  ;;  %8872 = vmatprep.subr.mxu1 %v3020_v27 }
 0x4c6   : > { %9764 = vrsqrt.f32 %v2507_v23  ;;  %8941 = vmatpush3.msra.mxu0 %v1756_v31  ;;  %v2522_v43 = vadd.f32 1e-05, %v8779_v13  ;;  %8873 = vmatpush3.msra.mxu1 %v3020_v27  ;;  %v3018_v27 = vld [vmem:[#allocation7 + $0xb8] sm:$0xff] }
 0x4c7   : > { %v9753_v33 = vpop.eup %9752  ;;  %9766 = vrsqrt.f32 %v2512_v63  ;;  %v2516_v53 = vpop.f32.mrf.mxu1  ;;  %8942 = vmatprep.subr.mxu0 %v1755_v37  ;;  %8874 = vmatprep.subr.mxu1 %v3019_v46 }
 0x4c8   : > { %v9755_v48 = vpop.eup %9754  ;;  %v2517_v15 = vadd.f32 1e-05, %v2516_v53  ;;  %8815 = vmatprep.mubr.msk.f32.mxu0 %vm745_vm0, %v9753_v33  ;;  %8943 = vmatpush3.msra.mxu0 %v1755_v37  ;;  %v1751_v37 = vld [vmem:[#allocation7 + $0x50] sm:$0xff] }
 0x4c9   : > { %v8782_v10 = vpop.f32.mrf.mxu1  ;;  %8816 = vmatmul.mubr.msk.f32.gmra.mxu0 %vm745_vm0, %v9755_v48  ;;  %8944 = vmatprep.subr.mxu0 %v1754_v8 }
 0x4ca   : > { %9768 = vrsqrt.f32 %v2517_v15  ;;  %8945 = vmatpush3.msra.mxu0 %v1754_v8  ;;  %v2532_v63 = vadd.f32 1e-05, %v8782_v10  ;;  %v1750_v8 = vld [vmem:[#allocation7 + $0x48] sm:$0xff]  ;;  %8875 = vmatpush3.msra.mxu1 %v3019_v46  ;;  %v3017_v46 = vld [vmem:[#allocation7 + $0xb0] sm:$0xff] }
 0x4cb   : > { %v9757_v31 = vpop.eup %9756  ;;  %9770 = vrsqrt.f32 %v2522_v43  ;;  %v2526_v59 = vpop.f32.mrf.mxu1  ;;  %8946 = vmatprep.subr.mxu0 %v1753_v20  ;;  %8876 = vmatprep.subr.mxu1 %v3018_v27 }
 0x4cc   : > { %v9759_v25 = vpop.eup %9758  ;;  %v2527_v23 = vadd.f32 1e-05, %v2526_v59  ;;  %8818 = vmatprep.mubr.msk.f32.mxu0 %vm745_vm0, %v9757_v31  ;;  %8947 = vmatpush3.msra.mxu0 %v1753_v20  ;;  %v1749_v20 = vld [vmem:[#allocation7 + $0x40] sm:$0xff] }
 0x4cd   : > { %v8785_v13 = vpop.f32.mrf.mxu1  ;;  %8819 = vmatmul.mubr.msk.f32.gmra.mxu0 %vm745_vm0, %v9759_v25  ;;  %8948 = vmatprep.subr.mxu0 %v1752_v6 }
 0x4ce   : > { %9772 = vrsqrt.f32 %v2527_v23  ;;  %8949 = vmatpush3.msra.mxu0 %v1752_v6  ;;  %v2542_v43 = vadd.f32 1e-05, %v8785_v13  ;;  %v1748_v6 = vld [vmem:[#allocation7 + $0x38] sm:$0xff]  ;;  %8877 = vmatpush3.msra.mxu1 %v3018_v27 }
 0x4cf   : > { %v9761_v33 = vpop.eup %9760  ;;  %9774 = vrsqrt.f32 %v2532_v63  ;;  %v2536_v53 = vpop.f32.mrf.mxu1  ;;  %8950 = vmatprep.subr.mxu0 %v1751_v37  ;;  %8878 = vmatprep.subr.mxu1 %v3017_v46 }
 0x4d0   : > { %v9763_v48 = vpop.eup %9762  ;;  %v2537_v15 = vadd.f32 1e-05, %v2536_v53  ;;  %8821 = vmatprep.mubr.msk.f32.mxu0 %vm745_vm0, %v9761_v33  ;;  %8951 = vmatpush3.msra.mxu0 %v1751_v37  ;;  %v1747_v37 = vld [vmem:[#allocation7 + $0x30] sm:$0xff] }
 0x4d1   : > { %v8788_v10 = vpop.f32.mrf.mxu1  ;;  %8822 = vmatmul.mubr.msk.f32.gmra.mxu0 %vm745_vm0, %v9763_v48  ;;  %8952 = vmatprep.subr.mxu0 %v1750_v8 }
 0x4d2   : > { %9776 = vrsqrt.f32 %v2537_v15  ;;  %8953 = vmatpush3.msra.mxu0 %v1750_v8  ;;  %v2552_v63 = vadd.f32 1e-05, %v8788_v10  ;;  %v1746_v8 = vld [vmem:[#allocation7 + $0x28] sm:$0xff]  ;;  %8879 = vmatpush3.msra.mxu1 %v3017_v46 }
 0x4d3   : > { %v9765_v31 = vpop.eup %9764  ;;  %9778 = vrsqrt.f32 %v2542_v43  ;;  %v2546_v59 = vpop.f32.mrf.mxu1  ;;  %8954 = vmatprep.subr.mxu0 %v1749_v20 }
 0x4d4   : > { %v9767_v25 = vpop.eup %9766  ;;  %v2547_v23 = vadd.f32 1e-05, %v2546_v59  ;;  %8824 = vmatprep.mubr.msk.f32.mxu0 %vm745_vm0, %v9765_v31  ;;  %8955 = vmatpush3.msra.mxu0 %v1749_v20  ;;  %v1745_v20 = vld [vmem:[#allocation7 + $0x20] sm:$0xff] }
 0x4d5   : > { %v8791_v13 = vpop.f32.mrf.mxu1  ;;  %8825 = vmatmul.mubr.msk.f32.gmra.mxu0 %vm745_vm0, %v9767_v25  ;;  %8956 = vmatprep.subr.mxu0 %v1748_v6 }
 0x4d6   : > { %9780 = vrsqrt.f32 %v2547_v23  ;;  %8957 = vmatpush3.msra.mxu0 %v1748_v6  ;;  %v2562_v43 = vadd.f32 1e-05, %v8791_v13  ;;  %v1744_v6 = vld [vmem:[#allocation7 + $0x18] sm:$0xff] }
 0x4d7   : > { %v9769_v33 = vpop.eup %9768  ;;  %9782 = vrsqrt.f32 %v2552_v63  ;;  %v2556_v53 = vpop.f32.mrf.mxu1  ;;  %8958 = vmatprep.subr.mxu0 %v1747_v37 }
 0x4d8   : > { %v9771_v48 = vpop.eup %9770  ;;  %v2557_v15 = vadd.f32 1e-05, %v2556_v53  ;;  %8827 = vmatprep.mubr.msk.f32.mxu0 %vm745_vm0, %v9769_v33  ;;  %8959 = vmatpush3.msra.mxu0 %v1747_v37  ;;  %v1743_v37 = vld [vmem:[#allocation7 + $0x10] sm:$0xff] }
 0x4d9   : > { %v8794_v10 = vpop.f32.mrf.mxu1  ;;  %8828 = vmatmul.mubr.msk.f32.gmra.mxu0 %vm745_vm0, %v9771_v48  ;;  %8960 = vmatprep.subr.mxu0 %v1746_v8 }
 0x4da   : > { %9784 = vrsqrt.f32 %v2557_v15  ;;  %8961 = vmatpush3.msra.mxu0 %v1746_v8  ;;  %v2572_v63 = vadd.f32 1e-05, %v8794_v10  ;;  %v1742_v8 = vld [vmem:[#allocation7 + $0x8] sm:$0xff] }
 0x4db   : > { %v9773_v31 = vpop.eup %9772  ;;  %9786 = vrsqrt.f32 %v2562_v43  ;;  %v2566_v59 = vpop.f32.mrf.mxu1  ;;  %8962 = vmatprep.subr.mxu0 %v1745_v20 }
 0x4dc   : > { %v9775_v25 = vpop.eup %9774  ;;  %v2567_v23 = vadd.f32 1e-05, %v2566_v59  ;;  %8830 = vmatprep.mubr.msk.f32.mxu0 %vm745_vm0, %v9773_v31  ;;  %8963 = vmatpush3.msra.mxu0 %v1745_v20  ;;  %v1741_v20 = vld [vmem:[#allocation7] sm:$0xff] }
 0x4dd   : > { %v8797_v13 = vpop.f32.mrf.mxu1  ;;  %8831 = vmatmul.mubr.msk.f32.gmra.mxu0 %vm745_vm0, %v9775_v25  ;;  %8964 = vmatprep.subr.mxu0 %v1744_v6 }
 0x4de   : > { %9788 = vrsqrt.f32 %v2567_v23  ;;  %8965 = vmatpush3.msra.mxu0 %v1744_v6  ;;  %v2582_v43 = vadd.f32 1e-05, %v8797_v13  ;;  %v3016_v6 = vld [vmem:[#allocation7 + $0xa8] sm:$0xff]  ;;  %v3015_v23 = vld [vmem:[#allocation7 + $0xa0] sm:$0xff]  ;;  %v3014_v13 = vld [vmem:[#allocation7 + $0x98] sm:$0xff] }
 0x4df   : > { %v9777_v33 = vpop.eup %9776  ;;  %9790 = vrsqrt.f32 %v2572_v63  ;;  %v2576_v53 = vpop.f32.mrf.mxu1  ;;  %8966 = vmatprep.subr.mxu0 %v1743_v37  ;;  %8880 = vmatprep.subr.mxu1 %v3016_v6 }
 0x4e0   : > { %v9779_v48 = vpop.eup %9778  ;;  %v2577_v15 = vadd.f32 1e-05, %v2576_v53  ;;  %8833 = vmatprep.mubr.msk.f32.mxu0 %vm745_vm0, %v9777_v33  ;;  %8967 = vmatpush3.msra.mxu0 %v1743_v37 }
 0x4e1   : > { %v8800_v10 = vpop.f32.mrf.mxu1  ;;  %8834 = vmatmul.mubr.msk.f32.gmra.mxu0 %vm745_vm0, %v9779_v48  ;;  %8968 = vmatprep.subr.mxu0 %v1742_v8  ;;  %v3013_v48 = vld [vmem:[#allocation7 + $0x90] sm:$0xff] }
 0x4e2   : > { %9792 = vrsqrt.f32 %v2577_v15  ;;  %8969 = vmatpush3.msra.mxu0 %v1742_v8  ;;  %v2592_v63 = vadd.f32 1e-05, %v8800_v10  ;;  %8881 = vmatpush3.msra.mxu1 %v3016_v6 }
 0x4e3   : > { %v9781_v31 = vpop.eup %9780  ;;  %9794 = vrsqrt.f32 %v2582_v43  ;;  %v2586_v59 = vpop.f32.mrf.mxu1  ;;  %8970 = vmatprep.subr.mxu0 %v1741_v20  ;;  %8882 = vmatprep.subr.mxu1 %v3015_v23 }
 0x4e4   : > { %v9783_v27 = vpop.eup %9782  ;;  %v2587_v25 = vadd.f32 1e-05, %v2586_v59  ;;  %8836 = vmatprep.mubr.msk.f32.mxu0 %vm745_vm0, %v9781_v31  ;;  %8971 = vmatpush3.msra.mxu0 %v1741_v20  ;;  %v3012_v20 = vld [vmem:[#allocation7 + $0x88] sm:$0xff] }
 0x4e5   : > { %v8803_v37 = vpop.f32.mrf.mxu1  ;;  %8837 = vmatmul.mubr.msk.f32.gmra.mxu0 %vm745_vm0, %v9783_v27  ;;  %9100 = vmatprep.subr.mxu0 %v11278_v26 }
 0x4e6   : > { %9796 = vrsqrt.f32 %v2587_v25  ;;  %v2602_v33 = vadd.f32 1e-05, %v8803_v37  ;;  %8883 = vmatpush3.msra.mxu1 %v3015_v23 }
 0x4e7   : > { %v9785_v8 = vpop.eup %9784  ;;  %9798 = vrsqrt.f32 %v2592_v63  ;;  %v2596_v43 = vpop.f32.mrf.mxu1  ;;  %8884 = vmatprep.subr.mxu1 %v3014_v13 }
 0x4e8   : > { %v9787_v53 = vpop.eup %9786  ;;  %v2597_v46 = vadd.f32 1e-05, %v2596_v43  ;;  %8839 = vmatprep.mubr.msk.f32.mxu0 %vm745_vm0, %v9785_v8  ;;  %8885 = vmatpush3.msra.mxu1 %v3014_v13 }
 0x4e9   : > { %v8806_v15 = vpop.f32.mrf.mxu1  ;;  %8840 = vmatmul.mubr.msk.f32.gmra.mxu0 %vm745_vm0, %v9787_v53  ;;  %8886 = vmatprep.subr.mxu1 %v3013_v48 }
 0x4ea   : > { %9800 = vrsqrt.f32 %v2597_v46  ;;  %v2612_v6 = vadd.f32 1e-05, %v8806_v15  ;;  %8887 = vmatpush3.msra.mxu1 %v3013_v48 }
 0x4eb   : > { %v9789_v10 = vpop.eup %9788  ;;  %9802 = vrsqrt.f32 %v2602_v33  ;;  %v2606_v31 = vpop.f32.mrf.mxu1  ;;  %8888 = vmatprep.subr.mxu1 %v3012_v20 }
 0x4ec   : > { %v9791_v63 = vpop.eup %9790  ;;  %v2607_v59 = vadd.f32 1e-05, %v2606_v31  ;;  %8842 = vmatprep.mubr.msk.f32.mxu0 %vm745_vm0, %v9789_v10  ;;  %8889 = vmatpush3.msra.mxu1 %v3012_v20  ;;  %v1710_v31 = vmul.f32 %v11310_v34, %v10888_v52  ;;  %v11582_v52 = vld [vmem:[%s13654_s2 + $0x78] sm:$0xff]  ;;  %v1718_v34 = vmul.f32 %v11326_v40, %v10937_v56  ;;  %v13781_v56 = vld [vmem:[#allocation27_spill] sm:$0xff]  ;;  %v13782_v40 = vld [vmem:[#allocation49_spill] sm:$0xff] }
 0x4ed   : > { %v8809_v27 = vpop.f32.mrf.mxu1  ;;  %8843 = vmatmul.mubr.msk.f32.gmra.mxu0 %vm745_vm0, %v9791_v63  ;;  %v1711_v63 = vmul.f32 %v11316_v28, %v10901_v60  ;;  %v1714_v60 = vmul.f32 %v11318_v38, %v10909_v62  ;;  %v13773_v62 = vld [vmem:[#allocation23_spill] sm:$0xff] }
 0x4ee   : > { %9804 = vrsqrt.f32 %v2607_v59  ;;  %v2622_v23 = vadd.f32 1e-05, %v8809_v27  ;;  %v3011_v59 = vld [vmem:[#allocation7 + $0x80] sm:$0xff]  ;;  %v1712_v27 = vmul.f32 %v11314_v11, %v10898_v58  ;;  %v1715_v58 = vmul.f32 %v11324_v45, %v10927_v51  ;;  %v13772_v11 = vld [vmem:[#allocation46_spill] sm:$0xff]  ;;  %v13776_v45 = vld [vmem:[#allocation48_spill] sm:$0xff] }
 0x4ef   : > { %v9793_v25 = vpop.eup %9792  ;;  %9806 = vrsqrt.f32 %v2612_v6  ;;  %v2616_v37 = vpop.f32.mrf.mxu1  ;;  %v1709_v6 = vmul.f32 %v11312_v44, %v10891_v54  ;;  %8890 = vmatprep.subr.mxu1 %v3011_v59  ;;  %v1713_v54 = vmul.f32 %v11320_v55, %v10913_v19  ;;  %v1716_v19 = vmul.f32 %v11322_v36, %v10923_v50  ;;  %v13771_v44 = vld [vmem:[#allocation24_spill] sm:$0xff]  ;;  %v13774_v51 = vld [vmem:[#allocation45_spill] sm:$0xff]  ;;  %v13775_v55 = vld [vmem:[#allocation26_spill] sm:$0xff] }
 0x4f0   : > { %v9795_v13 = vpop.eup %9794  ;;  %v2617_v8 = vadd.f32 1e-05, %v2616_v37  ;;  %8845 = vmatprep.mubr.msk.f32.mxu0 %vm745_vm0, %v9793_v25  ;;  %8891 = vmatpush3.msra.mxu1 %v3011_v59  ;;  %v1719_v28 = vmul.f32 %v13772_v11, %v13771_v44  ;;  %v1720_v38 = vmul.f32 %v13774_v51, %v13773_v62  ;;  %v1721_v25 = vmul.f32 %v13776_v45, %v13775_v55  ;;  %v13777_v50 = vld [vmem:[#allocation25_spill] sm:$0xff]  ;;  %v13791_v59 = vld [vmem:[#allocation34_spill] sm:$0xff]  ;;  %v13797_v11 = vld [vmem:[#allocation35_spill] sm:$0xff] }
 0x4f1   : > { %8846 = vmatmul.mubr.msk.f32.gmra.mxu0 %vm745_vm0, %v9795_v13  ;;  %9020 = vmatprep.subr.mxu1 %v11582_v52  ;;  %v1724_v13 = vmul.f32 %v13782_v40, %v13781_v56  ;;  %v13799_v51 = vld [vmem:[#allocation38_spill] sm:$0xff]  ;;  %v13801_v45 = vld [vmem:[#allocation37_spill] sm:$0xff]  ;;  %v13807_v40 = vld [vmem:[#allocation63_spill] sm:$0xff] }
 0x4f2   : > { %9808 = vrsqrt.f32 %v2617_v8  ;;  %v13783_v8 = vld [vmem:[#allocation30_spill] sm:$0xff] }
 0x4f3   : > { %v9797_v33 = vpop.eup %9796  ;;  %9810 = vrsqrt.f32 %v2622_v23  ;;  %v13780_v23 = vld [vmem:[#allocation50_spill] sm:$0xff] }
 0x4f4   : > { %v9799_v43 = vpop.eup %9798  ;;  %8848 = vmatprep.mubr.msk.f32.mxu0 %vm745_vm0, %v9797_v33  ;;  %v13784_v33 = vld [vmem:[#allocation52_spill] sm:$0xff]  ;;  %v13806_v56 = vld [vmem:[#allocation42_spill] sm:$0xff] }
 0x4f5   : > { %8849 = vmatmul.mubr.msk.f32.gmra.mxu0 %vm745_vm0, %v9799_v43  ;;  %v1725_v43 = vmul.f32 %v13784_v33, %v13783_v8  ;;  %v13808_v8 = vld [vmem:[#allocation41_spill] sm:$0xff]  ;;  %v13809_v33 = vld [vmem:[#allocation62_spill] sm:$0xff] }
 0x4f7   : > { %v9801_v53 = vpop.eup %9800 }
 0x4f8   : > { %v9803_v46 = vpop.eup %9802  ;;  %8851 = vmatprep.mubr.msk.f32.mxu0 %vm745_vm0, %v9801_v53  ;;  %v13785_v53 = vld [vmem:[#allocation29_spill] sm:$0xff] }
 0x4f9   : > { %8852 = vmatmul.mubr.msk.f32.gmra.mxu0 %vm745_vm0, %v9803_v46  ;;  %v13786_v46 = vld [vmem:[#allocation51_spill] sm:$0xff] }
 0x4fb   : > { %v9805_v48 = vpop.eup %9804 }
 0x4fc   : > { %v9807_v15 = vpop.eup %9806  ;;  %8854 = vmatprep.mubr.msk.f32.mxu0 %vm745_vm0, %v9805_v48  ;;  %v1726_v48 = vmul.f32 %v13786_v46, %v13785_v53  ;;  %v13810_v53 = vld [vmem:[#allocation44_spill] sm:$0xff]  ;;  %v13811_v46 = vld [vmem:[#allocation65_spill] sm:$0xff] }
 0x4fd   : > { %8855 = vmatmul.mubr.msk.f32.gmra.mxu0 %vm745_vm0, %v9807_v15  ;;  %v13787_v15 = vld [vmem:[#allocation32_spill] sm:$0xff] }
 0x4ff   : > { %v9809_v20 = vpop.eup %9808 }
 0x500   : > { %v9811_v10 = vpop.eup %9810  ;;  %8857 = vmatprep.mubr.msk.f32.mxu0 %vm745_vm0, %v9809_v20  ;;  %v13788_v20 = vld [vmem:[#allocation54_spill] sm:$0xff] }
 0x501   : > { %8858 = vmatmul.mubr.msk.f32.gmra.mxu0 %vm745_vm0, %v9811_v10  ;;  %v1727_v10 = vmul.f32 %v13788_v20, %v13787_v15  ;;  %v13812_v15 = vld [vmem:[#allocation43_spill] sm:$0xff] }
 0x502   : > { %8972 = vmatprep.mubr.f32.mxu0 %v1709_v6  ;;  %v13789_v6 = vld [vmem:[#allocation31_spill] sm:$0xff] }
 0x505   : > { %8973 = vmatmul.mubr.f32.vlgmr.msra.gmra.mxu0 %v1710_v31  ;;  %v13790_v31 = vld [vmem:[#allocation53_spill] sm:$0xff] }
 0x506   : > { %8975 = vmatprep.mubr.f32.mxu0 %v1711_v63  ;;  %9101 = vmatpush3.msra.mxu0 %v11278_v26  ;;  %v1728_v63 = vmul.f32 %v13790_v31, %v13789_v6 }
 0x507   : > { %9230 = vmatprep.subr.mxu0 %v11278_v26  ;;  %v1717_v26 = vmul.f32 %v11328_v42, %v10941_v57  ;;  %v13778_v57 = vld [vmem:[#allocation47_spill] sm:$0xff]  ;;  %v13779_v42 = vld [vmem:[#allocation28_spill] sm:$0xff] }
 0x508   : > { %v1722_v36 = vmul.f32 %v13778_v57, %v13777_v50  ;;  %v1723_v37 = vmul.f32 %v13780_v23, %v13779_v42  ;;  %v13803_v57 = vld [vmem:[#allocation40_spill] sm:$0xff]  ;;  %v13804_v42 = vld [vmem:[#allocation39_spill] sm:$0xff]  ;;  %v13805_v23 = vld [vmem:[#allocation61_spill] sm:$0xff] }
 0x509   : > { %8976 = vmatmul.mubr.f32.gmra.mxu0 %v1712_v27  ;;  %v13792_v27 = vld [vmem:[#allocation56_spill] sm:$0xff] }
 0x50a   : > { %8978 = vmatprep.mubr.f32.mxu0 %v1713_v54  ;;  %v1729_v54 = vmul.f32 %v13792_v27, %v13791_v59 }
 0x50d   : > { %8979 = vmatmul.mubr.f32.gmra.mxu0 %v1714_v60  ;;  %v13793_v60 = vld [vmem:[#allocation33_spill] sm:$0xff] }
 0x50e   : > { %8981 = vmatprep.mubr.f32.mxu0 %v1715_v58  ;;  %v13794_v58 = vld [vmem:[#allocation55_spill] sm:$0xff] }
 0x511   : > { %8982 = vmatmul.mubr.f32.gmra.mxu0 %v1716_v19  ;;  %v1730_v19 = vmul.f32 %v13794_v58, %v13793_v60 }
 0x512   : > { %8984 = vmatprep.mubr.f32.mxu0 %v1717_v26  ;;  %v13795_v26 = vld [vmem:[#allocation36_spill] sm:$0xff] }
 0x515   : > { %8985 = vmatmul.mubr.f32.gmra.mxu0 %v1718_v34  ;;  %v13796_v34 = vld [vmem:[#allocation58_spill] sm:$0xff] }
 0x516   : > { %8987 = vmatprep.mubr.f32.mxu0 %v1719_v28  ;;  %v1731_v44 = vmul.f32 %v13796_v34, %v13795_v26  ;;  %v13798_v28 = vld [vmem:[#allocation57_spill] sm:$0xff]  ;;  %v11647_v26 = vld [vmem:[%s13654_s2 + $0x70] sm:$0xff] }
 0x517   : > { %v1732_v62 = vmul.f32 %v13798_v28, %v13797_v11  ;;  %v11663_v11 = vld [vmem:[%s13654_s2 + $0x60] sm:$0xff] }
 0x519   : > { %8988 = vmatmul.mubr.f32.gmra.mxu0 %v1720_v38  ;;  %v13800_v38 = vld [vmem:[#allocation60_spill] sm:$0xff] }
 0x51a   : > { %8990 = vmatprep.mubr.f32.mxu0 %v1721_v25  ;;  %v1733_v55 = vmul.f32 %v13800_v38, %v13799_v51  ;;  %v13802_v25 = vld [vmem:[#allocation59_spill] sm:$0xff] }
 0x51b   : > { %v1734_v50 = vmul.f32 %v13802_v25, %v13801_v45  ;;  %v11679_v38 = vld [vmem:[%s13654_s2 + $0x50] sm:$0xff] }
 0x51d   : > { %8991 = vmatmul.mubr.f32.gmra.mxu0 %v1722_v36  ;;  %v1735_v36 = vmul.f32 %v11364_v24, %v13803_v57  ;;  %v13813_v24 = vld [vmem:[#allocation64_spill] sm:$0xff] }
 0x51e   : > { %8993 = vmatprep.mubr.f32.mxu0 %v1723_v37  ;;  %v1736_v37 = vmul.f32 %v13805_v23, %v13804_v42  ;;  %v1740_v20 = vmul.f32 %v13813_v24, %v13812_v15  ;;  %v11711_v23 = vld [vmem:[%s13654_s2 + $0x30] sm:$0xff]  ;;  %v11759_v24 = vld [vmem:[%s13654_s2] sm:$0xff] }
 0x521   : > { %8994 = vmatmul.mubr.f32.gmra.mxu0 %v1724_v13  ;;  %v1737_v13 = vmul.f32 %v13807_v40, %v13806_v56 }
 0x522   : > { %8996 = vmatprep.mubr.f32.mxu0 %v1725_v43  ;;  %v1738_v43 = vmul.f32 %v13809_v33, %v13808_v8 }
 0x525   : > { %8997 = vmatmul.mubr.f32.gmra.mxu0 %v1726_v48  ;;  %v1739_v48 = vmul.f32 %v13811_v46, %v13810_v53  ;;  %v11743_v53 = vld [vmem:[%s13654_s2 + $0x10] sm:$0xff] }
 0x526   : > { %8999 = vmatprep.mubr.f32.mxu0 %v1727_v10 }
 0x529   : > { %9000 = vmatmul.mubr.f32.gmra.mxu0 %v1728_v63  ;;  %v13814_v63 = vld [vmem:[#allocation66_spill] sm:$0xff] }
 0x52a   : > { %9002 = vmatprep.mubr.f32.mxu0 %v1729_v54 }
 0x52d   : > { %9003 = vmatmul.mubr.f32.gmra.mxu0 %v1730_v19 }
 0x52e   : > { %9005 = vmatprep.mubr.f32.mxu0 %v1731_v44 }
 0x531   : > { %9006 = vmatmul.mubr.f32.gmra.mxu0 %v1732_v62 }
 0x532   : > { %9008 = vmatprep.mubr.f32.mxu0 %v1733_v55 }
 0x535   : > { %9009 = vmatmul.mubr.f32.gmra.mxu0 %v1734_v50  ;;  %v11695_v50 = vld [vmem:[%s13654_s2 + $0x40] sm:$0xff] }
 0x536   : > { %9011 = vmatprep.mubr.f32.mxu0 %v1735_v36 }
 0x539   : > { %9012 = vmatmul.mubr.f32.gmra.mxu0 %v1736_v37 }
 0x53a   : > { %9014 = vmatprep.mubr.f32.mxu0 %v1737_v13  ;;  %v11727_v13 = vld [vmem:[%s13654_s2 + $0x20] sm:$0xff] }
 0x53d   : > { %9015 = vmatmul.mubr.f32.gmra.mxu0 %v1738_v43 }
 0x53e   : > { %9017 = vmatprep.mubr.f32.mxu0 %v1739_v48 }
 0x541   : > { %9018 = vmatmul.mubr.f32.gmra.mxu0 %v1740_v20 }
 0x585   : > { %v8814_v10 = vpop.f32.mrf.mxu0 }
 0x586   : > { %v2979_v59 = vmul.f32 %v8814_v10, %v13814_v63 }
 0x587   : > { %v2819_v6 = vpop.f32.mrf.mxu0 }
 0x588   : > { %v2978_v31 = vmul.f32 %v2819_v6, %v11378_v32 }
 0x589   : > { %v8817_v27 = vpop.f32.mrf.mxu0 }
 0x58a   : > { %8892 = vmatprep.mubr.f32.mxu1 %v2978_v31  ;;  %v2981_v58 = vmul.f32 %v8817_v27, %v11385_v22 }
 0x58b   : > { %v2829_v54 = vpop.f32.mrf.mxu0  ;;  %8893 = vmatmul.mubr.f32.vlgmr.msra.gmra.mxu1 %v2979_v59 }
 0x58c   : > { %v2980_v60 = vmul.f32 %v2829_v54, %v11388_v61  ;;  %9021 = vmatpush3.msra.mxu1 %v11582_v52  ;;  %v11654_v61 = vld [vmem:[%s13654_s2 + $0x68] sm:$0xff] }
 0x58d   : > { %v8820_v19 = vpop.f32.mrf.mxu0  ;;  %9022 = vmatprep.subr.mxu1 %v11647_v26 }
 0x58e   : > { %8895 = vmatprep.mubr.f32.mxu1 %v2980_v60  ;;  %9023 = vmatpush3.msra.mxu1 %v11647_v26  ;;  %v2983_v34 = vmul.f32 %v8820_v19, %v11395_v35  ;;  %v13815_v19 = vld [vmem:[#allocation67_spill] sm:$0xff] }
 0x58f   : > { %v2839_v32 = vpop.f32.mrf.mxu0  ;;  %8896 = vmatmul.mubr.f32.gmra.mxu1 %v2981_v58  ;;  %9024 = vmatprep.subr.mxu1 %v11654_v61 }
 0x590   : > { %v2982_v22 = vmul.f32 %v2839_v32, %v11398_v21  ;;  %9025 = vmatpush3.msra.mxu1 %v11654_v61  ;;  %v11670_v21 = vld [vmem:[%s13654_s2 + $0x58] sm:$0xff] }
 0x591   : > { %v8823_v44 = vpop.f32.mrf.mxu0  ;;  %9026 = vmatprep.subr.mxu1 %v11663_v11 }
 0x592   : > { %8898 = vmatprep.mubr.f32.mxu1 %v2982_v22  ;;  %9027 = vmatpush3.msra.mxu1 %v11663_v11  ;;  %v2985_v62 = vmul.f32 %v8823_v44, %v11405_v47  ;;  %v13817_v44 = vld [vmem:[#allocation68_spill] sm:$0xff] }
 0x593   : > { %v2849_v28 = vpop.f32.mrf.mxu0  ;;  %8899 = vmatmul.mubr.f32.gmra.mxu1 %v2983_v34  ;;  %9028 = vmatprep.subr.mxu1 %v11670_v21 }
 0x594   : > { %v2984_v35 = vmul.f32 %v2849_v28, %v11408_v29  ;;  %9029 = vmatpush3.msra.mxu1 %v11670_v21  ;;  %v11686_v29 = vld [vmem:[%s13654_s2 + $0x48] sm:$0xff] }
 0x595   : > { %v8826_v51 = vpop.f32.mrf.mxu0  ;;  %9030 = vmatprep.subr.mxu1 %v11679_v38 }
 0x596   : > { %8901 = vmatprep.mubr.f32.mxu1 %v2984_v35  ;;  %9031 = vmatpush3.msra.mxu1 %v11679_v38  ;;  %v2987_v45 = vmul.f32 %v8826_v51, %v11415_v39  ;;  %v13818_v35 = vld [vmem:[#allocation71_spill] sm:$0xff] }
 0x597   : > { %v2859_v55 = vpop.f32.mrf.mxu0  ;;  %8902 = vmatmul.mubr.f32.gmra.mxu1 %v2985_v62  ;;  %9032 = vmatprep.subr.mxu1 %v11686_v29 }
 0x598   : > { %v2986_v47 = vmul.f32 %v2859_v55, %v11418_v0  ;;  %9033 = vmatpush3.msra.mxu1 %v11686_v29  ;;  %v11702_v0 = vld [vmem:[%s13654_s2 + $0x38] sm:$0xff] }
 0x599   : > { %v8829_v25 = vpop.f32.mrf.mxu0  ;;  %9034 = vmatprep.subr.mxu1 %v11695_v50 }
 0x59a   : > { %8904 = vmatprep.mubr.f32.mxu1 %v2986_v47  ;;  %9035 = vmatpush3.msra.mxu1 %v11695_v50  ;;  %v2989_v36 = vmul.f32 %v8829_v25, %v11425_v49 }
 0x59b   : > { %v2869_v57 = vpop.f32.mrf.mxu0  ;;  %8905 = vmatmul.mubr.f32.gmra.mxu1 %v2987_v45  ;;  %9036 = vmatprep.subr.mxu1 %v11702_v0  ;;  %v13820_v45 = vld [vmem:[#allocation73_spill] sm:$0xff] }
 0x59c   : > { %v2988_v39 = vmul.f32 %v2869_v57, %v11428_v2  ;;  %9037 = vmatpush3.msra.mxu1 %v11702_v0  ;;  %v11718_v2 = vld [vmem:[%s13654_s2 + $0x28] sm:$0xff]  ;;  %v13821_v57 = vld [vmem:[#allocation72_spill] sm:$0xff] }
 0x59d   : > { %v8832_v42 = vpop.f32.mrf.mxu0  ;;  %9038 = vmatprep.subr.mxu1 %v11711_v23 }
 0x59e   : > { %8907 = vmatprep.mubr.f32.mxu1 %v2988_v39  ;;  %9039 = vmatpush3.msra.mxu1 %v11711_v23  ;;  %v2991_v56 = vmul.f32 %v8832_v42, %v11435_v18  ;;  %v11783_v42 = vld [vmem:[%s10560_s15 + $0x208] sm:$0xff] }
 0x59f   : > { %v2879_v37 = vpop.f32.mrf.mxu0  ;;  %8908 = vmatmul.mubr.f32.gmra.mxu1 %v2989_v36  ;;  %9040 = vmatprep.subr.mxu1 %v11718_v2  ;;  %v11779_v36 = vld [vmem:[%s10560_s15 + $0x200] sm:$0xff] }
 0x5a0   : > { %v2990_v49 = vmul.f32 %v2879_v37, %v11438_v5  ;;  %9041 = vmatpush3.msra.mxu1 %v11718_v2  ;;  %v11734_v5 = vld [vmem:[%s13654_s2 + $0x18] sm:$0xff]  ;;  %v11786_v37 = vld [vmem:[%s10560_s15 + $0x210] sm:$0xff] }
 0x5a1   : > { %v8835_v40 = vpop.f32.mrf.mxu0  ;;  %9042 = vmatprep.subr.mxu1 %v11727_v13 }
 0x5a2   : > { %8910 = vmatprep.mubr.f32.mxu1 %v2990_v49  ;;  %9043 = vmatpush3.msra.mxu1 %v11727_v13  ;;  %v2993_v33 = vmul.f32 %v8835_v40, %v11445_v4  ;;  %v11791_v49 = vld [vmem:[%s10560_s15 + $0x218] sm:$0xff]  ;;  %v11803_v40 = vld [vmem:[%s10560_s15 + $0x228] sm:$0xff] }
 0x5a3   : > { %v2889_v8 = vpop.f32.mrf.mxu0  ;;  %8911 = vmatmul.mubr.f32.gmra.mxu1 %v2991_v56  ;;  %9044 = vmatprep.subr.mxu1 %v11734_v5  ;;  %v11795_v56 = vld [vmem:[%s10560_s15 + $0x220] sm:$0xff] }
 0x5a4   : > { %v2992_v18 = vmul.f32 %v2889_v8, %v11448_v7  ;;  %9045 = vmatpush3.msra.mxu1 %v11734_v5  ;;  %v11750_v7 = vld [vmem:[%s13654_s2 + $0x8] sm:$0xff]  ;;  %v11807_v8 = vld [vmem:[%s10560_s15 + $0x230] sm:$0xff] }
 0x5a5   : > { %v8838_v43 = vpop.f32.mrf.mxu0  ;;  %9046 = vmatprep.subr.mxu1 %v11743_v53 }
 0x5a6   : > { %8913 = vmatprep.mubr.f32.mxu1 %v2992_v18  ;;  %9047 = vmatpush3.msra.mxu1 %v11743_v53  ;;  %v2995_v48 = vmul.f32 %v8838_v43, %v11455_v30  ;;  %v11889_v18 = vld [vmem:[%s10560_s15 + $0x2a0] sm:$0xff]  ;;  %v11897_v43 = vld [vmem:[%s10560_s15 + $0x2b0] sm:$0xff] }
 0x5a7   : > { %v2899_v46 = vpop.f32.mrf.mxu0  ;;  %8914 = vmatmul.mubr.f32.gmra.mxu1 %v2993_v33  ;;  %9048 = vmatprep.subr.mxu1 %v11750_v7  ;;  %v11894_v33 = vld [vmem:[%s10560_s15 + $0x2a8] sm:$0xff] }
 0x5a8   : > { %v2994_v4 = vmul.f32 %v2899_v46, %v11458_v9  ;;  %9049 = vmatpush3.msra.mxu1 %v11750_v7  ;;  %v11905_v46 = vld [vmem:[%s10560_s15 + $0x2c0] sm:$0xff] }
 0x5a9   : > { %v8841_v15 = vpop.f32.mrf.mxu0  ;;  %9050 = vmatprep.subr.mxu1 %v11759_v24 }
 0x5aa   : > { %8916 = vmatprep.mubr.f32.mxu1 %v2994_v4  ;;  %9051 = vmatpush3.msra.mxu1 %v11759_v24  ;;  %v2997_v10 = vmul.f32 %v8841_v15, %v11465_v41  ;;  %v11913_v4 = vld [vmem:[%s10560_s15 + $0x2d0] sm:$0xff]  ;;  %v11921_v15 = vld [vmem:[%s10560_s15 + $0x2e0] sm:$0xff] }
 0x5ab   : > { %v2909_v20 = vpop.f32.mrf.mxu0  ;;  %8917 = vmatmul.mubr.f32.gmra.mxu1 %v2995_v48  ;;  %9150 = vmatprep.subr.mxu1 %v11582_v52  ;;  %v11918_v48 = vld [vmem:[%s10560_s15 + $0x2d8] sm:$0xff] }
 0x5ac   : > { %v2996_v9 = vmul.f32 %v2909_v20, %v11468_v12  ;;  %v11929_v20 = vld [vmem:[%s10560_s15 + $0x2f0] sm:$0xff] }
 0x5ad   : > { %v8844_v30 = vpop.f32.mrf.mxu0 }
 0x5ae   : > { %8919 = vmatprep.mubr.f32.mxu1 %v2996_v9  ;;  %v2999_v63 = vmul.f32 %v8844_v30, %v11475_v1  ;;  %v13816_v1 = vld [vmem:[#allocation69_spill] sm:$0xff]  ;;  %v11934_v9 = vld [vmem:[%s10560_s15 + $0x2f8] sm:$0xff] }
 0x5af   : > { %v2919_v6 = vpop.f32.mrf.mxu0  ;;  %8920 = vmatmul.mubr.f32.gmra.mxu1 %v2997_v10 }
 0x5b0   : > { %v2998_v31 = vmul.f32 %v2919_v6, %v11478_v14 }
 0x5b1   : > { %v8847_v59 = vpop.f32.mrf.mxu0 }
 0x5b2   : > { %8922 = vmatprep.mubr.f32.mxu1 %v2998_v31  ;;  %v3001_v60 = vmul.f32 %v8847_v59, %v11485_v3 }
 0x5b3   : > { %v2929_v27 = vpop.f32.mrf.mxu0  ;;  %8923 = vmatmul.mubr.f32.gmra.mxu1 %v2999_v63 }
 0x5b4   : > { %v3000_v54 = vmul.f32 %v2929_v27, %v11488_v16 }
 0x5b5   : > { %v8850_v58 = vpop.f32.mrf.mxu0 }
 0x5b6   : > { %8925 = vmatprep.mubr.f32.mxu1 %v3000_v54  ;;  %v3003_v32 = vmul.f32 %v8850_v58, %v13815_v19 }
 0x5b7   : > { %v2939_v12 = vpop.f32.mrf.mxu0  ;;  %8926 = vmatmul.mubr.f32.gmra.mxu1 %v3001_v60 }
 0x5b8   : > { %v3002_v41 = vmul.f32 %v2939_v12, %v11498_v17  ;;  %v13819_v17 = vld [vmem:[#allocation70_spill] sm:$0xff] }
 0x5b9   : > { %v8853_v22 = vpop.f32.mrf.mxu0 }
 0x5ba   : > { %8928 = vmatprep.mubr.f32.mxu1 %v3002_v41  ;;  %v3005_v28 = vmul.f32 %v8853_v22, %v13817_v44 }
 0x5bb   : > { %v2949_v14 = vpop.f32.mrf.mxu0  ;;  %8929 = vmatmul.mubr.f32.gmra.mxu1 %v3003_v32 }
 0x5bc   : > { %v3004_v34 = vmul.f32 %v2949_v14, %v13816_v1 }
 0x5bd   : > { %v8856_v16 = vpop.f32.mrf.mxu0 }
 0x5be   : > { %8931 = vmatprep.mubr.f32.mxu1 %v3004_v34  ;;  %v3007_v51 = vmul.f32 %v8856_v16, %v13819_v17 }
 0x5bf   : > { %v2959_v3 = vpop.f32.mrf.mxu0  ;;  %8932 = vmatmul.mubr.f32.gmra.mxu1 %v3005_v28 }
 0x5c0   : > { %v3006_v62 = vmul.f32 %v2959_v3, %v13818_v35 }
 0x5c1   : > { %v8859_v55 = vpop.f32.mrf.mxu0 }
 0x5c2   : > { %8934 = vmatprep.mubr.f32.mxu1 %v3006_v62  ;;  %v3009_v39 = vmul.f32 %v8859_v55, %v13821_v57 }
 0x5c3   : > { %v2969_v47 = vpop.f32.mrf.mxu0  ;;  %8935 = vmatmul.mubr.f32.gmra.mxu1 %v3007_v51 }
 0x5c4   : > { %v3008_v25 = vmul.f32 %v2969_v47, %v13820_v45 }
 0x5c6   : > { %8937 = vmatprep.mubr.f32.mxu1 %v3008_v25 }
 0x5c7   : > { %8938 = vmatmul.mubr.f32.gmra.mxu1 %v3009_v39 }
 0x5c8   : > { %9052 = vmatprep.mubr.f32.mxu1 %v11779_v36 }
 0x5cb   : > { %9053 = vmatmul.mubr.f32.vlgmr.msra.gmra.mxu1 %v11783_v42 }
 0x5cc   : > { %9055 = vmatprep.mubr.f32.mxu1 %v11786_v37  ;;  %9151 = vmatpush3.msra.mxu1 %v11582_v52  ;;  %v11815_v52 = vld [vmem:[%s10560_s15 + $0x238] sm:$0xff] }
 0x5cd   : > { %9152 = vmatprep.subr.mxu1 %v11647_v26 }
 0x5ce   : > { %9153 = vmatpush3.msra.mxu1 %v11647_v26  ;;  %v11819_v26 = vld [vmem:[%s10560_s15 + $0x240] sm:$0xff] }
 0x5cf   : > { %9056 = vmatmul.mubr.f32.gmra.mxu1 %v11791_v49  ;;  %9154 = vmatprep.subr.mxu1 %v11654_v61 }
 0x5d0   : > { %9058 = vmatprep.mubr.f32.mxu1 %v11795_v56  ;;  %9155 = vmatpush3.msra.mxu1 %v11654_v61  ;;  %v11827_v61 = vld [vmem:[%s10560_s15 + $0x248] sm:$0xff] }
 0x5d1   : > { %9156 = vmatprep.subr.mxu1 %v11663_v11 }
 0x5d2   : > { %9157 = vmatpush3.msra.mxu1 %v11663_v11  ;;  %v11831_v11 = vld [vmem:[%s10560_s15 + $0x250] sm:$0xff] }
 0x5d3   : > { %9059 = vmatmul.mubr.f32.gmra.mxu1 %v11803_v40  ;;  %9158 = vmatprep.subr.mxu1 %v11670_v21 }
 0x5d4   : > { %9061 = vmatprep.mubr.f32.mxu1 %v11807_v8  ;;  %9159 = vmatpush3.msra.mxu1 %v11670_v21  ;;  %v11839_v21 = vld [vmem:[%s10560_s15 + $0x258] sm:$0xff] }
 0x5d5   : > { %9160 = vmatprep.subr.mxu1 %v11679_v38 }
 0x5d6   : > { %9161 = vmatpush3.msra.mxu1 %v11679_v38  ;;  %v11843_v38 = vld [vmem:[%s10560_s15 + $0x260] sm:$0xff] }
 0x5d7   : > { %9062 = vmatmul.mubr.f32.gmra.mxu1 %v11815_v52  ;;  %9162 = vmatprep.subr.mxu1 %v11686_v29 }
 0x5d8   : > { %9064 = vmatprep.mubr.f32.mxu1 %v11819_v26  ;;  %9163 = vmatpush3.msra.mxu1 %v11686_v29  ;;  %v11851_v29 = vld [vmem:[%s10560_s15 + $0x268] sm:$0xff] }
 0x5d9   : > { %9164 = vmatprep.subr.mxu1 %v11695_v50 }
 0x5da   : > { %9165 = vmatpush3.msra.mxu1 %v11695_v50  ;;  %v11855_v50 = vld [vmem:[%s10560_s15 + $0x270] sm:$0xff] }
 0x5db   : > { %9065 = vmatmul.mubr.f32.gmra.mxu1 %v11827_v61  ;;  %9166 = vmatprep.subr.mxu1 %v11702_v0 }
 0x5dc   : > { %9067 = vmatprep.mubr.f32.mxu1 %v11831_v11  ;;  %9167 = vmatpush3.msra.mxu1 %v11702_v0  ;;  %v11863_v0 = vld [vmem:[%s10560_s15 + $0x278] sm:$0xff] }
 0x5dd   : > { %9168 = vmatprep.subr.mxu1 %v11711_v23 }
 0x5de   : > { %9169 = vmatpush3.msra.mxu1 %v11711_v23  ;;  %v11867_v23 = vld [vmem:[%s10560_s15 + $0x280] sm:$0xff] }
 0x5df   : > { %9068 = vmatmul.mubr.f32.gmra.mxu1 %v11839_v21  ;;  %9170 = vmatprep.subr.mxu1 %v11718_v2 }
 0x5e0   : > { %9070 = vmatprep.mubr.f32.mxu1 %v11843_v38  ;;  %9171 = vmatpush3.msra.mxu1 %v11718_v2  ;;  %v11875_v2 = vld [vmem:[%s10560_s15 + $0x288] sm:$0xff] }
 0x5e1   : > { %9172 = vmatprep.subr.mxu1 %v11727_v13 }
 0x5e2   : > { %9173 = vmatpush3.msra.mxu1 %v11727_v13  ;;  %v11879_v13 = vld [vmem:[%s10560_s15 + $0x290] sm:$0xff] }
 0x5e3   : > { %9071 = vmatmul.mubr.f32.gmra.mxu1 %v11851_v29  ;;  %9174 = vmatprep.subr.mxu1 %v11734_v5 }
 0x5e4   : > { %9073 = vmatprep.mubr.f32.mxu1 %v11855_v50  ;;  %9175 = vmatpush3.msra.mxu1 %v11734_v5  ;;  %v11886_v5 = vld [vmem:[%s10560_s15 + $0x298] sm:$0xff] }
 0x5e5   : > { %9176 = vmatprep.subr.mxu1 %v11743_v53 }
 0x5e6   : > { %9177 = vmatpush3.msra.mxu1 %v11743_v53  ;;  %v11902_v53 = vld [vmem:[%s10560_s15 + $0x2b8] sm:$0xff] }
 0x5e7   : > { %9074 = vmatmul.mubr.f32.gmra.mxu1 %v11863_v0  ;;  %9178 = vmatprep.subr.mxu1 %v11750_v7 }
 0x5e8   : > { %9076 = vmatprep.mubr.f32.mxu1 %v11867_v23  ;;  %9179 = vmatpush3.msra.mxu1 %v11750_v7  ;;  %v11910_v7 = vld [vmem:[%s10560_s15 + $0x2c8] sm:$0xff] }
 0x5e9   : > { %9180 = vmatprep.subr.mxu1 %v11759_v24 }
 0x5ea   : > { %9181 = vmatpush3.msra.mxu1 %v11759_v24  ;;  %v11926_v24 = vld [vmem:[%s10560_s15 + $0x2e8] sm:$0xff] }
 0x5eb   : > { %9077 = vmatmul.mubr.f32.gmra.mxu1 %v11875_v2 }
 0x5ec   : > { %9079 = vmatprep.mubr.f32.mxu1 %v11879_v13 }
 0x5ef   : > { %9080 = vmatmul.mubr.f32.gmra.mxu1 %v11886_v5 }
 0x5f0   : > { %9082 = vmatprep.mubr.f32.mxu1 %v11889_v18 }
 0x5f3   : > { %9083 = vmatmul.mubr.f32.gmra.mxu1 %v11894_v33 }
 0x5f4   : > { %9085 = vmatprep.mubr.f32.mxu1 %v11897_v43 }
 0x5f7   : > { %9086 = vmatmul.mubr.f32.gmra.mxu1 %v11902_v53 }
 0x5f8   : > { %9088 = vmatprep.mubr.f32.mxu1 %v11905_v46 }
 0x5fb   : > { %9089 = vmatmul.mubr.f32.gmra.mxu1 %v11910_v7 }
 0x5fc   : > { %9091 = vmatprep.mubr.f32.mxu1 %v11913_v4 }
 0x5ff   : > { %9092 = vmatmul.mubr.f32.gmra.mxu1 %v11918_v48 }
 0x600   : > { %9094 = vmatprep.mubr.f32.mxu1 %v11921_v15 }
 0x603   : > { %9095 = vmatmul.mubr.f32.gmra.mxu1 %v11926_v24 }
 0x604   : > { %9097 = vmatprep.mubr.f32.mxu1 %v11929_v20 }
 0x607   : > { %9098 = vmatmul.mubr.f32.gmra.mxu1 %v11934_v9 }
 0x64b   : > { %v11937_v10 = vpop.f32.mrf.mxu1 }
 0x64d   : > { %v11939_v30 = vpop.f32.mrf.mxu1 }
 0x64f   : > { %v11941_v6 = vpop.f32.mrf.mxu1 }
 0x651   : > { %v11943_v31 = vpop.f32.mrf.mxu1 }
 0x653   : > { %v11945_v63 = vpop.f32.mrf.mxu1 }
 0x655   : > { %v11947_v59 = vpop.f32.mrf.mxu1 }
 0x657   : > { %v11949_v27 = vpop.f32.mrf.mxu1 }
 0x659   : > { %v11951_v54 = vpop.f32.mrf.mxu1 }
 0x65b   : > { %v11953_v60 = vpop.f32.mrf.mxu1 }
 0x65c   : > { %13822 = vst [vmem:[#allocation24_spill] sm:$0xff] %v11953_v60 }
 0x65d   : > { %v11955_v58 = vpop.f32.mrf.mxu1 }
 0x65e   : > { %13823 = vst [vmem:[#allocation46_spill] sm:$0xff] %v11955_v58 }
 0x65f   : > { %v11957_v12 = vpop.f32.mrf.mxu1 }
 0x660   : > { %13824 = vst [vmem:[#allocation23_spill] sm:$0xff] %v11957_v12 }
 0x661   : > { %v11959_v41 = vpop.f32.mrf.mxu1 }
 0x662   : > { %13825 = vst [vmem:[#allocation45_spill] sm:$0xff] %v11959_v41 }
 0x663   : > { %v11961_v19 = vpop.f32.mrf.mxu1 }
 0x664   : > { %13826 = vst [vmem:[#allocation26_spill] sm:$0xff] %v11961_v19 }
 0x665   : > { %v11963_v32 = vpop.f32.mrf.mxu1 }
 0x666   : > { %13827 = vst [vmem:[#allocation48_spill] sm:$0xff] %v11963_v32 }
 0x667   : > { %v11965_v22 = vpop.f32.mrf.mxu1 }
 0x668   : > { %13828 = vst [vmem:[#allocation25_spill] sm:$0xff] %v11965_v22 }
 0x669   : > { %v11967_v14 = vpop.f32.mrf.mxu1 }
 0x66a   : > { %13829 = vst [vmem:[#allocation47_spill] sm:$0xff] %v11967_v14 }
 0x66b   : > { %v11969_v1 = vpop.f32.mrf.mxu1 }
 0x66c   : > { %13830 = vst [vmem:[#allocation28_spill] sm:$0xff] %v11969_v1 }
 0x66d   : > { %v11971_v34 = vpop.f32.mrf.mxu1 }
 0x66e   : > { %13831 = vst [vmem:[#allocation50_spill] sm:$0xff] %v11971_v34 }
 0x66f   : > { %v11973_v44 = vpop.f32.mrf.mxu1 }
 0x670   : > { %13832 = vst [vmem:[#allocation27_spill] sm:$0xff] %v11973_v44 }
 0x671   : > { %v11975_v28 = vpop.f32.mrf.mxu1 }
 0x672   : > { %13833 = vst [vmem:[#allocation49_spill] sm:$0xff] %v11975_v28 }
 0x673   : > { %v11977_v16 = vpop.f32.mrf.mxu1 }
 0x674   : > { %13834 = vst [vmem:[#allocation30_spill] sm:$0xff] %v11977_v16 }
 0x675   : > { %v11979_v3 = vpop.f32.mrf.mxu1 }
 0x676   : > { %13835 = vst [vmem:[#allocation52_spill] sm:$0xff] %v11979_v3 }
 0x677   : > { %v11981_v35 = vpop.f32.mrf.mxu1 }
 0x678   : > { %13836 = vst [vmem:[#allocation29_spill] sm:$0xff] %v11981_v35 }
 0x679   : > { %v11983_v62 = vpop.f32.mrf.mxu1 }
 0x67a   : > { %13837 = vst [vmem:[#allocation51_spill] sm:$0xff] %v11983_v62 }
 0x67b   : > { %v11985_v17 = vpop.f32.mrf.mxu1 }
 0x67c   : > { %13838 = vst [vmem:[#allocation32_spill] sm:$0xff] %v11985_v17 }
 0x67d   : > { %v11987_v51 = vpop.f32.mrf.mxu1 }
 0x67e   : > { %13839 = vst [vmem:[#allocation54_spill] sm:$0xff] %v11987_v51 }
 0x67f   : > { %v11989_v55 = vpop.f32.mrf.mxu1 }
 0x680   : > { %13840 = vst [vmem:[#allocation31_spill] sm:$0xff] %v11989_v55  ;;  %v10085_v55 = vld [vmem:[%s13655_s3] sm:$0xff] }
 0x681   : > { %v11991_v47 = vpop.f32.mrf.mxu1 }
 0x682   : > { %13841 = vst [vmem:[#allocation53_spill] sm:$0xff] %v11991_v47 }
 0x683   : > { %v11993_v45 = vpop.f32.mrf.mxu1 }
 0x684   : > { %13842 = vst [vmem:[#allocation34_spill] sm:$0xff] %v11993_v45 }
 0x685   : > { %v11995_v25 = vpop.f32.mrf.mxu1 }
 0x686   : > { %13843 = vst [vmem:[#allocation56_spill] sm:$0xff] %v11995_v25 }
 0x687   : > { %v11997_v57 = vpop.f32.mrf.mxu1 }
 0x688   : > { %13844 = vst [vmem:[#allocation33_spill] sm:$0xff] %v11997_v57 }
 0x689   : > { %v11999_v39 = vpop.f32.mrf.mxu1 }
 0x68a   : > { %13845 = vst [vmem:[#allocation55_spill] sm:$0xff] %v11999_v39 }
 0x68b   : > { %v9054_v3 = vpop.f32.mrf.mxu1 }
 0x68d   : > { %v3576_v35 = vpop.f32.mrf.mxu1 }
 0x68e   : > { %9102 = vmatprep.mubr.msk.f32.mxu0 %vm745_vm0, %v3576_v35 }
 0x68f   : > { %v9057_v62 = vpop.f32.mrf.mxu1  ;;  %9103 = vmatmul.mubr.msk.f32.vlgmr.msra.gmra.mxu0 %vm745_vm0, %v9054_v3 }
 0x690   : > { %9231 = vmatpush3.msra.mxu0 %v10085_v55 }
 0x691   : > { %v3586_v47 = vpop.f32.mrf.mxu1 }
 0x692   : > { %9105 = vmatprep.mubr.msk.f32.mxu0 %vm745_vm0, %v3586_v47 }
 0x693   : > { %v9060_v25 = vpop.f32.mrf.mxu1  ;;  %9106 = vmatmul.mubr.msk.f32.gmra.mxu0 %vm745_vm0, %v9057_v62 }
 0x695   : > { %v3596_v57 = vpop.f32.mrf.mxu1 }
 0x696   : > { %9108 = vmatprep.mubr.msk.f32.mxu0 %vm745_vm0, %v3596_v57 }
 0x697   : > { %v9063_v39 = vpop.f32.mrf.mxu1  ;;  %9109 = vmatmul.mubr.msk.f32.gmra.mxu0 %vm745_vm0, %v9060_v25 }
 0x699   : > { %v3606_v35 = vpop.f32.mrf.mxu1 }
 0x69a   : > { %9111 = vmatprep.mubr.msk.f32.mxu0 %vm745_vm0, %v3606_v35 }
 0x69b   : > { %v9066_v3 = vpop.f32.mrf.mxu1  ;;  %9112 = vmatmul.mubr.msk.f32.gmra.mxu0 %vm745_vm0, %v9063_v39 }
 0x69d   : > { %v3616_v45 = vpop.f32.mrf.mxu1 }
 0x69e   : > { %9114 = vmatprep.mubr.msk.f32.mxu0 %vm745_vm0, %v3616_v45 }
 0x69f   : > { %v9069_v55 = vpop.f32.mrf.mxu1  ;;  %9115 = vmatmul.mubr.msk.f32.gmra.mxu0 %vm745_vm0, %v9066_v3 }
 0x6a1   : > { %v3626_v47 = vpop.f32.mrf.mxu1 }
 0x6a2   : > { %9117 = vmatprep.mubr.msk.f32.mxu0 %vm745_vm0, %v3626_v47 }
 0x6a3   : > { %v9072_v62 = vpop.f32.mrf.mxu1  ;;  %9118 = vmatmul.mubr.msk.f32.gmra.mxu0 %vm745_vm0, %v9069_v55 }
 0x6a5   : > { %v3636_v57 = vpop.f32.mrf.mxu1 }
 0x6a6   : > { %9120 = vmatprep.mubr.msk.f32.mxu0 %vm745_vm0, %v3636_v57 }
 0x6a7   : > { %v9075_v25 = vpop.f32.mrf.mxu1  ;;  %9121 = vmatmul.mubr.msk.f32.gmra.mxu0 %vm745_vm0, %v9072_v62 }
 0x6a9   : > { %v3646_v35 = vpop.f32.mrf.mxu1 }
 0x6aa   : > { %9123 = vmatprep.mubr.msk.f32.mxu0 %vm745_vm0, %v3646_v35 }
 0x6ab   : > { %v9078_v39 = vpop.f32.mrf.mxu1  ;;  %9124 = vmatmul.mubr.msk.f32.gmra.mxu0 %vm745_vm0, %v9075_v25 }
 0x6ad   : > { %v3656_v45 = vpop.f32.mrf.mxu1 }
 0x6ae   : > { %9126 = vmatprep.mubr.msk.f32.mxu0 %vm745_vm0, %v3656_v45 }
 0x6af   : > { %v9081_v3 = vpop.f32.mrf.mxu1  ;;  %9127 = vmatmul.mubr.msk.f32.gmra.mxu0 %vm745_vm0, %v9078_v39 }
 0x6b1   : > { %v3666_v47 = vpop.f32.mrf.mxu1 }
 0x6b2   : > { %9129 = vmatprep.mubr.msk.f32.mxu0 %vm745_vm0, %v3666_v47 }
 0x6b3   : > { %v9084_v55 = vpop.f32.mrf.mxu1  ;;  %9130 = vmatmul.mubr.msk.f32.gmra.mxu0 %vm745_vm0, %v9081_v3 }
 0x6b5   : > { %v3676_v57 = vpop.f32.mrf.mxu1 }
 0x6b6   : > { %9132 = vmatprep.mubr.msk.f32.mxu0 %vm745_vm0, %v3676_v57 }
 0x6b7   : > { %v9087_v62 = vpop.f32.mrf.mxu1  ;;  %9133 = vmatmul.mubr.msk.f32.gmra.mxu0 %vm745_vm0, %v9084_v55 }
 0x6b9   : > { %v3686_v35 = vpop.f32.mrf.mxu1 }
 0x6ba   : > { %9135 = vmatprep.mubr.msk.f32.mxu0 %vm745_vm0, %v3686_v35 }
 0x6bb   : > { %v9090_v25 = vpop.f32.mrf.mxu1  ;;  %9136 = vmatmul.mubr.msk.f32.gmra.mxu0 %vm745_vm0, %v9087_v62  ;;  %v12036_v62 = vpop.f32.mrf.mxu0 }
 0x6bd   : > { %v3696_v45 = vpop.f32.mrf.mxu1 }
 0x6be   : > { %9138 = vmatprep.mubr.msk.f32.mxu0 %vm745_vm0, %v3696_v45 }
 0x6bf   : > { %v9093_v39 = vpop.f32.mrf.mxu1  ;;  %9139 = vmatmul.mubr.msk.f32.gmra.mxu0 %vm745_vm0, %v9090_v25  ;;  %v12038_v25 = vpop.f32.mrf.mxu0 }
 0x6c1   : > { %v3706_v47 = vpop.f32.mrf.mxu1  ;;  %v12040_v45 = vpop.f32.mrf.mxu0 }
 0x6c2   : > { %9141 = vmatprep.mubr.msk.f32.mxu0 %vm745_vm0, %v3706_v47 }
 0x6c3   : > { %v9096_v3 = vpop.f32.mrf.mxu1  ;;  %9142 = vmatmul.mubr.msk.f32.gmra.mxu0 %vm745_vm0, %v9093_v39  ;;  %v12042_v47 = vpop.f32.mrf.mxu0 }
 0x6c5   : > { %v3716_v57 = vpop.f32.mrf.mxu1  ;;  %v12044_v39 = vpop.f32.mrf.mxu0 }
 0x6c6   : > { %9144 = vmatprep.mubr.msk.f32.mxu0 %vm745_vm0, %v3716_v57 }
 0x6c7   : > { %v9099_v55 = vpop.f32.mrf.mxu1  ;;  %9145 = vmatmul.mubr.msk.f32.gmra.mxu0 %vm745_vm0, %v9096_v3  ;;  %v12046_v51 = vpop.f32.mrf.mxu0 }
 0x6c9   : > { %v3726_v35 = vpop.f32.mrf.mxu1  ;;  %v12048_v57 = vpop.f32.mrf.mxu0 }
 0x6ca   : > { %9147 = vmatprep.mubr.msk.f32.mxu0 %vm745_vm0, %v3726_v35 }
 0x6cb   : > { %9148 = vmatmul.mubr.msk.f32.gmra.mxu0 %vm745_vm0, %v9099_v55  ;;  %v12050_v3 = vpop.f32.mrf.mxu0 }
 0x6cd   : > { %v12052_v17 = vpop.f32.mrf.mxu0 }
 0x6ce   : > { %13846 = vst [vmem:[#allocation36_spill] sm:$0xff] %v12052_v17 }
 0x6cf   : > { %v12054_v35 = vpop.f32.mrf.mxu0 }
 0x6d0   : > { %13847 = vst [vmem:[#allocation58_spill] sm:$0xff] %v12054_v35 }
 0x6d1   : > { %v12056_v55 = vpop.f32.mrf.mxu0 }
 0x6d2   : > { %13848 = vst [vmem:[#allocation35_spill] sm:$0xff] %v12056_v55 }
 0x6d3   : > { %v12058_v16 = vpop.f32.mrf.mxu0 }
 0x6d4   : > { %13849 = vst [vmem:[#allocation57_spill] sm:$0xff] %v12058_v16 }
 0x6d5   : > { %v12060_v28 = vpop.f32.mrf.mxu0 }
 0x6d6   : > { %13850 = vst [vmem:[#allocation38_spill] sm:$0xff] %v12060_v28 }
 0x6d7   : > { %v12062_v44 = vpop.f32.mrf.mxu0 }
 0x6d8   : > { %13851 = vst [vmem:[#allocation60_spill] sm:$0xff] %v12062_v44 }
 0x6d9   : > { %v12064_v34 = vpop.f32.mrf.mxu0 }
 0x6da   : > { %13852 = vst [vmem:[#allocation37_spill] sm:$0xff] %v12064_v34 }
 0x6db   : > { %v12066_v1 = vpop.f32.mrf.mxu0 }
 0x6dc   : > { %13853 = vst [vmem:[#allocation59_spill] sm:$0xff] %v12066_v1 }
 0x6dd   : > { %v12068_v14 = vpop.f32.mrf.mxu0 }
 0x6de   : > { %13854 = vst [vmem:[#allocation40_spill] sm:$0xff] %v12068_v14 }
 0x6df   : > { %v12070_v22 = vpop.f32.mrf.mxu0 }
 0x6e0   : > { %13855 = vst [vmem:[#allocation39_spill] sm:$0xff] %v12070_v22 }
 0x6e1   : > { %v12072_v32 = vpop.f32.mrf.mxu0 }
 0x6e2   : > { %13856 = vst [vmem:[#allocation61_spill] sm:$0xff] %v12072_v32 }
 0x6e3   : > { %v12074_v19 = vpop.f32.mrf.mxu0 }
 0x6e4   : > { %13857 = vst [vmem:[#allocation42_spill] sm:$0xff] %v12074_v19 }
 0x6e5   : > { %v12076_v41 = vpop.f32.mrf.mxu0 }
 0x6e6   : > { %13858 = vst [vmem:[#allocation63_spill] sm:$0xff] %v12076_v41 }
 0x6e7   : > { %v12078_v55 = vpop.f32.mrf.mxu0 }
 0x6e8   : > { %13859 = vst [vmem:[#allocation41_spill] sm:$0xff] %v12078_v55 }
 0x6e9   : > { %v12080_v16 = vpop.f32.mrf.mxu0 }
 0x6ea   : > { %13860 = vst [vmem:[#allocation62_spill] sm:$0xff] %v12080_v16 }
 0x6eb   : > { %v12082_v28 = vpop.f32.mrf.mxu0 }
 0x6ec   : > { %13861 = vst [vmem:[#allocation44_spill] sm:$0xff] %v12082_v28 }
 0x6ed   : > { %v12084_v44 = vpop.f32.mrf.mxu0 }
 0x6ee   : > { %13862 = vst [vmem:[#allocation65_spill] sm:$0xff] %v12084_v44 }
 0x6ef   : > { %v12086_v34 = vpop.f32.mrf.mxu0 }
 0x6f0   : > { %13863 = vst [vmem:[#allocation43_spill] sm:$0xff] %v12086_v34 }
 0x6f1   : > { %v12088_v1 = vpop.f32.mrf.mxu0 }
 0x6f2   : > { %13864 = vst [vmem:[#allocation64_spill] sm:$0xff] %v12088_v1 }
 0x6f3   : > { %v12090_v14 = vpop.f32.mrf.mxu0 }
 0x6f4   : > { %13865 = vst [vmem:[#allocation66_spill] sm:$0xff] %v12090_v14 }
 0x6f5   : > { %v12092_v22 = vpop.f32.mrf.mxu0 }
 0x6f6   : > { %13866 = vst [vmem:[#allocation67_spill] sm:$0xff] %v12092_v22 }
 0x6f7   : > { %v12094_v32 = vpop.f32.mrf.mxu0 }
 0x6f8   : > { %13867 = vst [vmem:[#allocation69_spill] sm:$0xff] %v12094_v32 }
 0x6f9   : > { %v12096_v19 = vpop.f32.mrf.mxu0 }
 0x6fa   : > { %13868 = vst [vmem:[#allocation68_spill] sm:$0xff] %v12096_v19 }
 0x6fb   : > { %v12098_v41 = vpop.f32.mrf.mxu0 }
 0x6fc   : > { %13869 = vst [vmem:[#allocation71_spill] sm:$0xff] %v12098_v41 }
 0x74f   : > { %v9104_v55 = vpop.f32.mrf.mxu0 }
 0x750   : > { %v12101_v16 = vsub.f32 %v11783_v42, %v9104_v55 }
 0x751   : > { %v3897_v28 = vpop.f32.mrf.mxu0 }
 0x752   : > { %v12104_v44 = vsub.f32 %v11779_v36, %v3897_v28  ;;  %v4089_v22 = vmul.f32 %v12101_v16, %v12101_v16 }
 0x753   : > { %v9107_v34 = vpop.f32.mrf.mxu0 }
 0x754   : > { %v4088_v14 = vmul.f32 %v12104_v44, %v12104_v44  ;;  %v12111_v32 = vsub.f32 %v11791_v49, %v9107_v34 }
 0x755   : > { %v3907_v19 = vpop.f32.mrf.mxu0 }
 0x756   : > { %v12114_v41 = vsub.f32 %v11786_v37, %v3907_v19  ;;  %9182 = vmatprep.mubr.f32.mxu1 %v4088_v14  ;;  %v4091_v28 = vmul.f32 %v12111_v32, %v12111_v32 }
 0x757   : > { %v9110_v42 = vpop.f32.mrf.mxu0  ;;  %9183 = vmatmul.mubr.f32.vlgmr.msra.gmra.mxu1 %v4089_v22 }
 0x758   : > { %v4090_v36 = vmul.f32 %v12114_v41, %v12114_v41  ;;  %v12121_v55 = vsub.f32 %v11803_v40, %v9110_v42 }
 0x759   : > { %v3917_v1 = vpop.f32.mrf.mxu0 }
 0x75a   : > { %v12124_v49 = vsub.f32 %v11795_v56, %v3917_v1  ;;  %9185 = vmatprep.mubr.f32.mxu1 %v4090_v36  ;;  %v4093_v19 = vmul.f32 %v12121_v55, %v12121_v55 }
 0x75b   : > { %v9113_v34 = vpop.f32.mrf.mxu0  ;;  %9186 = vmatmul.mubr.f32.gmra.mxu1 %v4091_v28 }
 0x75c   : > { %v4092_v37 = vmul.f32 %v12124_v49, %v12124_v49  ;;  %v12131_v22 = vsub.f32 %v11815_v52, %v9113_v34 }
 0x75d   : > { %v3927_v14 = vpop.f32.mrf.mxu0 }
 0x75e   : > { %v12134_v40 = vsub.f32 %v11807_v8, %v3927_v14  ;;  %9188 = vmatprep.mubr.f32.mxu1 %v4092_v37  ;;  %v4095_v1 = vmul.f32 %v12131_v22, %v12131_v22 }
 0x75f   : > { %v9116_v42 = vpop.f32.mrf.mxu0  ;;  %9189 = vmatmul.mubr.f32.gmra.mxu1 %v4093_v19 }
 0x760   : > { %v4094_v56 = vmul.f32 %v12134_v40, %v12134_v40  ;;  %v12141_v36 = vsub.f32 %v11827_v61, %v9116_v42 }
 0x761   : > { %v3937_v28 = vpop.f32.mrf.mxu0 }
 0x762   : > { %v12144_v52 = vsub.f32 %v11819_v26, %v3937_v28  ;;  %9191 = vmatprep.mubr.f32.mxu1 %v4094_v56  ;;  %v4097_v37 = vmul.f32 %v12141_v36, %v12141_v36 }
 0x763   : > { %v9119_v34 = vpop.f32.mrf.mxu0  ;;  %9192 = vmatmul.mubr.f32.gmra.mxu1 %v4095_v1 }
 0x764   : > { %v4096_v8 = vmul.f32 %v12144_v52, %v12144_v52  ;;  %v12151_v19 = vsub.f32 %v11839_v21, %v9119_v34 }
 0x765   : > { %v3947_v14 = vpop.f32.mrf.mxu0 }
 0x766   : > { %v12154_v61 = vsub.f32 %v11831_v11, %v3947_v14  ;;  %9194 = vmatprep.mubr.f32.mxu1 %v4096_v8  ;;  %v4099_v56 = vmul.f32 %v12151_v19, %v12151_v19 }
 0x767   : > { %v9122_v42 = vpop.f32.mrf.mxu0  ;;  %9195 = vmatmul.mubr.f32.gmra.mxu1 %v4097_v37 }
 0x768   : > { %v4098_v26 = vmul.f32 %v12154_v61, %v12154_v61  ;;  %v12161_v1 = vsub.f32 %v11851_v29, %v9122_v42 }
 0x769   : > { %v3957_v28 = vpop.f32.mrf.mxu0 }
 0x76a   : > { %v12164_v21 = vsub.f32 %v11843_v38, %v3957_v28  ;;  %9197 = vmatprep.mubr.f32.mxu1 %v4098_v26  ;;  %v4101_v8 = vmul.f32 %v12161_v1, %v12161_v1 }
 0x76b   : > { %v9125_v34 = vpop.f32.mrf.mxu0  ;;  %9198 = vmatmul.mubr.f32.gmra.mxu1 %v4099_v56 }
 0x76c   : > { %v4100_v11 = vmul.f32 %v12164_v21, %v12164_v21  ;;  %v12171_v37 = vsub.f32 %v11863_v0, %v9125_v34 }
 0x76d   : > { %v3967_v14 = vpop.f32.mrf.mxu0 }
 0x76e   : > { %v12174_v29 = vsub.f32 %v11855_v50, %v3967_v14  ;;  %9200 = vmatprep.mubr.f32.mxu1 %v4100_v11  ;;  %v4103_v26 = vmul.f32 %v12171_v37, %v12171_v37 }
 0x76f   : > { %v9128_v42 = vpop.f32.mrf.mxu0  ;;  %9201 = vmatmul.mubr.f32.gmra.mxu1 %v4101_v8 }
 0x770   : > { %v4102_v38 = vmul.f32 %v12174_v29, %v12174_v29  ;;  %v12181_v56 = vsub.f32 %v11875_v2, %v9128_v42 }
 0x771   : > { %v3977_v28 = vpop.f32.mrf.mxu0 }
 0x772   : > { %v12184_v0 = vsub.f32 %v11867_v23, %v3977_v28  ;;  %9203 = vmatprep.mubr.f32.mxu1 %v4102_v38  ;;  %v4105_v11 = vmul.f32 %v12181_v56, %v12181_v56 }
 0x773   : > { %v9131_v34 = vpop.f32.mrf.mxu0  ;;  %9204 = vmatmul.mubr.f32.gmra.mxu1 %v4103_v26 }
 0x774   : > { %v4104_v50 = vmul.f32 %v12184_v0, %v12184_v0  ;;  %v12191_v8 = vsub.f32 %v11886_v5, %v9131_v34 }
 0x775   : > { %v3987_v14 = vpop.f32.mrf.mxu0 }
 0x776   : > { %v12194_v2 = vsub.f32 %v11879_v13, %v3987_v14  ;;  %9206 = vmatprep.mubr.f32.mxu1 %v4104_v50  ;;  %v4107_v38 = vmul.f32 %v12191_v8, %v12191_v8 }
 0x777   : > { %v9134_v42 = vpop.f32.mrf.mxu0  ;;  %9207 = vmatmul.mubr.f32.gmra.mxu1 %v4105_v11 }
 0x778   : > { %v4106_v23 = vmul.f32 %v12194_v2, %v12194_v2  ;;  %v12201_v26 = vsub.f32 %v11894_v33, %v9134_v42 }
 0x779   : > { %v3997_v28 = vpop.f32.mrf.mxu0 }
 0x77a   : > { %v12204_v5 = vsub.f32 %v11889_v18, %v3997_v28  ;;  %9209 = vmatprep.mubr.f32.mxu1 %v4106_v23  ;;  %v4109_v50 = vmul.f32 %v12201_v26, %v12201_v26 }
 0x77b   : > { %v9137_v34 = vpop.f32.mrf.mxu0  ;;  %9210 = vmatmul.mubr.f32.gmra.mxu1 %v4107_v38 }
 0x77c   : > { %v4108_v13 = vmul.f32 %v12204_v5, %v12204_v5  ;;  %v12211_v11 = vsub.f32 %v11902_v53, %v9137_v34 }
 0x77d   : > { %v4007_v14 = vpop.f32.mrf.mxu0 }
 0x77e   : > { %v12214_v33 = vsub.f32 %v11897_v43, %v4007_v14  ;;  %9212 = vmatprep.mubr.f32.mxu1 %v4108_v13  ;;  %v4111_v23 = vmul.f32 %v12211_v11, %v12211_v11 }
 0x77f   : > { %v9140_v42 = vpop.f32.mrf.mxu0  ;;  %9213 = vmatmul.mubr.f32.gmra.mxu1 %v4109_v50 }
 0x780   : > { %v4110_v18 = vmul.f32 %v12214_v33, %v12214_v33  ;;  %v12221_v38 = vsub.f32 %v11910_v7, %v9140_v42 }
 0x781   : > { %v4017_v28 = vpop.f32.mrf.mxu0 }
 0x782   : > { %v12224_v53 = vsub.f32 %v11905_v46, %v4017_v28  ;;  %9215 = vmatprep.mubr.f32.mxu1 %v4110_v18  ;;  %v4113_v13 = vmul.f32 %v12221_v38, %v12221_v38 }
 0x783   : > { %v9143_v34 = vpop.f32.mrf.mxu0  ;;  %9216 = vmatmul.mubr.f32.gmra.mxu1 %v4111_v23 }
 0x784   : > { %v4112_v43 = vmul.f32 %v12224_v53, %v12224_v53  ;;  %v12231_v50 = vsub.f32 %v11918_v48, %v9143_v34 }
 0x785   : > { %v4027_v14 = vpop.f32.mrf.mxu0 }
 0x786   : > { %v12234_v7 = vsub.f32 %v11913_v4, %v4027_v14  ;;  %9218 = vmatprep.mubr.f32.mxu1 %v4112_v43  ;;  %v4115_v18 = vmul.f32 %v12231_v50, %v12231_v50 }
 0x787   : > { %v9146_v42 = vpop.f32.mrf.mxu0  ;;  %9219 = vmatmul.mubr.f32.gmra.mxu1 %v4113_v13 }
 0x788   : > { %v4114_v46 = vmul.f32 %v12234_v7, %v12234_v7  ;;  %v12241_v23 = vsub.f32 %v11926_v24, %v9146_v42 }
 0x789   : > { %v4037_v28 = vpop.f32.mrf.mxu0 }
 0x78a   : > { %v12244_v48 = vsub.f32 %v11921_v15, %v4037_v28  ;;  %9221 = vmatprep.mubr.f32.mxu1 %v4114_v46  ;;  %v4117_v43 = vmul.f32 %v12241_v23, %v12241_v23  ;;  %v4746_v46 = vld [vmem:[#allocation7 + $0x178] sm:$0xff]  ;;  %v4743_v28 = vld [vmem:[#allocation7 + $0x160] sm:$0xff] }
 0x78b   : > { %v9149_v34 = vpop.f32.mrf.mxu0  ;;  %9222 = vmatmul.mubr.f32.gmra.mxu1 %v4115_v18  ;;  %v4745_v18 = vld [vmem:[#allocation7 + $0x170] sm:$0xff]  ;;  %9280 = vmatprep.subr.mxu1 %v4746_v46 }
 0x78c   : > { %v4116_v4 = vmul.f32 %v12244_v48, %v12244_v48  ;;  %v12251_v13 = vsub.f32 %v11934_v9, %v9149_v34  ;;  %9281 = vmatpush3.msra.mxu1 %v4746_v46  ;;  %v4744_v9 = vld [vmem:[#allocation7 + $0x168] sm:$0xff]  ;;  %v4741_v34 = vld [vmem:[#allocation7 + $0x150] sm:$0xff]  ;;  %v4735_v46 = vld [vmem:[#allocation7 + $0x120] sm:$0xff] }
 0x78d   : > { %v4047_v14 = vpop.f32.mrf.mxu0  ;;  %9282 = vmatprep.subr.mxu1 %v4745_v18 }
 0x78e   : > { %v12254_v24 = vsub.f32 %v11929_v20, %v4047_v14  ;;  %9224 = vmatprep.mubr.f32.mxu1 %v4116_v4  ;;  %v4119_v42 = vmul.f32 %v12251_v13, %v12251_v13  ;;  %9283 = vmatpush3.msra.mxu1 %v4745_v18  ;;  %v4742_v20 = vld [vmem:[#allocation7 + $0x158] sm:$0xff]  ;;  %v4740_v4 = vld [vmem:[#allocation7 + $0x148] sm:$0xff] }
 0x78f   : > { %9225 = vmatmul.mubr.f32.gmra.mxu1 %v4117_v43  ;;  %9284 = vmatprep.subr.mxu1 %v4744_v9  ;;  %v4739_v43 = vld [vmem:[#allocation7 + $0x140] sm:$0xff]  ;;  %v4738_v14 = vld [vmem:[#allocation7 + $0x138] sm:$0xff] }
 0x790   : > { %v4118_v15 = vmul.f32 %v12254_v24, %v12254_v24  ;;  %9285 = vmatpush3.msra.mxu1 %v4744_v9  ;;  %v4734_v18 = vld [vmem:[#allocation7 + $0x118] sm:$0xff]  ;;  %v4733_v9 = vld [vmem:[#allocation7 + $0x110] sm:$0xff] }
 0x791   : > { %9286 = vmatprep.subr.mxu1 %v4743_v28 }
 0x792   : > { %9227 = vmatprep.mubr.f32.mxu1 %v4118_v15  ;;  %9287 = vmatpush3.msra.mxu1 %v4743_v28  ;;  %v4737_v15 = vld [vmem:[#allocation7 + $0x130] sm:$0xff]  ;;  %v4732_v28 = vld [vmem:[#allocation7 + $0x108] sm:$0xff] }
 0x793   : > { %9228 = vmatmul.mubr.f32.gmra.mxu1 %v4119_v42  ;;  %9288 = vmatprep.subr.mxu1 %v4742_v20  ;;  %v4736_v42 = vld [vmem:[#allocation7 + $0x128] sm:$0xff] }
 0x794   : > { %9289 = vmatpush3.msra.mxu1 %v4742_v20 }
 0x795   : > { %9290 = vmatprep.subr.mxu1 %v4741_v34 }
 0x796   : > { %9291 = vmatpush3.msra.mxu1 %v4741_v34 }
 0x797   : > { %9292 = vmatprep.subr.mxu1 %v4740_v4 }
 0x798   : > { %9293 = vmatpush3.msra.mxu1 %v4740_v4 }
 0x799   : > { %9294 = vmatprep.subr.mxu1 %v4739_v43 }
 0x79a   : > { %9295 = vmatpush3.msra.mxu1 %v4739_v43 }
 0x79b   : > { %9296 = vmatprep.subr.mxu1 %v4738_v14 }
 0x79c   : > { %9297 = vmatpush3.msra.mxu1 %v4738_v14 }
 0x79d   : > { %9298 = vmatprep.subr.mxu1 %v4737_v15 }
 0x79e   : > { %9299 = vmatpush3.msra.mxu1 %v4737_v15 }
 0x79f   : > { %9300 = vmatprep.subr.mxu1 %v4736_v42 }
 0x7a0   : > { %9301 = vmatpush3.msra.mxu1 %v4736_v42 }
 0x7a1   : > { %9302 = vmatprep.subr.mxu1 %v4735_v46 }
 0x7a2   : > { %9303 = vmatpush3.msra.mxu1 %v4735_v46 }
 0x7a3   : > { %9304 = vmatprep.subr.mxu1 %v4734_v18 }
 0x7a4   : > { %9305 = vmatpush3.msra.mxu1 %v4734_v18 }
 0x7a5   : > { %9306 = vmatprep.subr.mxu1 %v4733_v9 }
 0x7a6   : > { %9307 = vmatpush3.msra.mxu1 %v4733_v9 }
 0x7a7   : > { %9308 = vmatprep.subr.mxu1 %v4732_v28 }
 0x7a8   : > { %9309 = vmatpush3.msra.mxu1 %v4732_v28 }
 0x817   : > { %v9184_v20 = vpop.f32.mrf.mxu1 }
 0x818   : > { %v4192_v34 = vadd.f32 1e-05, %v9184_v20 }
 0x819   : > { %v4186_v4 = vpop.f32.mrf.mxu1 }
 0x81a   : > { %v4187_v43 = vadd.f32 1e-05, %v4186_v4 }
 0x81b   : > { %v9187_v14 = vpop.f32.mrf.mxu1 }
 0x81c   : > { %9812 = vrsqrt.f32 %v4187_v43  ;;  %v4202_v15 = vadd.f32 1e-05, %v9187_v14 }
 0x81d   : > { %9814 = vrsqrt.f32 %v4192_v34  ;;  %v4196_v42 = vpop.f32.mrf.mxu1 }
 0x81e   : > { %v4197_v12 = vadd.f32 1e-05, %v4196_v42 }
 0x81f   : > { %v9190_v35 = vpop.f32.mrf.mxu1 }
 0x820   : > { %9816 = vrsqrt.f32 %v4197_v12  ;;  %v4212_v46 = vadd.f32 1e-05, %v9190_v35 }
 0x821   : > { %9818 = vrsqrt.f32 %v4202_v15  ;;  %v4206_v18 = vpop.f32.mrf.mxu1 }
 0x822   : > { %v4207_v58 = vadd.f32 1e-05, %v4206_v18 }
 0x823   : > { %v9193_v17 = vpop.f32.mrf.mxu1 }
 0x824   : > { %9820 = vrsqrt.f32 %v4207_v58  ;;  %v4222_v9 = vadd.f32 1e-05, %v9193_v17 }
 0x825   : > { %9822 = vrsqrt.f32 %v4212_v46  ;;  %v4216_v28 = vpop.f32.mrf.mxu1 }
 0x826   : > { %v4217_v20 = vadd.f32 1e-05, %v4216_v28 }
 0x827   : > { %v9196_v60 = vpop.f32.mrf.mxu1 }
 0x828   : > { %9824 = vrsqrt.f32 %v4217_v20  ;;  %v4232_v34 = vadd.f32 1e-05, %v9196_v60 }
 0x829   : > { %v9813_v4 = vpop.eup %9812  ;;  %9826 = vrsqrt.f32 %v4222_v9  ;;  %v4226_v43 = vpop.f32.mrf.mxu1 }
 0x82a   : > { %v9815_v14 = vpop.eup %9814  ;;  %v4227_v42 = vadd.f32 1e-05, %v4226_v43  ;;  %9232 = vmatprep.mubr.msk.f32.mxu0 %vm745_vm0, %v9813_v4 }
 0x82b   : > { %v9199_v12 = vpop.f32.mrf.mxu1  ;;  %9233 = vmatmul.mubr.msk.f32.vlgmr.msra.gmra.mxu0 %vm745_vm0, %v9815_v14 }
 0x82c   : > { %9828 = vrsqrt.f32 %v4227_v42  ;;  %v4242_v58 = vadd.f32 1e-05, %v9199_v12 }
 0x82d   : > { %v9817_v35 = vpop.eup %9816  ;;  %9830 = vrsqrt.f32 %v4232_v34  ;;  %v4236_v17 = vpop.f32.mrf.mxu1 }
 0x82e   : > { %v9819_v15 = vpop.eup %9818  ;;  %v4237_v46 = vadd.f32 1e-05, %v4236_v17  ;;  %9235 = vmatprep.mubr.msk.f32.mxu0 %vm745_vm0, %v9817_v35 }
 0x82f   : > { %v9202_v18 = vpop.f32.mrf.mxu1  ;;  %9236 = vmatmul.mubr.msk.f32.gmra.mxu0 %vm745_vm0, %v9819_v15 }
 0x830   : > { %9832 = vrsqrt.f32 %v4237_v46  ;;  %v4252_v9 = vadd.f32 1e-05, %v9202_v18 }
 0x831   : > { %v9821_v60 = vpop.eup %9820  ;;  %9834 = vrsqrt.f32 %v4242_v58  ;;  %v4246_v28 = vpop.f32.mrf.mxu1 }
 0x832   : > { %v9823_v20 = vpop.eup %9822  ;;  %v4247_v4 = vadd.f32 1e-05, %v4246_v28  ;;  %9238 = vmatprep.mubr.msk.f32.mxu0 %vm745_vm0, %v9821_v60 }
 0x833   : > { %v9205_v43 = vpop.f32.mrf.mxu1  ;;  %9239 = vmatmul.mubr.msk.f32.gmra.mxu0 %vm745_vm0, %v9823_v20 }
 0x834   : > { %9836 = vrsqrt.f32 %v4247_v4  ;;  %v4262_v14 = vadd.f32 1e-05, %v9205_v43 }
 0x835   : > { %v9825_v34 = vpop.eup %9824  ;;  %9838 = vrsqrt.f32 %v4252_v9  ;;  %v4256_v42 = vpop.f32.mrf.mxu1 }
 0x836   : > { %v9827_v12 = vpop.eup %9826  ;;  %v4257_v35 = vadd.f32 1e-05, %v4256_v42  ;;  %9241 = vmatprep.mubr.msk.f32.mxu0 %vm745_vm0, %v9825_v34 }
 0x837   : > { %v9208_v17 = vpop.f32.mrf.mxu1  ;;  %9242 = vmatmul.mubr.msk.f32.gmra.mxu0 %vm745_vm0, %v9827_v12 }
 0x838   : > { %9840 = vrsqrt.f32 %v4257_v35  ;;  %v4272_v15 = vadd.f32 1e-05, %v9208_v17 }
 0x839   : > { %v9829_v58 = vpop.eup %9828  ;;  %9842 = vrsqrt.f32 %v4262_v14  ;;  %v4266_v46 = vpop.f32.mrf.mxu1 }
 0x83a   : > { %v9831_v18 = vpop.eup %9830  ;;  %v4267_v60 = vadd.f32 1e-05, %v4266_v46  ;;  %9244 = vmatprep.mubr.msk.f32.mxu0 %vm745_vm0, %v9829_v58 }
 0x83b   : > { %v9211_v28 = vpop.f32.mrf.mxu1  ;;  %9245 = vmatmul.mubr.msk.f32.gmra.mxu0 %vm745_vm0, %v9831_v18 }
 0x83c   : > { %9844 = vrsqrt.f32 %v4267_v60  ;;  %v4282_v20 = vadd.f32 1e-05, %v9211_v28 }
 0x83d   : > { %v9833_v9 = vpop.eup %9832  ;;  %9846 = vrsqrt.f32 %v4272_v15  ;;  %v4276_v4 = vpop.f32.mrf.mxu1 }
 0x83e   : > { %v9835_v43 = vpop.eup %9834  ;;  %v4277_v34 = vadd.f32 1e-05, %v4276_v4  ;;  %9247 = vmatprep.mubr.msk.f32.mxu0 %vm745_vm0, %v9833_v9 }
 0x83f   : > { %v9214_v42 = vpop.f32.mrf.mxu1  ;;  %9248 = vmatmul.mubr.msk.f32.gmra.mxu0 %vm745_vm0, %v9835_v43 }
 0x840   : > { %9848 = vrsqrt.f32 %v4277_v34  ;;  %v4292_v12 = vadd.f32 1e-05, %v9214_v42 }
 0x841   : > { %v9837_v14 = vpop.eup %9836  ;;  %9850 = vrsqrt.f32 %v4282_v20  ;;  %v4286_v35 = vpop.f32.mrf.mxu1 }
 0x842   : > { %v9839_v17 = vpop.eup %9838  ;;  %v4287_v58 = vadd.f32 1e-05, %v4286_v35  ;;  %9250 = vmatprep.mubr.msk.f32.mxu0 %vm745_vm0, %v9837_v14 }
 0x843   : > { %v9217_v46 = vpop.f32.mrf.mxu1  ;;  %9251 = vmatmul.mubr.msk.f32.gmra.mxu0 %vm745_vm0, %v9839_v17 }
 0x844   : > { %9852 = vrsqrt.f32 %v4287_v58  ;;  %v4302_v18 = vadd.f32 1e-05, %v9217_v46 }
 0x845   : > { %v9841_v15 = vpop.eup %9840  ;;  %9854 = vrsqrt.f32 %v4292_v12  ;;  %v4296_v60 = vpop.f32.mrf.mxu1 }
 0x846   : > { %v9843_v28 = vpop.eup %9842  ;;  %v4297_v9 = vadd.f32 1e-05, %v4296_v60  ;;  %9253 = vmatprep.mubr.msk.f32.mxu0 %vm745_vm0, %v9841_v15 }
 0x847   : > { %v9220_v4 = vpop.f32.mrf.mxu1  ;;  %9254 = vmatmul.mubr.msk.f32.gmra.mxu0 %vm745_vm0, %v9843_v28 }
 0x848   : > { %9856 = vrsqrt.f32 %v4297_v9  ;;  %v4312_v43 = vadd.f32 1e-05, %v9220_v4 }
 0x849   : > { %v9845_v20 = vpop.eup %9844  ;;  %9858 = vrsqrt.f32 %v4302_v18  ;;  %v4306_v34 = vpop.f32.mrf.mxu1 }
 0x84a   : > { %v9847_v42 = vpop.eup %9846  ;;  %v4307_v14 = vadd.f32 1e-05, %v4306_v34  ;;  %9256 = vmatprep.mubr.msk.f32.mxu0 %vm745_vm0, %v9845_v20 }
 0x84b   : > { %v9223_v35 = vpop.f32.mrf.mxu1  ;;  %9257 = vmatmul.mubr.msk.f32.gmra.mxu0 %vm745_vm0, %v9847_v42 }
 0x84c   : > { %9860 = vrsqrt.f32 %v4307_v14  ;;  %v4322_v17 = vadd.f32 1e-05, %v9223_v35 }
 0x84d   : > { %v9849_v12 = vpop.eup %9848  ;;  %9862 = vrsqrt.f32 %v4312_v43  ;;  %v4316_v58 = vpop.f32.mrf.mxu1 }
 0x84e   : > { %v9851_v46 = vpop.eup %9850  ;;  %v4317_v15 = vadd.f32 1e-05, %v4316_v58  ;;  %9259 = vmatprep.mubr.msk.f32.mxu0 %vm745_vm0, %v9849_v12 }
 0x84f   : > { %v9226_v60 = vpop.f32.mrf.mxu1  ;;  %9260 = vmatmul.mubr.msk.f32.gmra.mxu0 %vm745_vm0, %v9851_v46 }
 0x850   : > { %9864 = vrsqrt.f32 %v4317_v15  ;;  %v4332_v28 = vadd.f32 1e-05, %v9226_v60 }
 0x851   : > { %v9853_v18 = vpop.eup %9852  ;;  %9866 = vrsqrt.f32 %v4322_v17  ;;  %v4326_v9 = vpop.f32.mrf.mxu1 }
 0x852   : > { %v9855_v4 = vpop.eup %9854  ;;  %v4327_v20 = vadd.f32 1e-05, %v4326_v9  ;;  %9262 = vmatprep.mubr.msk.f32.mxu0 %vm745_vm0, %v9853_v18 }
 0x853   : > { %v9229_v34 = vpop.f32.mrf.mxu1  ;;  %9263 = vmatmul.mubr.msk.f32.gmra.mxu0 %vm745_vm0, %v9855_v4  ;;  %v4731_v4 = vld [vmem:[#allocation7 + $0x100] sm:$0xff] }
 0x854   : > { %9868 = vrsqrt.f32 %v4327_v20  ;;  %v4342_v42 = vadd.f32 1e-05, %v9229_v34  ;;  %9310 = vmatprep.subr.mxu1 %v4731_v4  ;;  %v5346_v20 = vld [vmem:[%s13659_s7 + $0x78] sm:$0xff]  ;;  %v5345_v34 = vld [vmem:[%s13659_s7 + $0x70] sm:$0xff] }
 0x855   : > { %v9857_v43 = vpop.eup %9856  ;;  %9870 = vrsqrt.f32 %v4332_v28  ;;  %v4336_v14 = vpop.f32.mrf.mxu1  ;;  %9311 = vmatpush3.msra.mxu1 %v4731_v4  ;;  %9360 = vmatprep.subr.mxu0 %v5346_v20 }
 0x856   : > { %v9859_v35 = vpop.eup %9858  ;;  %v4337_v12 = vadd.f32 1e-05, %v4336_v14  ;;  %9265 = vmatprep.mubr.msk.f32.mxu0 %vm745_vm0, %v9857_v43  ;;  %9361 = vmatpush3.msra.mxu0 %v5346_v20  ;;  %v5344_v43 = vld [vmem:[%s13659_s7 + $0x68] sm:$0xff]  ;;  %v5342_v14 = vld [vmem:[%s13659_s7 + $0x58] sm:$0xff] }
 0x857   : > { %9266 = vmatmul.mubr.msk.f32.gmra.mxu0 %vm745_vm0, %v9859_v35  ;;  %9362 = vmatprep.subr.mxu0 %v5345_v34  ;;  %v5341_v35 = vld [vmem:[%s13659_s7 + $0x50] sm:$0xff] }
 0x858   : > { %9872 = vrsqrt.f32 %v4337_v12  ;;  %9363 = vmatpush3.msra.mxu0 %v5345_v34  ;;  %v5340_v12 = vld [vmem:[%s13659_s7 + $0x48] sm:$0xff] }
 0x859   : > { %v9861_v17 = vpop.eup %9860  ;;  %9874 = vrsqrt.f32 %v4342_v42  ;;  %v5343_v42 = vld [vmem:[%s13659_s7 + $0x60] sm:$0xff]  ;;  %9364 = vmatprep.subr.mxu0 %v5344_v43 }
 0x85a   : > { %v9863_v58 = vpop.eup %9862  ;;  %9268 = vmatprep.mubr.msk.f32.mxu0 %vm745_vm0, %v9861_v17  ;;  %9365 = vmatpush3.msra.mxu0 %v5344_v43  ;;  %v5339_v17 = vld [vmem:[%s13659_s7 + $0x40] sm:$0xff] }
 0x85b   : > { %9269 = vmatmul.mubr.msk.f32.gmra.mxu0 %vm745_vm0, %v9863_v58  ;;  %9366 = vmatprep.subr.mxu0 %v5343_v42 }
 0x85c   : > { %9367 = vmatpush3.msra.mxu0 %v5343_v42 }
 0x85d   : > { %v9865_v46 = vpop.eup %9864  ;;  %9368 = vmatprep.subr.mxu0 %v5342_v14 }
 0x85e   : > { %v9867_v15 = vpop.eup %9866  ;;  %9271 = vmatprep.mubr.msk.f32.mxu0 %vm745_vm0, %v9865_v46  ;;  %9369 = vmatpush3.msra.mxu0 %v5342_v14 }
 0x85f   : > { %9272 = vmatmul.mubr.msk.f32.gmra.mxu0 %vm745_vm0, %v9867_v15  ;;  %9370 = vmatprep.subr.mxu0 %v5341_v35 }
 0x860   : > { %9371 = vmatpush3.msra.mxu0 %v5341_v35 }
 0x861   : > { %v9869_v60 = vpop.eup %9868  ;;  %9372 = vmatprep.subr.mxu0 %v5340_v12 }
 0x862   : > { %v9871_v18 = vpop.eup %9870  ;;  %9274 = vmatprep.mubr.msk.f32.mxu0 %vm745_vm0, %v9869_v60  ;;  %9373 = vmatpush3.msra.mxu0 %v5340_v12 }
 0x863   : > { %9275 = vmatmul.mubr.msk.f32.gmra.mxu0 %vm745_vm0, %v9871_v18  ;;  %9374 = vmatprep.subr.mxu0 %v5339_v17 }
 0x864   : > { %9375 = vmatpush3.msra.mxu0 %v5339_v17 }
 0x865   : > { %v9873_v28 = vpop.eup %9872 }
 0x866   : > { %v9875_v9 = vpop.eup %9874  ;;  %9277 = vmatprep.mubr.msk.f32.mxu0 %vm745_vm0, %v9873_v28 }
 0x867   : > { %9278 = vmatmul.mubr.msk.f32.gmra.mxu0 %vm745_vm0, %v9875_v9 }
 0x8eb   : > { %v9234_v58 = vpop.f32.mrf.mxu0 }
 0x8ec   : > { %v4699_v60 = vmul.f32 %v9234_v58, %v12101_v16 }
 0x8ed   : > { %v4539_v46 = vpop.f32.mrf.mxu0 }
 0x8ee   : > { %v4698_v15 = vmul.f32 %v4539_v46, %v12104_v44 }
 0x8ef   : > { %v9237_v18 = vpop.f32.mrf.mxu0 }
 0x8f0   : > { %9312 = vmatprep.mubr.f32.mxu1 %v4698_v15  ;;  %v4701_v4 = vmul.f32 %v9237_v18, %v12111_v32 }
 0x8f1   : > { %v4549_v28 = vpop.f32.mrf.mxu0  ;;  %9313 = vmatmul.mubr.f32.vlgmr.msra.gmra.mxu1 %v4699_v60 }
 0x8f2   : > { %v4700_v9 = vmul.f32 %v4549_v28, %v12114_v41 }
 0x8f3   : > { %v9240_v20 = vpop.f32.mrf.mxu0 }
 0x8f4   : > { %9315 = vmatprep.mubr.f32.mxu1 %v4700_v9  ;;  %v4703_v42 = vmul.f32 %v9240_v20, %v12121_v55 }
 0x8f5   : > { %v4559_v34 = vpop.f32.mrf.mxu0  ;;  %9316 = vmatmul.mubr.f32.gmra.mxu1 %v4701_v4 }
 0x8f6   : > { %v4702_v43 = vmul.f32 %v4559_v34, %v12124_v49 }
 0x8f7   : > { %v9243_v14 = vpop.f32.mrf.mxu0 }
 0x8f8   : > { %9318 = vmatprep.mubr.f32.mxu1 %v4702_v43  ;;  %v4705_v35 = vmul.f32 %v9243_v14, %v12131_v22 }
 0x8f9   : > { %v4569_v44 = vpop.f32.mrf.mxu0  ;;  %9319 = vmatmul.mubr.f32.gmra.mxu1 %v4703_v42 }
 0x8fa   : > { %v4704_v16 = vmul.f32 %v4569_v44, %v12134_v40 }
 0x8fb   : > { %v9246_v12 = vpop.f32.mrf.mxu0 }
 0x8fc   : > { %9321 = vmatprep.mubr.f32.mxu1 %v4704_v16  ;;  %v4707_v17 = vmul.f32 %v9246_v12, %v12141_v36 }
 0x8fd   : > { %v4579_v41 = vpop.f32.mrf.mxu0  ;;  %9322 = vmatmul.mubr.f32.gmra.mxu1 %v4705_v35 }
 0x8fe   : > { %v4706_v32 = vmul.f32 %v4579_v41, %v12144_v52 }
 0x8ff   : > { %v9249_v58 = vpop.f32.mrf.mxu0 }
 0x900   : > { %9324 = vmatprep.mubr.f32.mxu1 %v4706_v32  ;;  %v4709_v46 = vmul.f32 %v9249_v58, %v12151_v19 }
 0x901   : > { %v4589_v49 = vpop.f32.mrf.mxu0  ;;  %9325 = vmatmul.mubr.f32.gmra.mxu1 %v4707_v17 }
 0x902   : > { %v4708_v55 = vmul.f32 %v4589_v49, %v12154_v61 }
 0x903   : > { %v9252_v15 = vpop.f32.mrf.mxu0 }
 0x904   : > { %9327 = vmatprep.mubr.f32.mxu1 %v4708_v55  ;;  %v4711_v60 = vmul.f32 %v9252_v15, %v12161_v1  ;;  %v5332_v55 = vld [vmem:[%s13659_s7 + $0x8] sm:$0xff]  ;;  %v5773_v15 = vld [vmem:[%s13656_s4 + $0x10] sm:$0xff] }
 0x905   : > { %v4599_v40 = vpop.f32.mrf.mxu0  ;;  %9328 = vmatmul.mubr.f32.gmra.mxu1 %v4709_v46  ;;  %v5331_v46 = vld [vmem:[%s13659_s7] sm:$0xff]  ;;  %9440 = vmatprep.subr.mxu1 %v5773_v15 }
 0x906   : > { %v4710_v22 = vmul.f32 %v4599_v40, %v12164_v21  ;;  %v5772_v40 = vld [vmem:[%s13656_s4 + $0x8] sm:$0xff]  ;;  %9441 = vmatpush3.msra.mxu1 %v5773_v15 }
 0x907   : > { %v9255_v18 = vpop.f32.mrf.mxu0  ;;  %9442 = vmatprep.subr.mxu1 %v5772_v40 }
 0x908   : > { %9330 = vmatprep.mubr.f32.mxu1 %v4710_v22  ;;  %v4713_v28 = vmul.f32 %v9255_v18, %v12171_v37  ;;  %v3324_v22 = vadd.f32 %v12036_v62, %v11937_v10  ;;  %9443 = vmatpush3.msra.mxu1 %v5772_v40  ;;  %v12383_v18 = vld [vmem:[%s13658_s6] ss:$0 sm:$0xff]  ;;  %v3329_v62 = vadd.f32 %v12042_v47, %v11943_v31 }
 0x909   : > { %v4609_v52 = vpop.f32.mrf.mxu0  ;;  %9331 = vmatmul.mubr.f32.gmra.mxu1 %v4711_v60  ;;  %v3344_v31 = vadd.f32 %v12044_v39, %v11945_v63 }
 0x90a   : > { %v4712_v36 = vmul.f32 %v4609_v52, %v12174_v29  ;;  %v3319_v52 = vadd.f32 %v12038_v25, %v11939_v30 }
 0x90b   : > { %v9258_v9 = vpop.f32.mrf.mxu0 }
 0x90c   : > { %9333 = vmatprep.mubr.f32.mxu1 %v4712_v36  ;;  %v4715_v4 = vmul.f32 %v9258_v9, %v12181_v56  ;;  %v3334_v9 = vadd.f32 %v12040_v45, %v11941_v6 }
 0x90d   : > { %v4619_v61 = vpop.f32.mrf.mxu0  ;;  %9334 = vmatmul.mubr.f32.gmra.mxu1 %v4713_v28 }
 0x90e   : > { %v4714_v19 = vmul.f32 %v4619_v61, %v12184_v0 }
 0x90f   : > { %v9261_v20 = vpop.f32.mrf.mxu0 }
 0x910   : > { %9336 = vmatprep.mubr.f32.mxu1 %v4714_v19  ;;  %v4717_v34 = vmul.f32 %v9261_v20, %v12191_v8 }
 0x911   : > { %v4629_v21 = vpop.f32.mrf.mxu0  ;;  %9337 = vmatmul.mubr.f32.gmra.mxu1 %v4715_v4 }
 0x912   : > { %v4716_v1 = vmul.f32 %v4629_v21, %v12194_v2 }
 0x913   : > { %v9264_v43 = vpop.f32.mrf.mxu0 }
 0x914   : > { %9339 = vmatprep.mubr.f32.mxu1 %v4716_v1  ;;  %v4719_v42 = vmul.f32 %v9264_v43, %v12201_v26 }
 0x915   : > { %v4639_v29 = vpop.f32.mrf.mxu0  ;;  %9340 = vmatmul.mubr.f32.gmra.mxu1 %v4717_v34 }
 0x916   : > { %v4718_v37 = vmul.f32 %v4639_v29, %v12204_v5 }
 0x917   : > { %v9267_v14 = vpop.f32.mrf.mxu0 }
 0x918   : > { %9342 = vmatprep.mubr.f32.mxu1 %v4718_v37  ;;  %v4721_v44 = vmul.f32 %v9267_v14, %v12211_v11  ;;  %v3354_v14 = vadd.f32 %v12048_v57, %v11949_v27  ;;  %v3349_v57 = vadd.f32 %v12050_v3, %v11951_v54 }
 0x919   : > { %v4649_v0 = vpop.f32.mrf.mxu0  ;;  %9343 = vmatmul.mubr.f32.gmra.mxu1 %v4719_v42  ;;  %v3339_v42 = vadd.f32 %v12046_v51, %v11947_v59 }
 0x91a   : > { %v4720_v56 = vmul.f32 %v4649_v0, %v12214_v33 }
 0x91b   : > { %v9270_v16 = vpop.f32.mrf.mxu0 }
 0x91c   : > { %9345 = vmatprep.mubr.f32.mxu1 %v4720_v56  ;;  %v4723_v35 = vmul.f32 %v9270_v16, %v12221_v38 }
 0x91d   : > { %v4659_v2 = vpop.f32.mrf.mxu0  ;;  %9346 = vmatmul.mubr.f32.gmra.mxu1 %v4721_v44 }
 0x91e   : > { %v4722_v8 = vmul.f32 %v4659_v2, %v12224_v53 }
 0x91f   : > { %v9273_v12 = vpop.f32.mrf.mxu0 }
 0x920   : > { %9348 = vmatprep.mubr.f32.mxu1 %v4722_v8  ;;  %v4725_v41 = vmul.f32 %v9273_v12, %v12231_v50  ;;  %v5338_v50 = vld [vmem:[%s13659_s7 + $0x38] sm:$0xff] }
 0x921   : > { %v4669_v5 = vpop.f32.mrf.mxu0  ;;  %9349 = vmatmul.mubr.f32.gmra.mxu1 %v4723_v35  ;;  %9376 = vmatprep.subr.mxu0 %v5338_v50 }
 0x922   : > { %v4724_v26 = vmul.f32 %v4669_v5, %v12234_v7  ;;  %9377 = vmatpush3.msra.mxu0 %v5338_v50  ;;  %v5337_v7 = vld [vmem:[%s13659_s7 + $0x30] sm:$0xff] }
 0x923   : > { %v9276_v32 = vpop.f32.mrf.mxu0  ;;  %9378 = vmatprep.subr.mxu0 %v5337_v7 }
 0x924   : > { %9351 = vmatprep.mubr.f32.mxu1 %v4724_v26  ;;  %v4727_v17 = vmul.f32 %v9276_v32, %v12241_v23  ;;  %9379 = vmatpush3.msra.mxu0 %v5337_v7  ;;  %v5336_v23 = vld [vmem:[%s13659_s7 + $0x28] sm:$0xff] }
 0x925   : > { %v4679_v33 = vpop.f32.mrf.mxu0  ;;  %9352 = vmatmul.mubr.f32.gmra.mxu1 %v4725_v41  ;;  %9380 = vmatprep.subr.mxu0 %v5336_v23 }
 0x926   : > { %v4726_v11 = vmul.f32 %v4679_v33, %v12244_v48  ;;  %9381 = vmatpush3.msra.mxu0 %v5336_v23  ;;  %v5335_v48 = vld [vmem:[%s13659_s7 + $0x20] sm:$0xff] }
 0x927   : > { %v9279_v58 = vpop.f32.mrf.mxu0  ;;  %9382 = vmatprep.subr.mxu0 %v5335_v48 }
 0x928   : > { %9354 = vmatprep.mubr.f32.mxu1 %v4726_v11  ;;  %v4729_v49 = vmul.f32 %v9279_v58, %v12251_v13  ;;  %9383 = vmatpush3.msra.mxu0 %v5335_v48  ;;  %v5334_v13 = vld [vmem:[%s13659_s7 + $0x18] sm:$0xff] }
 0x929   : > { %v4689_v53 = vpop.f32.mrf.mxu0  ;;  %9355 = vmatmul.mubr.f32.gmra.mxu1 %v4727_v17  ;;  %9384 = vmatprep.subr.mxu0 %v5334_v13 }
 0x92a   : > { %v4728_v38 = vmul.f32 %v4689_v53, %v12254_v24  ;;  %9385 = vmatpush3.msra.mxu0 %v5334_v13  ;;  %v5333_v24 = vld [vmem:[%s13659_s7 + $0x10] sm:$0xff]  ;;  %v13870_v13 = vld [vmem:[#allocation24_spill] sm:$0xff] }
 0x92b   : > { %9386 = vmatprep.subr.mxu0 %v5333_v24 }
 0x92c   : > { %9357 = vmatprep.mubr.f32.mxu1 %v4728_v38  ;;  %9387 = vmatpush3.msra.mxu0 %v5333_v24  ;;  %v13871_v24 = vld [vmem:[#allocation36_spill] sm:$0xff] }
 0x92d   : > { %9358 = vmatmul.mubr.f32.gmra.mxu1 %v4729_v49  ;;  %9388 = vmatprep.subr.mxu0 %v5332_v55 }
 0x92e   : > { %9389 = vmatpush3.msra.mxu0 %v5332_v55  ;;  %v3364_v55 = vadd.f32 %v13871_v24, %v13870_v13  ;;  %v13894_v13 = vld [vmem:[#allocation30_spill] sm:$0xff]  ;;  %v13895_v24 = vld [vmem:[#allocation63_spill] sm:$0xff] }
 0x92f   : > { %9390 = vmatprep.subr.mxu0 %v5331_v46 }
 0x930   : > { %9391 = vmatpush3.msra.mxu0 %v5331_v46 }
 0x9b1   : > { %v9314_v60 = vpop.f32.mrf.mxu1 }
 0x9b2   : > { %v4973_v36 = vadd.f32 %v9314_v60, %v3324_v22 }
 0x9b3   : > { %v4813_v28 = vpop.f32.mrf.mxu1 }
 0x9b4   : > { %v12390_v61 = vadd.f32 %v12383_v18, %v4973_v36  ;;  %v4972_v19 = vadd.f32 %v4813_v28, %v3319_v52  ;;  %v13872_v36 = vld [vmem:[#allocation46_spill] sm:$0xff] }
 0x9b5   : > { %v9317_v10 = vpop.f32.mrf.mxu1  ;;  %v13873_v28 = vld [vmem:[#allocation58_spill] sm:$0xff] }
 0x9b6   : > { %v5044_v4 = vmul.f32 %v12390_v61, %v12390_v61  ;;  %v12397_v20 = vadd.f32 %v12383_v18, %v4972_v19  ;;  %v4975_v30 = vadd.f32 %v9317_v10, %v3334_v9  ;;  %v3359_v9 = vadd.f32 %v13873_v28, %v13872_v36  ;;  %v13874_v19 = vld [vmem:[#allocation23_spill] sm:$0xff] }
 0x9b7   : > { %v4823_v25 = vpop.f32.mrf.mxu1  ;;  %v13875_v10 = vld [vmem:[#allocation35_spill] sm:$0xff] }
 0x9b8   : > { %v5076_v21 = vmul.f32 %v5044_v4, %v12390_v61  ;;  %v5043_v6 = vmul.f32 %v12397_v20, %v12397_v20  ;;  %v12403_v45 = vadd.f32 %v12383_v18, %v4975_v30  ;;  %v4974_v1 = vadd.f32 %v4823_v25, %v3329_v62 }
 0x9b9   : > { %v9320_v47 = vpop.f32.mrf.mxu1  ;;  %v3374_v62 = vadd.f32 %v13875_v10, %v13874_v19  ;;  %v13900_v10 = vld [vmem:[#allocation51_spill] sm:$0xff] }
 0x9ba   : > { %v5108_v34 = vmul.f32 0.044715, %v5076_v21  ;;  %v5075_v43 = vmul.f32 %v5043_v6, %v12397_v20  ;;  %v5046_v29 = vmul.f32 %v12403_v45, %v12403_v45  ;;  %v12411_v37 = vadd.f32 %v12383_v18, %v4974_v1  ;;  %v13876_v6 = vld [vmem:[#allocation45_spill] sm:$0xff] }
 0x9bb   : > { %v4977_v0 = vadd.f32 %v9320_v47, %v3344_v31  ;;  %v4833_v56 = vpop.f32.mrf.mxu1  ;;  %v13877_v1 = vld [vmem:[#allocation57_spill] sm:$0xff]  ;;  %v13878_v47 = vld [vmem:[#allocation26_spill] sm:$0xff] }
 0x9bc   : > { %v5140_v63 = vadd.f32 %v5108_v34, %v12390_v61  ;;  %v5107_v39 = vmul.f32 0.044715, %v5075_v43  ;;  %v5078_v44 = vmul.f32 %v5046_v29, %v12403_v45  ;;  %v5045_v16 = vmul.f32 %v12411_v37, %v12411_v37  ;;  %v13879_v34 = vld [vmem:[#allocation38_spill] sm:$0xff]  ;;  %v13880_v29 = vld [vmem:[#allocation48_spill] sm:$0xff] }
 0x9bd   : > { %v12422_v2 = vadd.f32 %v12383_v18, %v4977_v0  ;;  %v4976_v8 = vadd.f32 %v4833_v56, %v3339_v42  ;;  %v9323_v35 = vpop.f32.mrf.mxu1  ;;  %v3369_v31 = vadd.f32 %v13877_v1, %v13876_v6  ;;  %v3384_v43 = vadd.f32 %v13879_v34, %v13878_v47  ;;  %v13881_v42 = vld [vmem:[#allocation60_spill] sm:$0xff]  ;;  %v13882_v0 = vld [vmem:[#allocation25_spill] sm:$0xff] }
 0x9be   : > { %v5172_v12 = vmul.f32 0.7978846, %v5140_v63  ;;  %v5110_v59 = vmul.f32 0.044715, %v5078_v44  ;;  %v5077_v51 = vmul.f32 %v5045_v16, %v12411_v37  ;;  %v4979_v27 = vadd.f32 %v9323_v35, %v3354_v14  ;;  %v13883_v56 = vld [vmem:[#allocation37_spill] sm:$0xff] }
 0x9bf   : > { %v5048_v5 = vmul.f32 %v12422_v2, %v12422_v2  ;;  %v12430_v26 = vadd.f32 %v12383_v18, %v4976_v8  ;;  %v4843_v41 = vpop.f32.mrf.mxu1  ;;  %v5139_v32 = vadd.f32 %v5107_v39, %v12397_v20  ;;  %v12461_v14 = vadd.f32 %v13881_v42, %v13880_v29  ;;  %v13905_v29 = vld [vmem:[#allocation43_spill] sm:$0xff] }
 0x9c0   : > { %v5142_v33 = vadd.f32 %v5110_v59, %v12403_v45  ;;  %v5109_v11 = vmul.f32 0.044715, %v5077_v51  ;;  %v12435_v17 = vadd.f32 %v12383_v18, %v4979_v27  ;;  %v4978_v3 = vadd.f32 %v4843_v41, %v3349_v57  ;;  %v13885_v59 = vld [vmem:[#allocation59_spill] sm:$0xff]  ;;  %v13886_v27 = vld [vmem:[#allocation28_spill] sm:$0xff]  ;;  %v13888_v41 = vld [vmem:[#allocation50_spill] sm:$0xff] }
 0x9c1   : > { %v5080_v58 = vmul.f32 %v5048_v5, %v12422_v2  ;;  %v5047_v54 = vmul.f32 %v12430_v26, %v12430_v26  ;;  %v9326_v53 = vpop.f32.mrf.mxu1  ;;  %v5171_v38 = vmul.f32 0.7978846, %v5139_v32  ;;  %9876 = vtanh.f32 %v5172_v12  ;;  %v13884_v12 = vld [vmem:[#allocation47_spill] sm:$0xff]  ;;  %v13887_v57 = vld [vmem:[#allocation40_spill] sm:$0xff] }
 0x9c2   : > { %v5174_v49 = vmul.f32 0.7978846, %v5142_v33  ;;  %v5141_v50 = vadd.f32 %v5109_v11, %v12411_v37  ;;  %v5050_v46 = vmul.f32 %v12435_v17, %v12435_v17  ;;  %v12448_v22 = vadd.f32 %v12383_v18, %v4978_v3  ;;  %v13889_v32 = vld [vmem:[#allocation39_spill] sm:$0xff] }
 0x9c3   : > { %v5112_v7 = vmul.f32 0.044715, %v5080_v58  ;;  %v5079_v23 = vmul.f32 %v5047_v54, %v12430_v26  ;;  %v4853_v48 = vpop.f32.mrf.mxu1  ;;  %9878 = vtanh.f32 %v5171_v38  ;;  %v4981_v30 = vadd.f32 %v9326_v53, %v3364_v55  ;;  %v13890_v53 = vld [vmem:[#allocation27_spill] sm:$0xff]  ;;  %v13891_v38 = vld [vmem:[#allocation61_spill] sm:$0xff] }
 0x9c4   : > { %v5173_v52 = vmul.f32 0.7978846, %v5141_v50  ;;  %9880 = vtanh.f32 %v5174_v49  ;;  %v3394_v63 = vadd.f32 %v13883_v56, %v13882_v0  ;;  %v5082_v39 = vmul.f32 %v5050_v46, %v12435_v17  ;;  %v13892_v50 = vld [vmem:[#allocation49_spill] sm:$0xff]  ;;  %v13896_v46 = vld [vmem:[#allocation52_spill] sm:$0xff]  ;;  %v13906_v0 = vld [vmem:[#allocation31_spill] sm:$0xff] }
 0x9c5   : > { %v5144_v15 = vadd.f32 %v5112_v7, %v12422_v2  ;;  %v5111_v40 = vmul.f32 0.044715, %v5079_v23  ;;  %v9329_v60 = vpop.f32.mrf.mxu1  ;;  %v5049_v44 = vmul.f32 %v12448_v22, %v12448_v22  ;;  %v12470_v51 = vadd.f32 %v13885_v59, %v13884_v12  ;;  %v13893_v7 = vld [vmem:[#allocation42_spill] sm:$0xff]  ;;  %v13907_v56 = vld [vmem:[#allocation64_spill] sm:$0xff]  ;;  %v13908_v12 = vld [vmem:[#allocation53_spill] sm:$0xff] }
 0x9c6   : > { %9882 = vtanh.f32 %v5173_v52  ;;  %v4983_v16 = vadd.f32 %v9329_v60, %v3374_v62  ;;  %v3404_v5 = vadd.f32 %v13887_v57, %v13886_v27  ;;  %v12476_v33 = vadd.f32 %v13889_v32, %v13888_v41  ;;  %v13899_v60 = vld [vmem:[#allocation62_spill] sm:$0xff]  ;;  %v13901_v62 = vld [vmem:[#allocation44_spill] sm:$0xff]  ;;  %v13911_v57 = vld [vmem:[#allocation67_spill] sm:$0xff] }
 0x9c7   : > { %v5176_v4 = vmul.f32 0.7978846, %v5144_v15  ;;  %v4863_v25 = vpop.f32.mrf.mxu1  ;;  %v5143_v21 = vadd.f32 %v5111_v40, %v12430_v26  ;;  %v12479_v11 = vadd.f32 %v12383_v18, %v4981_v30  ;;  %v4980_v58 = vadd.f32 %v4853_v48, %v3359_v9  ;;  %v13897_v15 = vld [vmem:[#allocation41_spill] sm:$0xff]  ;;  %v13902_v30 = vld [vmem:[#allocation32_spill] sm:$0xff]  ;;  %v13909_v59 = vld [vmem:[#allocation66_spill] sm:$0xff] }
 0x9c8   : > { %v3414_v49 = vadd.f32 %v13891_v38, %v13890_v53  ;;  %v12487_v23 = vadd.f32 %v13893_v7, %v13892_v50  ;;  %v12491_v55 = vadd.f32 %v13895_v24, %v13894_v13  ;;  %v12495_v40 = vadd.f32 %v13897_v15, %v13896_v46  ;;  %v13898_v48 = vld [vmem:[#allocation29_spill] sm:$0xff]  ;;  %v13910_v27 = vld [vmem:[#allocation34_spill] sm:$0xff]  ;;  %v13912_v32 = vld [vmem:[#allocation56_spill] sm:$0xff] }
 0x9c9   : > { %v9332_v8 = vpop.f32.mrf.mxu1  ;;  %v5175_v35 = vmul.f32 0.7978846, %v5143_v21  ;;  %9884 = vtanh.f32 %v5176_v4  ;;  %v12499_v52 = vadd.f32 %v13899_v60, %v13898_v48  ;;  %v5114_v36 = vmul.f32 0.044715, %v5082_v39  ;;  %v13903_v21 = vld [vmem:[#allocation65_spill] sm:$0xff] }
 0x9ca   : > { %v4985_v54 = vadd.f32 %v9332_v8, %v3384_v43  ;;  %v5081_v28 = vmul.f32 %v5049_v44, %v12448_v22  ;;  %v12503_v9 = vadd.f32 %v12383_v18, %v4983_v16  ;;  %v12507_v4 = vadd.f32 %v13901_v62, %v13900_v10  ;;  %v13904_v43 = vld [vmem:[#allocation54_spill] sm:$0xff] }
 0x9cb   : > { %v12481_v3 = vpop.f32.mrf.mxu1  ;;  %9886 = vtanh.f32 %v5175_v35  ;;  %v12511_v6 = vadd.f32 %v13903_v21, %v13902_v30  ;;  %v12518_v42 = vadd.f32 %v13905_v29, %v13904_v43  ;;  %v12522_v39 = vadd.f32 %v13907_v56, %v13906_v0 }
 0x9cc   : > { %v12514_v1 = vadd.f32 %v12383_v18, %v4985_v54  ;;  %v5052_v44 = vmul.f32 %v12479_v11, %v12479_v11  ;;  %v12527_v16 = vadd.f32 %v12383_v18, %v4980_v58  ;;  %v12535_v41 = vadd.f32 %v13911_v57, %v13910_v27  ;;  %v13913_v54 = vld [vmem:[#allocation69_spill] sm:$0xff] }
 0x9cd   : > { %v9335_v19 = vpop.f32.mrf.mxu1  ;;  %v12539_v53 = vadd.f32 %v13913_v54, %v13912_v32  ;;  %v5236_v38 = vmul.f32 0.5, %v12390_v61  ;;  %v5146_v50 = vadd.f32 %v5114_v36, %v12435_v17  ;;  %v5113_v58 = vmul.f32 0.044715, %v5081_v28 }
 0x9ce   : > { %v4987_v47 = vadd.f32 %v9335_v19, %v3394_v63  ;;  %v9877_v34 = vpop.eup %9876  ;;  %v12531_v63 = vadd.f32 %v13909_v59, %v13908_v12  ;;  %v5054_v7 = vmul.f32 %v12503_v9, %v12503_v9  ;;  %v5056_v15 = vmul.f32 %v12514_v1, %v12514_v1 }
 0x9cf   : > { %v4883_v8 = vpop.f32.mrf.mxu1  ;;  %v5268_v46 = vadd.f32 1.0, %v9877_v34  ;;  %v5084_v10 = vmul.f32 %v5052_v44, %v12479_v11  ;;  %v5051_v61 = vmul.f32 %v12527_v16, %v12527_v16  ;;  %v5235_v28 = vmul.f32 0.5, %v12397_v20 }
 0x9d0   : > { %v9879_v35 = vpop.eup %9878  ;;  %v12546_v13 = vadd.f32 %v12383_v18, %v4987_v47  ;;  %v5238_v62 = vmul.f32 0.5, %v12403_v45  ;;  %v4982_v21 = vadd.f32 %v4863_v25, %v3369_v31  ;;  %v5237_v34 = vmul.f32 0.5, %v12411_v37 }
 0x9d1   : > { %v9338_v24 = vpop.f32.mrf.mxu1  ;;  %v5267_v60 = vadd.f32 1.0, %v9879_v35  ;;  %v9881_v19 = vpop.eup %9880  ;;  %v5178_v43 = vmul.f32 0.7978846, %v5146_v50  ;;  %v5086_v29 = vmul.f32 %v5054_v7, %v12503_v9  ;;  %v5300_v20 = vmul.f32 %v5268_v46, %v5236_v38 }
 0x9d2   : > { %v4989_v48 = vadd.f32 %v9338_v24, %v3404_v5  ;;  %v5240_v5 = vmul.f32 0.5, %v12422_v2  ;;  %v5058_v0 = vmul.f32 %v12546_v13, %v12546_v13  ;;  %v5088_v45 = vmul.f32 %v5056_v15, %v12514_v1 }
 0x9d3   : > { %v4893_v36 = vpop.f32.mrf.mxu1  ;;  %v9883_v30 = vpop.eup %9882  ;;  %v5299_v56 = vmul.f32 %v5267_v60, %v5235_v28  ;;  %v5270_v35 = vadd.f32 1.0, %v9881_v19  ;;  %v5145_v25 = vadd.f32 %v5113_v58, %v12448_v22  ;;  %v5116_v12 = vmul.f32 0.044715, %v5084_v10 }
 0x9d4   : > { %v12556_v47 = vadd.f32 %v12383_v18, %v4989_v48  ;;  %v5083_v37 = vmul.f32 %v5051_v61, %v12527_v16  ;;  %v5269_v27 = vadd.f32 1.0, %v9883_v30  ;;  %v12567_v32 = vadd.f32 %v12383_v18, %v4982_v21 }
 0x9d5   : > { %v9341_v44 = vpop.f32.mrf.mxu1  ;;  %9392 = vmatprep.mubr.f32.mxu0 %v5299_v56  ;;  %v4984_v54 = vadd.f32 %v12481_v3, %v12461_v14  ;;  %v5239_v50 = vmul.f32 0.5, %v12430_v26  ;;  %v5118_v58 = vmul.f32 0.044715, %v5086_v29  ;;  %v5090_v7 = vmul.f32 %v5058_v0, %v12546_v13 }
 0x9d6   : > { %v9885_v31 = vpop.eup %9884  ;;  %v4991_v2 = vadd.f32 %v9341_v44, %v3414_v49  ;;  %v5060_v38 = vmul.f32 %v12556_v47, %v12556_v47  ;;  %9393 = vmatmul.mubr.f32.vlgmr.msra.gmra.mxu0 %v5300_v20  ;;  %v4986_v49 = vadd.f32 %v4883_v8, %v12470_v51  ;;  %v5301_v24 = vmul.f32 %v5269_v27, %v5237_v34  ;;  %v13915_v27 = vld [vmem:[#allocation68_spill] sm:$0xff] }
 0x9d7   : > { %v4903_v59 = vpop.f32.mrf.mxu1  ;;  %9888 = vtanh.f32 %v5178_v43  ;;  %v5120_v15 = vmul.f32 0.044715, %v5088_v45  ;;  %v5302_v48 = vmul.f32 %v5270_v35, %v5238_v62  ;;  %v5177_v60 = vmul.f32 0.7978846, %v5145_v25 }
 0x9d8   : > { %v9887_v57 = vpop.eup %9886  ;;  %v12577_v19 = vadd.f32 %v12383_v18, %v4991_v2  ;;  %9395 = vmatprep.mubr.f32.mxu0 %v5301_v24  ;;  %v5272_v26 = vadd.f32 1.0, %v9885_v31  ;;  %v5148_v61 = vadd.f32 %v5116_v12, %v12479_v11  ;;  %v5053_v51 = vmul.f32 %v12567_v32, %v12567_v32 }
 0x9d9   : > { %v9344_v46 = vpop.f32.mrf.mxu1  ;;  %v5271_v10 = vadd.f32 1.0, %v9887_v57  ;;  %v12584_v8 = vadd.f32 %v12383_v18, %v4984_v54  ;;  %v5092_v28 = vmul.f32 %v5060_v38, %v12556_v47  ;;  %v5150_v62 = vadd.f32 %v5118_v58, %v12503_v9 }
 0x9da   : > { %v4993_v14 = vadd.f32 %v9344_v46, %v12491_v55  ;;  %9396 = vmatmul.mubr.f32.gmra.mxu0 %v5302_v48  ;;  %v5122_v30 = vmul.f32 0.044715, %v5090_v7  ;;  %v12589_v21 = vadd.f32 %v12383_v18, %v4986_v49  ;;  %v4988_v43 = vadd.f32 %v4893_v36, %v12476_v33 }
 0x9db   : > { %v4913_v3 = vpop.f32.mrf.mxu1  ;;  %v5303_v55 = vmul.f32 %v5271_v10, %v5239_v50  ;;  %v5304_v56 = vmul.f32 %v5272_v26, %v5240_v5  ;;  %v5152_v44 = vadd.f32 %v5120_v15, %v12514_v1  ;;  %v5062_v20 = vmul.f32 %v12577_v19, %v12577_v19 }
 0x9dc   : > { %v12593_v29 = vadd.f32 %v12383_v18, %v4993_v14  ;;  %v4990_v45 = vadd.f32 %v4903_v59, %v12487_v23  ;;  %9890 = vtanh.f32 %v5177_v60  ;;  %v5180_v25 = vmul.f32 0.7978846, %v5148_v61  ;;  %v13914_v59 = vld [vmem:[#allocation33_spill] sm:$0xff] }
 0x9dd   : > { %v9347_v34 = vpop.f32.mrf.mxu1  ;;  %9398 = vmatprep.mubr.f32.mxu0 %v5303_v55  ;;  %v5085_v31 = vmul.f32 %v5053_v51, %v12567_v32  ;;  %v5124_v33 = vmul.f32 0.044715, %v5092_v28  ;;  %v5055_v5 = vmul.f32 %v12584_v8, %v12584_v8  ;;  %v5154_v12 = vadd.f32 %v5122_v30, %v12546_v13 }
 0x9de   : > { %v4995_v0 = vadd.f32 %v9347_v34, %v12499_v52  ;;  %9399 = vmatmul.mubr.f32.gmra.mxu0 %v5304_v56  ;;  %v5182_v52 = vmul.f32 0.7978846, %v5150_v62  ;;  %v5057_v23 = vmul.f32 %v12589_v21, %v12589_v21  ;;  %v12611_v57 = vadd.f32 %v13915_v27, %v13914_v59 }
 0x9df   : > { %v4923_v35 = vpop.f32.mrf.mxu1  ;;  %v5115_v54 = vmul.f32 0.044715, %v5083_v37  ;;  %v12614_v38 = vadd.f32 %v12383_v18, %v4988_v43  ;;  %v5064_v50 = vmul.f32 %v12593_v29, %v12593_v29  ;;  %v5184_v58 = vmul.f32 0.7978846, %v5152_v44 }
 0x9e0   : > { %v12602_v36 = vadd.f32 %v12383_v18, %v4995_v0  ;;  %v5094_v7 = vmul.f32 %v5062_v20, %v12577_v19  ;;  %v12620_v49 = vadd.f32 %v12383_v18, %v4990_v45  ;;  %v4992_v24 = vadd.f32 %v4913_v3, %v12495_v40  ;;  %v13916_v20 = vld [vmem:[#allocation55_spill] sm:$0xff] }
 0x9e1   : > { %v9350_v2 = vpop.f32.mrf.mxu1  ;;  %9892 = vtanh.f32 %v5180_v25  ;;  %v5117_v15 = vmul.f32 0.044715, %v5085_v31  ;;  %v5156_v48 = vadd.f32 %v5124_v33, %v12556_v47  ;;  %v5087_v60 = vmul.f32 %v5055_v5, %v12584_v8 }
 0x9e2   : > { %v5066_v37 = vmul.f32 %v12602_v36, %v12602_v36  ;;  %9894 = vtanh.f32 %v5182_v52  ;;  %v5186_v14 = vmul.f32 0.7978846, %v5154_v12  ;;  %v5089_v10 = vmul.f32 %v5057_v23, %v12589_v21 }
 0x9e3   : > { %v4933_v46 = vpop.f32.mrf.mxu1  ;;  %v5059_v61 = vmul.f32 %v12614_v38, %v12614_v38  ;;  %v5096_v40 = vmul.f32 %v5064_v50, %v12593_v29  ;;  %v4994_v3 = vadd.f32 %v4923_v35, %v12507_v4  ;;  %v5147_v51 = vadd.f32 %v5115_v54, %v12527_v16  ;;  %v13917_v4 = vld [vmem:[#allocation71_spill] sm:$0xff] }
 0x9e4   : > { %v9889_v28 = vpop.eup %9888  ;;  %9896 = vtanh.f32 %v5184_v58  ;;  %v5126_v62 = vmul.f32 0.044715, %v5094_v7  ;;  %v5061_v30 = vmul.f32 %v12620_v49, %v12620_v49  ;;  %v12636_v55 = vadd.f32 %v12383_v18, %v4992_v24 }
 0x9e5   : > { %v9353_v26 = vpop.f32.mrf.mxu1  ;;  %v5188_v43 = vmul.f32 0.7978846, %v5156_v48  ;;  %v5098_v0 = vmul.f32 %v5066_v37, %v12602_v36  ;;  %v4997_v56 = vadd.f32 %v9350_v2, %v12511_v6  ;;  %v5179_v44 = vmul.f32 0.7978846, %v5147_v51 }
 0x9e6   : > { %v3469_v45 = vadd.f32 %v13917_v4, %v13916_v20  ;;  %v5119_v35 = vmul.f32 0.044715, %v5087_v60  ;;  %9898 = vtanh.f32 %v5186_v14  ;;  %v5121_v25 = vmul.f32 0.044715, %v5089_v10 }
 0x9e7   : > { %v4943_v34 = vpop.f32.mrf.mxu1  ;;  %v5091_v33 = vmul.f32 %v5059_v61, %v12614_v38  ;;  %v5128_v52 = vmul.f32 0.044715, %v5096_v40  ;;  %v12644_v5 = vadd.f32 %v12383_v18, %v4994_v3  ;;  %9900 = vtanh.f32 %v5179_v44 }
 0x9e8   : > { %v5158_v12 = vadd.f32 %v5126_v62, %v12577_v19  ;;  %v5063_v6 = vmul.f32 %v12636_v55, %v12636_v55  ;;  %v5274_v23 = vadd.f32 1.0, %v9889_v28  ;;  %v5149_v2 = vadd.f32 %v5117_v15, %v12567_v32 }
 0x9e9   : > { %v9356_v31 = vpop.f32.mrf.mxu1  ;;  %v9891_v27 = vpop.eup %9890  ;;  %9902 = vtanh.f32 %v5188_v43  ;;  %v5093_v54 = vmul.f32 %v5061_v30, %v12620_v49  ;;  %v5130_v50 = vmul.f32 0.044715, %v5098_v0  ;;  %v12652_v58 = vadd.f32 %v12383_v18, %v4997_v56 }
 0x9ea   : > { %v5241_v7 = vmul.f32 0.5, %v12448_v22  ;;  %v5273_v24 = vadd.f32 1.0, %v9891_v27  ;;  %v5242_v48 = vmul.f32 0.5, %v12435_v17  ;;  %v4996_v37 = vadd.f32 %v4933_v46, %v12518_v42 }
 0x9eb   : > { %v4953_v59 = vpop.f32.mrf.mxu1  ;;  %v5160_v60 = vadd.f32 %v5128_v52, %v12593_v29  ;;  %v5065_v15 = vmul.f32 %v12644_v5, %v12644_v5  ;;  %v4999_v14 = vadd.f32 %v9353_v26, %v12522_v39  ;;  %v5181_v10 = vmul.f32 0.7978846, %v5149_v2 }
 0x9ec   : > { %v5190_v40 = vmul.f32 0.7978846, %v5158_v12  ;;  %v5095_v3 = vmul.f32 %v5063_v6, %v12636_v55  ;;  %v5305_v51 = vmul.f32 %v5273_v24, %v5241_v7  ;;  %v5306_v28 = vmul.f32 %v5274_v23, %v5242_v48 }
 0x9ed   : > { %v9359_v61 = vpop.f32.mrf.mxu1  ;;  %v5162_v22 = vadd.f32 %v5130_v50, %v12602_v36  ;;  %v5068_v17 = vmul.f32 %v12652_v58, %v12652_v58  ;;  %v4998_v42 = vadd.f32 %v4943_v34, %v12531_v63  ;;  %v5151_v46 = vadd.f32 %v5119_v35, %v12584_v8 }
 0x9ee   : > { %v9893_v62 = vpop.eup %9892  ;;  %v5123_v30 = vmul.f32 0.044715, %v5091_v33  ;;  %v5125_v43 = vmul.f32 0.044715, %v5093_v54  ;;  %9401 = vmatprep.mubr.f32.mxu0 %v5305_v51  ;;  %v12668_v39 = vadd.f32 %v12383_v18, %v4996_v37  ;;  %9904 = vtanh.f32 %v5181_v10 }
 0x9ef   : > { %v9895_v26 = vpop.eup %9894  ;;  %v5192_v0 = vmul.f32 0.7978846, %v5160_v60  ;;  %v5097_v56 = vmul.f32 %v5065_v15, %v12644_v5  ;;  %9402 = vmatmul.mubr.f32.gmra.mxu0 %v5306_v28  ;;  %v12672_v44 = vadd.f32 %v12383_v18, %v4999_v14  ;;  %v5183_v20 = vmul.f32 0.7978846, %v5151_v46  ;;  %v4963_v63 = vpop.f32.mrf.mxu1 }
 0x9f0   : > { %9906 = vtanh.f32 %v5190_v40  ;;  %v5127_v34 = vmul.f32 0.044715, %v5095_v3  ;;  %v5001_v4 = vadd.f32 %v9356_v31, %v12535_v41  ;;  %v5000_v35 = vadd.f32 %v4953_v59, %v12539_v53 }
 0x9f1   : > { %v9897_v33 = vpop.eup %9896  ;;  %v5194_v52 = vmul.f32 0.7978846, %v5162_v22  ;;  %v5100_v12 = vmul.f32 %v5068_v17, %v12652_v58  ;;  %v12678_v6 = vadd.f32 %v12383_v18, %v4998_v42  ;;  %9908 = vtanh.f32 %v5183_v20 }
 0x9f2   : > { %v5067_v23 = vmul.f32 %v12668_v39, %v12668_v39  ;;  %v5243_v2 = vmul.f32 0.5, %v12527_v16  ;;  %v5002_v27 = vadd.f32 %v4963_v63, %v3469_v45  ;;  %v5153_v54 = vadd.f32 %v5121_v25, %v12589_v21 }
 0x9f3   : > { %v12684_v50 = vpop.eup %9898  ;;  %9910 = vtanh.f32 %v5192_v0  ;;  %v5129_v41 = vmul.f32 0.044715, %v5097_v56  ;;  %v5070_v53 = vmul.f32 %v12672_v44, %v12672_v44  ;;  %v5276_v31 = vadd.f32 1.0, %v9893_v62 }
 0x9f4   : > { %v9901_v59 = vpop.eup %9900  ;;  %v5244_v7 = vmul.f32 0.5, %v12479_v11  ;;  %v12690_v24 = vadd.f32 %v12383_v18, %v5001_v4  ;;  %v12693_v48 = vadd.f32 %v12383_v18, %v5000_v35  ;;  %v5185_v16 = vmul.f32 0.7978846, %v5153_v54 }
 0x9f5   : > { %9912 = vtanh.f32 %v5194_v52  ;;  %v5132_v45 = vmul.f32 0.044715, %v5100_v12  ;;  %v5275_v25 = vadd.f32 1.0, %v9901_v59  ;;  %v5069_v37 = vmul.f32 %v12678_v6, %v12678_v6 }
 0x9f6   : > { %v12697_v60 = vpop.eup %9902  ;;  %v5099_v15 = vmul.f32 %v5067_v23, %v12668_v39  ;;  %v12701_v14 = vadd.f32 %v12383_v18, %v5002_v27  ;;  %9914 = vtanh.f32 %v5185_v16  ;;  %v5155_v11 = vadd.f32 %v5123_v30, %v12614_v38 }
 0x9f7   : > { %v5307_v10 = vmul.f32 %v5275_v25, %v5243_v2  ;;  %v5102_v40 = vmul.f32 %v5070_v53, %v12672_v44  ;;  %v5308_v3 = vmul.f32 %v5276_v31, %v5244_v7  ;;  %v5003_v51 = vadd.f32 %v9359_v61, %v12611_v57 }
 0x9f8   : > { %v5072_v28 = vmul.f32 %v12690_v24, %v12690_v24  ;;  %v5278_v22 = vadd.f32 1.0, %v9895_v26  ;;  %v5071_v17 = vmul.f32 %v12693_v48, %v12693_v48  ;;  %v5187_v42 = vmul.f32 0.7978846, %v5155_v11 }
 0x9f9   : > { %v5164_v46 = vadd.f32 %v5132_v45, %v12652_v58  ;;  %9404 = vmatprep.mubr.f32.mxu0 %v5307_v10  ;;  %v5101_v62 = vmul.f32 %v5069_v37, %v12678_v6  ;;  %v5245_v30 = vmul.f32 0.5, %v12567_v32  ;;  %v5157_v0 = vadd.f32 %v5125_v43, %v12620_v49 }
 0x9fa   : > { %v5131_v56 = vmul.f32 0.044715, %v5099_v15  ;;  %9405 = vmatmul.mubr.f32.gmra.mxu0 %v5308_v3  ;;  %v5246_v57 = vmul.f32 0.5, %v12503_v9  ;;  %v5073_v61 = vmul.f32 %v12701_v14, %v12701_v14  ;;  %9916 = vtanh.f32 %v5187_v42 }
 0x9fb   : > { %v9905_v26 = vpop.eup %9904  ;;  %v5134_v20 = vmul.f32 0.044715, %v5102_v40  ;;  %v12718_v63 = vadd.f32 %v12383_v18, %v5003_v51  ;;  %v5189_v4 = vmul.f32 0.7978846, %v5157_v0  ;;  %v5159_v35 = vadd.f32 %v5127_v34, %v12636_v55 }
 0x9fc   : > { %v5277_v52 = vadd.f32 1.0, %v9905_v26  ;;  %v5104_v32 = vmul.f32 %v5072_v28, %v12690_v24  ;;  %v5310_v43 = vmul.f32 %v5278_v22, %v5246_v57  ;;  %v5103_v12 = vmul.f32 %v5071_v17, %v12693_v48 }
 0x9fd   : > { %v12723_v23 = vpop.eup %9906  ;;  %v5133_v9 = vmul.f32 0.044715, %v5101_v62  ;;  %v5247_v2 = vmul.f32 0.5, %v12584_v8  ;;  %9918 = vtanh.f32 %v5189_v4  ;;  %v5191_v27 = vmul.f32 0.7978846, %v5159_v35 }
 0x9fe   : > { %v9909_v54 = vpop.eup %9908  ;;  %v5309_v53 = vmul.f32 %v5277_v52, %v5245_v30  ;;  %v5280_v18 = vadd.f32 1.0, %v9897_v33  ;;  %v5105_v31 = vmul.f32 %v5073_v61, %v12701_v14  ;;  %v5161_v34 = vadd.f32 %v5129_v41, %v12644_v5 }
 0x9ff   : > { %v5279_v59 = vadd.f32 1.0, %v9909_v54  ;;  %v5074_v7 = vmul.f32 %v12718_v63, %v12718_v63  ;;  %v5248_v16 = vmul.f32 0.5, %v12514_v1  ;;  %9920 = vtanh.f32 %v5191_v27 }
 0xa00   : > { %v12731_v45 = vpop.eup %9910  ;;  %9407 = vmatprep.mubr.f32.mxu0 %v5309_v53  ;;  %v5136_v8 = vmul.f32 0.044715, %v5104_v32  ;;  %v5135_v25 = vmul.f32 0.044715, %v5103_v12  ;;  %v5193_v37 = vmul.f32 0.7978846, %v5161_v34  ;;  %v5163_v15 = vadd.f32 %v5131_v56, %v12668_v39 }
 0xa01   : > { %v5196_v33 = vmul.f32 0.7978846, %v5164_v46  ;;  %v5166_v11 = vadd.f32 %v5134_v20, %v12672_v44  ;;  %9408 = vmatmul.mubr.f32.gmra.mxu0 %v5310_v43  ;;  %v5311_v41 = vmul.f32 %v5279_v59, %v5247_v2  ;;  %v5165_v10 = vadd.f32 %v5133_v9, %v12678_v6 }
 0xa02   : > { %v12736_v40 = vpop.eup %9912  ;;  %v5312_v3 = vmul.f32 %v5280_v18, %v5248_v16  ;;  %v5137_v1 = vmul.f32 0.044715, %v5105_v31  ;;  %9922 = vtanh.f32 %v5193_v37  ;;  %v5195_v51 = vmul.f32 0.7978846, %v5163_v15 }
 0xa03   : > { %v9915_v28 = vpop.eup %9914  ;;  %9410 = vmatprep.mubr.f32.mxu0 %v5311_v41  ;;  %v5106_v22 = vmul.f32 %v5074_v7, %v12718_v63  ;;  %v5249_v17 = vmul.f32 0.5, %v12589_v21  ;;  %v5282_v42 = vadd.f32 1.0, %v12684_v50  ;;  %v5197_v46 = vmul.f32 0.7978846, %v5165_v10 }
 0xa04   : > { %v5168_v62 = vadd.f32 %v5136_v8, %v12690_v24  ;;  %v5281_v30 = vadd.f32 1.0, %v9915_v28  ;;  %9924 = vtanh.f32 %v5195_v51  ;;  %v5167_v0 = vadd.f32 %v5135_v25, %v12693_v48 }
 0xa05   : > { %v5198_v56 = vmul.f32 0.7978846, %v5166_v11  ;;  %9411 = vmatmul.mubr.f32.gmra.mxu0 %v5312_v3  ;;  %v5250_v57 = vmul.f32 0.5, %v12546_v13  ;;  %9926 = vtanh.f32 %v5197_v46  ;;  %v5169_v20 = vadd.f32 %v5137_v1, %v12701_v14 }
 0xa06   : > { %v5313_v61 = vmul.f32 %v5281_v30, %v5249_v17  ;;  %v5199_v26 = vmul.f32 0.7978846, %v5167_v0  ;;  %9928 = vtanh.f32 %v5196_v33  ;;  %v5138_v21 = vmul.f32 0.044715, %v5106_v22 }
 0xa07   : > { %v9917_v4 = vpop.eup %9916  ;;  %v5314_v50 = vmul.f32 %v5282_v42, %v5250_v57  ;;  %v5284_v35 = vadd.f32 1.0, %v12697_v60  ;;  %v5200_v52 = vmul.f32 0.7978846, %v5168_v62  ;;  %v5251_v32 = vmul.f32 0.5, %v12614_v38 }
 0xa08   : > { %9413 = vmatprep.mubr.f32.mxu0 %v5313_v61  ;;  %v5283_v43 = vadd.f32 1.0, %v9917_v4  ;;  %9930 = vtanh.f32 %v5198_v56  ;;  %v5252_v13 = vmul.f32 0.5, %v12556_v47  ;;  %v5253_v2 = vmul.f32 0.5, %v12620_v49 }
 0xa09   : > { %9414 = vmatmul.mubr.f32.gmra.mxu0 %v5314_v50  ;;  %9932 = vtanh.f32 %v5199_v26  ;;  %v5201_v27 = vmul.f32 0.7978846, %v5169_v20  ;;  %v5170_v54 = vadd.f32 %v5138_v21, %v12718_v63  ;;  %v5286_v60 = vadd.f32 1.0, %v12723_v23 }
 0xa0a   : > { %v9919_v12 = vpop.eup %9918  ;;  %v5315_v9 = vmul.f32 %v5283_v43, %v5251_v32  ;;  %v5316_v53 = vmul.f32 %v5284_v35, %v5252_v13  ;;  %9934 = vtanh.f32 %v5200_v52  ;;  %v5254_v34 = vmul.f32 0.5, %v12577_v19  ;;  %v5771_v32 = vld [vmem:[%s13656_s4] sm:$0xff] }
 0xa0b   : > { %v5285_v18 = vadd.f32 1.0, %v9919_v12  ;;  %v5255_v47 = vmul.f32 0.5, %v12636_v55  ;;  %9936 = vtanh.f32 %v5201_v27  ;;  %v5202_v7 = vmul.f32 0.7978846, %v5170_v54  ;;  %9444 = vmatprep.subr.mxu1 %v5771_v32  ;;  %v12781_v43 = vld [vmem:[%s13656_s4 + $0x40] sm:$0xff] }
 0xa0c   : > { %v9921_v31 = vpop.eup %9920  ;;  %9416 = vmatprep.mubr.f32.mxu0 %v5315_v9  ;;  %v5318_v16 = vmul.f32 %v5286_v60, %v5254_v34  ;;  %v5288_v25 = vadd.f32 1.0, %v12731_v45  ;;  %v5257_v23 = vmul.f32 0.5, %v12644_v5  ;;  %v5256_v33 = vmul.f32 0.5, %v12593_v29  ;;  %9445 = vmatpush3.msra.mxu1 %v5771_v32  ;;  %v12787_v13 = vld [vmem:[%s13660_s8] ss:$0 sm:$0xff] }
 0xa0d   : > { %9417 = vmatmul.mubr.f32.gmra.mxu0 %v5316_v53  ;;  %v5317_v38 = vmul.f32 %v5285_v18, %v5253_v2  ;;  %v5287_v59 = vadd.f32 1.0, %v9921_v31  ;;  %9938 = vtanh.f32 %v5202_v7  ;;  %v5290_v10 = vadd.f32 1.0, %v12736_v40  ;;  %9548 = vmatprep.subr.mxu1 %v12781_v43 }
 0xa0e   : > { %v5320_v41 = vmul.f32 %v5288_v25, %v5256_v33  ;;  %v5259_v1 = vmul.f32 0.5, %v12668_v39  ;;  %v5258_v45 = vmul.f32 0.5, %v12602_v36  ;;  %v5261_v42 = vmul.f32 0.5, %v12678_v6 }
 0xa0f   : > { %v9923_v49 = vpop.eup %9922  ;;  %9419 = vmatprep.mubr.f32.mxu0 %v5317_v38  ;;  %v5319_v8 = vmul.f32 %v5287_v59, %v5255_v47  ;;  %v5260_v62 = vmul.f32 0.5, %v12652_v58  ;;  %v5263_v36 = vmul.f32 0.5, %v12693_v48  ;;  %v5262_v57 = vmul.f32 0.5, %v12672_v44 }
 0xa10   : > { %v5289_v37 = vadd.f32 1.0, %v9923_v49  ;;  %v5322_v29 = vmul.f32 %v5290_v10, %v5258_v45  ;;  %v5265_v21 = vmul.f32 0.5, %v12701_v14  ;;  %v5264_v58 = vmul.f32 0.5, %v12690_v24  ;;  %v7479_v24 = vld [vmem:[%s13656_s4 + $0x28] sm:$0xff]  ;;  %v7478_v14 = vld [vmem:[%s13656_s4 + $0x20] sm:$0xff] }
 0xa11   : > { %v9925_v15 = vpop.eup %9924  ;;  %9420 = vmatmul.mubr.f32.gmra.mxu0 %v5318_v16  ;;  %v5266_v48 = vmul.f32 0.5, %v12718_v63  ;;  %9494 = vmatprep.subr.mxu0 %v7479_v24  ;;  %v7477_v63 = vld [vmem:[%s13656_s4 + $0x18] sm:$0xff] }
 0xa12   : > { %9422 = vmatprep.mubr.f32.mxu0 %v5319_v8  ;;  %v5321_v19 = vmul.f32 %v5289_v37, %v5257_v23  ;;  %v5291_v11 = vadd.f32 1.0, %v9925_v15  ;;  %v9927_v55 = vpop.eup %9926  ;;  %9495 = vmatpush3.msra.mxu0 %v7479_v24 }
 0xa13   : > { %v9929_v3 = vpop.eup %9928  ;;  %v5293_v28 = vadd.f32 1.0, %v9927_v55  ;;  %9496 = vmatprep.subr.mxu0 %v7478_v14 }
 0xa14   : > { %v5323_v51 = vmul.f32 %v5291_v11, %v5259_v1  ;;  %v5292_v17 = vadd.f32 1.0, %v9929_v3  ;;  %9497 = vmatpush3.msra.mxu0 %v7478_v14 }
 0xa15   : > { %9423 = vmatmul.mubr.f32.gmra.mxu0 %v5320_v41  ;;  %v9931_v5 = vpop.eup %9930  ;;  %v5325_v40 = vmul.f32 %v5293_v28, %v5261_v42  ;;  %9498 = vmatprep.subr.mxu0 %v7477_v63 }
 0xa16   : > { %9425 = vmatprep.mubr.f32.mxu0 %v5321_v19  ;;  %v9933_v22 = vpop.eup %9932  ;;  %v5324_v0 = vmul.f32 %v5292_v17, %v5260_v62  ;;  %v5294_v56 = vadd.f32 1.0, %v9931_v5  ;;  %9499 = vmatpush3.msra.mxu0 %v7477_v63 }
 0xa17   : > { %v9935_v46 = vpop.eup %9934  ;;  %v5295_v30 = vadd.f32 1.0, %v9933_v22 }
 0xa18   : > { %v9937_v39 = vpop.eup %9936  ;;  %v5326_v20 = vmul.f32 %v5294_v56, %v5262_v57  ;;  %v5296_v6 = vadd.f32 1.0, %v9935_v46 }
 0xa19   : > { %9426 = vmatmul.mubr.f32.gmra.mxu0 %v5322_v29  ;;  %v5327_v61 = vmul.f32 %v5295_v30, %v5263_v36  ;;  %v5297_v26 = vadd.f32 1.0, %v9937_v39 }
 0xa1a   : > { %9428 = vmatprep.mubr.f32.mxu0 %v5323_v51  ;;  %v9939_v4 = vpop.eup %9938  ;;  %v5328_v35 = vmul.f32 %v5296_v6, %v5264_v58 }
 0xa1b   : > { %v5329_v50 = vmul.f32 %v5297_v26, %v5265_v21  ;;  %v5298_v52 = vadd.f32 1.0, %v9939_v4 }
 0xa1d   : > { %9429 = vmatmul.mubr.f32.gmra.mxu0 %v5324_v0  ;;  %v5330_v44 = vmul.f32 %v5298_v52, %v5266_v48 }
 0xa1e   : > { %9431 = vmatprep.mubr.f32.mxu0 %v5325_v40  ;;  %v7513_v40 = vld [vmem:[%s13656_s4 + $0x38] sm:$0xff] }
 0xa21   : > { %9432 = vmatmul.mubr.f32.gmra.mxu0 %v5326_v20 }
 0xa22   : > { %9434 = vmatprep.mubr.f32.mxu0 %v5327_v61  ;;  %v7512_v61 = vld [vmem:[%s13656_s4 + $0x30] sm:$0xff] }
 0xa25   : > { %9435 = vmatmul.mubr.f32.gmra.mxu0 %v5328_v35 }
 0xa26   : > { %9437 = vmatprep.mubr.f32.mxu0 %v5329_v50 }
 0xa29   : > { %9438 = vmatmul.mubr.f32.gmra.mxu0 %v5330_v44 }
 0xa96   : > { %v9394_v12 = vpop.f32.mrf.mxu0 }
 0xa97   : > { %v5426_v9 = vadd.f32 %v9394_v12, %v12787_v13 }
 0xa98   : > { %v5420_v2 = vpop.f32.mrf.mxu0 }
 0xa99   : > { %v7414_v27 = vmul.f32 -1.442695, %v5426_v9  ;;  %v5421_v54 = vadd.f32 %v12787_v13, %v5420_v2 }
 0xa9a   : > { %v9397_v53 = vpop.f32.mrf.mxu0 }
 0xa9b   : > { %9940 = vpow2.f32 %v7414_v27  ;;  %v7413_v18 = vmul.f32 -1.442695, %v5421_v54  ;;  %v5436_v60 = vadd.f32 %v9397_v53, %v12787_v13 }
 0xa9c   : > { %v5430_v31 = vpop.f32.mrf.mxu0 }
 0xa9d   : > { %9942 = vpow2.f32 %v7413_v18  ;;  %v7416_v38 = vmul.f32 -1.442695, %v5436_v60  ;;  %v5431_v34 = vadd.f32 %v12787_v13, %v5430_v31 }
 0xa9e   : > { %v9400_v47 = vpop.f32.mrf.mxu0 }
 0xa9f   : > { %9944 = vpow2.f32 %v7416_v38  ;;  %v7415_v59 = vmul.f32 -1.442695, %v5431_v34  ;;  %v5446_v49 = vadd.f32 %v9400_v47, %v12787_v13 }
 0xaa0   : > { %v5440_v7 = vpop.f32.mrf.mxu0 }
 0xaa1   : > { %9946 = vpow2.f32 %v7415_v59  ;;  %v7418_v16 = vmul.f32 -1.442695, %v5446_v49  ;;  %v5441_v8 = vadd.f32 %v12787_v13, %v5440_v7 }
 0xaa3   : > { %9948 = vpow2.f32 %v7418_v16  ;;  %v7417_v25 = vmul.f32 -1.442695, %v5441_v8 }
 0xaa5   : > { %9950 = vpow2.f32 %v7417_v25 }
 0xaa8   : > { %v9941_v23 = vpop.eup %9940 }
 0xaa9   : > { %v5676_v15 = vadd.f32 1.0, %v9941_v23 }
 0xaaa   : > { %v9943_v37 = vpop.eup %9942 }
 0xaab   : > { %v5675_v33 = vadd.f32 1.0, %v9943_v37 }
 0xaac   : > { %v9945_v19 = vpop.eup %9944 }
 0xaad   : > { %9952 = vrcp.f32 %v5675_v33  ;;  %v5678_v55 = vadd.f32 1.0, %v9945_v19 }
 0xaae   : > { %v9947_v11 = vpop.eup %9946  ;;  %9954 = vrcp.f32 %v5676_v15 }
 0xaaf   : > { %v5677_v41 = vadd.f32 1.0, %v9947_v11  ;;  %v9403_v3 = vpop.f32.mrf.mxu0 }
 0xab0   : > { %v9949_v10 = vpop.eup %9948  ;;  %v5456_v45 = vadd.f32 %v9403_v3, %v12787_v13 }
 0xab1   : > { %9956 = vrcp.f32 %v5677_v41  ;;  %v5680_v1 = vadd.f32 1.0, %v9949_v10  ;;  %v5450_v51 = vpop.f32.mrf.mxu0 }
 0xab2   : > { %v9951_v5 = vpop.eup %9950  ;;  %9958 = vrcp.f32 %v5678_v55  ;;  %v7420_v22 = vmul.f32 -1.442695, %v5456_v45  ;;  %v5451_v29 = vadd.f32 %v12787_v13, %v5450_v51 }
 0xab3   : > { %v5679_v28 = vadd.f32 1.0, %v9951_v5  ;;  %9960 = vrcp.f32 %v5680_v1 }
 0xab4   : > { %v7419_v17 = vmul.f32 -1.442695, %v5451_v29 }
 0xab5   : > { %9962 = vrcp.f32 %v5679_v28 }
 0xab6   : > { %9964 = vpow2.f32 %v7420_v22 }
 0xab7   : > { %9966 = vpow2.f32 %v7419_v17 }
 0xaba   : > { %v12797_v42 = vpop.eup %9952  ;;  %v9406_v62 = vpop.f32.mrf.mxu0 }
 0xabb   : > { %v12799_v46 = vpop.eup %9954  ;;  %9446 = vmatprep.mubr.msk.f32.mxu1 %vm5774_vm1, %v12797_v42  ;;  %9500 = vmatprep.mubr.msk.f32.mxu0 %vm5774_vm1, %v12797_v42  ;;  %v5466_v30 = vadd.f32 %v9406_v62, %v12787_v13 }
 0xabc   : > { %9447 = vmatmul.mubr.msk.f32.vlgmr.msra.gmra.mxu1 %vm5774_vm1, %v12799_v46  ;;  %9501 = vmatmul.mubr.msk.f32.vlgmr.msra.gmra.mxu0 %vm5774_vm1, %v12799_v46  ;;  %v5460_v39 = vpop.f32.mrf.mxu0 }
 0xabd   : > { %9549 = vmatpush3.msra.mxu1 %v12781_v43  ;;  %v7422_v56 = vmul.f32 -1.442695, %v5466_v30  ;;  %v5461_v36 = vadd.f32 %v12787_v13, %v5460_v39 }
 0xabe   : > { %v12814_v0 = vpop.eup %9956  ;;  %9550 = vmatprep.subr.mxu1 %v7513_v40 }
 0xabf   : > { %v12817_v57 = vpop.eup %9958  ;;  %9449 = vmatprep.mubr.msk.f32.mxu1 %vm5774_vm1, %v12814_v0  ;;  %9503 = vmatprep.mubr.msk.f32.mxu0 %vm5774_vm1, %v12814_v0  ;;  %9968 = vpow2.f32 %v7422_v56  ;;  %v7421_v26 = vmul.f32 -1.442695, %v5461_v36 }
 0xac0   : > { %9450 = vmatmul.mubr.msk.f32.gmra.mxu1 %vm5774_vm1, %v12817_v57  ;;  %9504 = vmatmul.mubr.msk.f32.gmra.mxu0 %vm5774_vm1, %v12817_v57  ;;  %v12830_v20 = vpop.eup %9960 }
 0xac1   : > { %9551 = vmatpush3.msra.mxu1 %v7513_v40  ;;  %9970 = vpow2.f32 %v7421_v26  ;;  %v9409_v4 = vpop.f32.mrf.mxu0 }
 0xac2   : > { %v12832_v6 = vpop.eup %9962  ;;  %9552 = vmatprep.subr.mxu1 %v7512_v61  ;;  %v5476_v58 = vadd.f32 %v9409_v4, %v12787_v13 }
 0xac3   : > { %v9965_v21 = vpop.eup %9964  ;;  %9452 = vmatprep.mubr.msk.f32.mxu1 %vm5774_vm1, %v12832_v6  ;;  %9506 = vmatprep.mubr.msk.f32.mxu0 %vm5774_vm1, %v12832_v6  ;;  %v5470_v52 = vpop.f32.mrf.mxu0 }
 0xac4   : > { %v9967_v50 = vpop.eup %9966  ;;  %v5682_v35 = vadd.f32 1.0, %v9965_v21  ;;  %9453 = vmatmul.mubr.msk.f32.gmra.mxu1 %vm5774_vm1, %v12830_v20  ;;  %9507 = vmatmul.mubr.msk.f32.gmra.mxu0 %vm5774_vm1, %v12830_v20  ;;  %v7424_v44 = vmul.f32 -1.442695, %v5476_v58  ;;  %v5471_v32 = vadd.f32 %v12787_v13, %v5470_v52 }
 0xac5   : > { %v5681_v48 = vadd.f32 1.0, %v9967_v50  ;;  %9553 = vmatpush3.msra.mxu1 %v7512_v61  ;;  %v9412_v24 = vpop.f32.mrf.mxu0 }
 0xac6   : > { %9972 = vrcp.f32 %v5682_v35  ;;  %v7423_v14 = vmul.f32 -1.442695, %v5471_v32  ;;  %v5486_v63 = vadd.f32 %v9412_v24, %v12787_v13 }
 0xac7   : > { %9974 = vrcp.f32 %v5681_v48  ;;  %v5480_v43 = vpop.f32.mrf.mxu0 }
 0xac8   : > { %9976 = vpow2.f32 %v7424_v44  ;;  %v7426_v12 = vmul.f32 -1.442695, %v5486_v63  ;;  %v5481_v9 = vadd.f32 %v12787_v13, %v5480_v43 }
 0xac9   : > { %9978 = vpow2.f32 %v7423_v14  ;;  %v9415_v2 = vpop.f32.mrf.mxu0 }
 0xaca   : > { %9980 = vpow2.f32 %v7426_v12  ;;  %v7425_v27 = vmul.f32 -1.442695, %v5481_v9  ;;  %v5496_v54 = vadd.f32 %v9415_v2, %v12787_v13 }
 0xacb   : > { %v5490_v53 = vpop.f32.mrf.mxu0 }
 0xacc   : > { %v9969_v18 = vpop.eup %9968  ;;  %9982 = vpow2.f32 %v7425_v27  ;;  %v7428_v60 = vmul.f32 -1.442695, %v5496_v54  ;;  %v5491_v31 = vadd.f32 %v12787_v13, %v5490_v53 }
 0xacd   : > { %v5684_v38 = vadd.f32 1.0, %v9969_v18  ;;  %v9418_v34 = vpop.f32.mrf.mxu0 }
 0xace   : > { %v9971_v47 = vpop.eup %9970  ;;  %9984 = vpow2.f32 %v7428_v60  ;;  %v7427_v59 = vmul.f32 -1.442695, %v5491_v31  ;;  %v5506_v49 = vadd.f32 %v9418_v34, %v12787_v13 }
 0xacf   : > { %9986 = vrcp.f32 %v5684_v38  ;;  %v5683_v7 = vadd.f32 1.0, %v9971_v47  ;;  %v5500_v16 = vpop.f32.mrf.mxu0 }
 0xad0   : > { %9988 = vpow2.f32 %v7427_v59  ;;  %v7430_v8 = vmul.f32 -1.442695, %v5506_v49  ;;  %v5501_v25 = vadd.f32 %v12787_v13, %v5500_v16 }
 0xad1   : > { %9990 = vrcp.f32 %v5683_v7  ;;  %v9421_v23 = vpop.f32.mrf.mxu0 }
 0xad2   : > { %9992 = vpow2.f32 %v7430_v8  ;;  %v7429_v15 = vmul.f32 -1.442695, %v5501_v25  ;;  %v5516_v33 = vadd.f32 %v9421_v23, %v12787_v13 }
 0xad3   : > { %v12850_v37 = vpop.eup %9972  ;;  %v5510_v11 = vpop.f32.mrf.mxu0 }
 0xad4   : > { %v12853_v19 = vpop.eup %9974  ;;  %9994 = vpow2.f32 %v7429_v15  ;;  %v7432_v41 = vmul.f32 -1.442695, %v5516_v33  ;;  %v5511_v10 = vadd.f32 %v12787_v13, %v5510_v11 }
 0xad5   : > { %v9977_v55 = vpop.eup %9976  ;;  %9455 = vmatprep.mubr.msk.f32.mxu1 %vm5774_vm1, %v12853_v19  ;;  %9509 = vmatprep.mubr.msk.f32.mxu0 %vm5774_vm1, %v12853_v19  ;;  %v9424_v45 = vpop.f32.mrf.mxu0 }
 0xad6   : > { %v9979_v3 = vpop.eup %9978  ;;  %v5686_v1 = vadd.f32 1.0, %v9977_v55  ;;  %9456 = vmatmul.mubr.msk.f32.gmra.mxu1 %vm5774_vm1, %v12850_v37  ;;  %9510 = vmatmul.mubr.msk.f32.gmra.mxu0 %vm5774_vm1, %v12850_v37  ;;  %9996 = vpow2.f32 %v7432_v41  ;;  %v7431_v51 = vmul.f32 -1.442695, %v5511_v10  ;;  %v5526_v28 = vadd.f32 %v9424_v45, %v12787_v13 }
 0xad7   : > { %v5685_v5 = vadd.f32 1.0, %v9979_v3  ;;  %v9981_v22 = vpop.eup %9980  ;;  %v5520_v29 = vpop.f32.mrf.mxu0 }
 0xad8   : > { %9998 = vrcp.f32 %v5686_v1  ;;  %v5688_v17 = vadd.f32 1.0, %v9981_v22  ;;  %v7434_v62 = vmul.f32 -1.442695, %v5526_v28  ;;  %v5521_v40 = vadd.f32 %v12787_v13, %v5520_v29 }
 0xad9   : > { %10000 = vrcp.f32 %v5685_v5  ;;  %v9983_v30 = vpop.eup %9982  ;;  %v9427_v39 = vpop.f32.mrf.mxu0 }
 0xada   : > { %10002 = vpow2.f32 %v7431_v51  ;;  %v5687_v56 = vadd.f32 1.0, %v9983_v30  ;;  %v7433_v36 = vmul.f32 -1.442695, %v5521_v40  ;;  %v5536_v61 = vadd.f32 %v9427_v39, %v12787_v13 }
 0xadb   : > { %10004 = vrcp.f32 %v5688_v17  ;;  %v9985_v26 = vpop.eup %9984  ;;  %v5530_v4 = vpop.f32.mrf.mxu0 }
 0xadc   : > { %10006 = vpow2.f32 %v7434_v62  ;;  %v12867_v21 = vpop.eup %9986  ;;  %v5690_v58 = vadd.f32 1.0, %v9985_v26  ;;  %v7436_v50 = vmul.f32 -1.442695, %v5536_v61  ;;  %v5531_v35 = vadd.f32 %v12787_v13, %v5530_v4 }
 0xadd   : > { %10008 = vrcp.f32 %v5687_v56  ;;  %v9989_v52 = vpop.eup %9988  ;;  %v9430_v48 = vpop.f32.mrf.mxu0 }
 0xade   : > { %10010 = vpow2.f32 %v7433_v36  ;;  %v12870_v44 = vpop.eup %9990  ;;  %v5689_v32 = vadd.f32 1.0, %v9989_v52  ;;  %v7435_v24 = vmul.f32 -1.442695, %v5531_v35  ;;  %v5546_v14 = vadd.f32 %v9430_v48, %v12787_v13 }
 0xadf   : > { %10012 = vrcp.f32 %v5690_v58  ;;  %v9993_v63 = vpop.eup %9992  ;;  %v5540_v43 = vpop.f32.mrf.mxu0  ;;  %9458 = vmatprep.mubr.msk.f32.mxu1 %vm5774_vm1, %v12870_v44  ;;  %9512 = vmatprep.mubr.msk.f32.mxu0 %vm5774_vm1, %v12870_v44 }
 0xae0   : > { %10014 = vpow2.f32 %v7436_v50  ;;  %v5692_v12 = vadd.f32 1.0, %v9993_v63  ;;  %v7438_v9 = vmul.f32 -1.442695, %v5546_v14  ;;  %v5541_v2 = vadd.f32 %v12787_v13, %v5540_v43  ;;  %9459 = vmatmul.mubr.msk.f32.gmra.mxu1 %vm5774_vm1, %v12867_v21  ;;  %9513 = vmatmul.mubr.msk.f32.gmra.mxu0 %vm5774_vm1, %v12867_v21 }
 0xae1   : > { %10016 = vrcp.f32 %v5689_v32  ;;  %v9995_v27 = vpop.eup %9994  ;;  %v9433_v54 = vpop.f32.mrf.mxu0 }
 0xae2   : > { %10018 = vpow2.f32 %v7435_v24  ;;  %v5691_v53 = vadd.f32 1.0, %v9995_v27  ;;  %v7437_v18 = vmul.f32 -1.442695, %v5541_v2  ;;  %v5556_v60 = vadd.f32 %v9433_v54, %v12787_v13 }
 0xae3   : > { %10020 = vrcp.f32 %v5692_v12  ;;  %v9997_v31 = vpop.eup %9996  ;;  %v5550_v38 = vpop.f32.mrf.mxu0 }
 0xae4   : > { %10022 = vpow2.f32 %v7438_v9  ;;  %v5694_v47 = vadd.f32 1.0, %v9997_v31  ;;  %v7440_v59 = vmul.f32 -1.442695, %v5556_v60  ;;  %v5551_v49 = vadd.f32 %v12787_v13, %v5550_v38 }
 0xae5   : > { %v12883_v34 = vpop.eup %9998  ;;  %10024 = vrcp.f32 %v5691_v53  ;;  %v9436_v16 = vpop.f32.mrf.mxu0 }
 0xae6   : > { %v12886_v7 = vpop.eup %10000  ;;  %10026 = vpow2.f32 %v7437_v18  ;;  %v7439_v25 = vmul.f32 -1.442695, %v5551_v49  ;;  %v5566_v23 = vadd.f32 %v9436_v16, %v12787_v13 }
 0xae7   : > { %v10003_v8 = vpop.eup %10002  ;;  %10028 = vrcp.f32 %v5694_v47  ;;  %9461 = vmatprep.mubr.msk.f32.mxu1 %vm5774_vm1, %v12886_v7  ;;  %9515 = vmatprep.mubr.msk.f32.mxu0 %vm5774_vm1, %v12886_v7  ;;  %v5560_v11 = vpop.f32.mrf.mxu0 }
 0xae8   : > { %v12893_v15 = vpop.eup %10004  ;;  %v5693_v33 = vadd.f32 1.0, %v10003_v8  ;;  %10030 = vpow2.f32 %v7440_v59  ;;  %9462 = vmatmul.mubr.msk.f32.gmra.mxu1 %vm5774_vm1, %v12883_v34  ;;  %9516 = vmatmul.mubr.msk.f32.gmra.mxu0 %vm5774_vm1, %v12883_v34  ;;  %v7442_v41 = vmul.f32 -1.442695, %v5566_v23  ;;  %v5561_v10 = vadd.f32 %v12787_v13, %v5560_v11 }
 0xae9   : > { %v10007_v55 = vpop.eup %10006  ;;  %10032 = vpow2.f32 %v7439_v25  ;;  %v9439_v45 = vpop.f32.mrf.mxu0 }
 0xaea   : > { %v12900_v3 = vpop.eup %10008  ;;  %10034 = vrcp.f32 %v5693_v33  ;;  %v5696_v1 = vadd.f32 1.0, %v10007_v55  ;;  %v7441_v51 = vmul.f32 -1.442695, %v5561_v10  ;;  %v5576_v28 = vadd.f32 %v9439_v45, %v12787_v13 }
 0xaeb   : > { %v10011_v5 = vpop.eup %10010  ;;  %10036 = vpow2.f32 %v7442_v41  ;;  %9464 = vmatprep.mubr.msk.f32.mxu1 %vm5774_vm1, %v12900_v3  ;;  %9518 = vmatprep.mubr.msk.f32.mxu0 %vm5774_vm1, %v12900_v3  ;;  %v5570_v17 = vpop.f32.mrf.mxu0 }
 0xaec   : > { %v12907_v22 = vpop.eup %10012  ;;  %10038 = vrcp.f32 %v5696_v1  ;;  %v5695_v29 = vadd.f32 1.0, %v10011_v5  ;;  %9465 = vmatmul.mubr.msk.f32.gmra.mxu1 %vm5774_vm1, %v12893_v15  ;;  %9519 = vmatmul.mubr.msk.f32.gmra.mxu0 %vm5774_vm1, %v12893_v15  ;;  %v7444_v40 = vmul.f32 -1.442695, %v5576_v28  ;;  %v5571_v30 = vadd.f32 %v12787_v13, %v5570_v17 }
 0xaed   : > { %v10015_v62 = vpop.eup %10014  ;;  %10040 = vpow2.f32 %v7441_v51 }
 0xaee   : > { %v12914_v39 = vpop.eup %10016  ;;  %10042 = vrcp.f32 %v5695_v29  ;;  %v5698_v36 = vadd.f32 1.0, %v10015_v62  ;;  %v7443_v61 = vmul.f32 -1.442695, %v5571_v30 }
 0xaef   : > { %v10019_v56 = vpop.eup %10018  ;;  %10044 = vpow2.f32 %v7444_v40  ;;  %9467 = vmatprep.mubr.msk.f32.mxu1 %vm5774_vm1, %v12914_v39  ;;  %9521 = vmatprep.mubr.msk.f32.mxu0 %vm5774_vm1, %v12914_v39 }
 0xaf0   : > { %v12920_v26 = vpop.eup %10020  ;;  %v5697_v4 = vadd.f32 1.0, %v10019_v56  ;;  %9468 = vmatmul.mubr.msk.f32.gmra.mxu1 %vm5774_vm1, %v12907_v22  ;;  %9522 = vmatmul.mubr.msk.f32.gmra.mxu0 %vm5774_vm1, %v12907_v22  ;;  %10046 = vpow2.f32 %v7443_v61 }
 0xaf1   : > { %v10023_v13 = vpop.eup %10022 }
 0xaf2   : > { %v12926_v58 = vpop.eup %10024  ;;  %10048 = vrcp.f32 %v5697_v4  ;;  %v5700_v35 = vadd.f32 1.0, %v10023_v13 }
 0xaf3   : > { %v10027_v50 = vpop.eup %10026  ;;  %10050 = vrcp.f32 %v5698_v36  ;;  %9470 = vmatprep.mubr.msk.f32.mxu1 %vm5774_vm1, %v12926_v58  ;;  %9524 = vmatprep.mubr.msk.f32.mxu0 %vm5774_vm1, %v12926_v58 }
 0xaf4   : > { %v12932_v52 = vpop.eup %10028  ;;  %v5699_v48 = vadd.f32 1.0, %v10027_v50  ;;  %9471 = vmatmul.mubr.msk.f32.gmra.mxu1 %vm5774_vm1, %v12920_v26  ;;  %9525 = vmatmul.mubr.msk.f32.gmra.mxu0 %vm5774_vm1, %v12920_v26 }
 0xaf5   : > { %v10031_v32 = vpop.eup %10030 }
 0xaf6   : > { %v10033_v24 = vpop.eup %10032  ;;  %10052 = vrcp.f32 %v5699_v48  ;;  %v5702_v63 = vadd.f32 1.0, %v10031_v32  ;;  %v10087_v32 = vld [vmem:[%s10560_s15 + $0x108] sm:$0xff] }
 0xaf7   : > { %v12938_v14 = vpop.eup %10034  ;;  %10054 = vrcp.f32 %v5700_v35  ;;  %v5701_v43 = vadd.f32 1.0, %v10033_v24 }
 0xaf8   : > { %v10037_v12 = vpop.eup %10036  ;;  %9473 = vmatprep.mubr.msk.f32.mxu1 %vm5774_vm1, %v12938_v14  ;;  %9527 = vmatprep.mubr.msk.f32.mxu0 %vm5774_vm1, %v12938_v14 }
 0xaf9   : > { %v12944_v9 = vpop.eup %10038  ;;  %10056 = vrcp.f32 %v5701_v43  ;;  %9474 = vmatmul.mubr.msk.f32.gmra.mxu1 %vm5774_vm1, %v12932_v52  ;;  %9528 = vmatmul.mubr.msk.f32.gmra.mxu0 %vm5774_vm1, %v12932_v52  ;;  %v5704_v54 = vadd.f32 1.0, %v10037_v12  ;;  %v10089_v43 = vld [vmem:[%s10560_s15 + $0x100] sm:$0xff] }
 0xafa   : > { %v10041_v2 = vpop.eup %10040  ;;  %10058 = vrcp.f32 %v5702_v63 }
 0xafb   : > { %v12950_v27 = vpop.eup %10042  ;;  %v5703_v53 = vadd.f32 1.0, %v10041_v2 }
 0xafc   : > { %v10045_v18 = vpop.eup %10044  ;;  %9476 = vmatprep.mubr.msk.f32.mxu1 %vm5774_vm1, %v12950_v27  ;;  %9530 = vmatprep.mubr.msk.f32.mxu0 %vm5774_vm1, %v12950_v27 }
 0xafd   : > { %10060 = vrcp.f32 %v5703_v53  ;;  %9477 = vmatmul.mubr.msk.f32.gmra.mxu1 %vm5774_vm1, %v12944_v9  ;;  %9531 = vmatmul.mubr.msk.f32.gmra.mxu0 %vm5774_vm1, %v12944_v9  ;;  %v10047_v60 = vpop.eup %10046  ;;  %v5706_v38 = vadd.f32 1.0, %v10045_v18  ;;  %v10092_v18 = vld [vmem:[%s10560_s15 + $0x10] sm:$0xff] }
 0xafe   : > { %10062 = vrcp.f32 %v5704_v54  ;;  %v5705_v47 = vadd.f32 1.0, %v10047_v60 }
 0xaff   : > { %v10049_v31 = vpop.eup %10048 }
 0xb00   : > { %v10051_v59 = vpop.eup %10050  ;;  %9479 = vmatprep.mubr.msk.f32.mxu1 %vm5774_vm1, %v10049_v31  ;;  %9533 = vmatprep.mubr.msk.f32.mxu0 %vm5774_vm1, %v10049_v31  ;;  %10064 = vrcp.f32 %v5705_v47  ;;  %v10094_v47 = vld [vmem:[%s10560_s15 + $0x28] sm:$0xff] }
 0xb01   : > { %9480 = vmatmul.mubr.msk.f32.gmra.mxu1 %vm5774_vm1, %v10051_v59  ;;  %9534 = vmatmul.mubr.msk.f32.gmra.mxu0 %vm5774_vm1, %v10051_v59  ;;  %10066 = vrcp.f32 %v5706_v38 }
 0xb03   : > { %v10053_v49 = vpop.eup %10052 }
 0xb04   : > { %v10055_v16 = vpop.eup %10054  ;;  %9482 = vmatprep.mubr.msk.f32.mxu1 %vm5774_vm1, %v10053_v49  ;;  %9536 = vmatprep.mubr.msk.f32.mxu0 %vm5774_vm1, %v10053_v49 }
 0xb05   : > { %9483 = vmatmul.mubr.msk.f32.gmra.mxu1 %vm5774_vm1, %v10055_v16  ;;  %9537 = vmatmul.mubr.msk.f32.gmra.mxu0 %vm5774_vm1, %v10055_v16 }
 0xb06   : > { %v10057_v8 = vpop.eup %10056 }
 0xb07   : > { %9485 = vmatprep.mubr.msk.f32.mxu1 %vm5774_vm1, %v10057_v8  ;;  %9539 = vmatprep.mubr.msk.f32.mxu0 %vm5774_vm1, %v10057_v8  ;;  %v10059_v25 = vpop.eup %10058 }
 0xb09   : > { %9486 = vmatmul.mubr.msk.f32.gmra.mxu1 %vm5774_vm1, %v10059_v25  ;;  %9540 = vmatmul.mubr.msk.f32.gmra.mxu0 %vm5774_vm1, %v10059_v25 }
 0xb0a   : > { %v10061_v23 = vpop.eup %10060 }
 0xb0b   : > { %9488 = vmatprep.mubr.msk.f32.mxu1 %vm5774_vm1, %v10061_v23  ;;  %9542 = vmatprep.mubr.msk.f32.mxu0 %vm5774_vm1, %v10061_v23  ;;  %v10063_v33 = vpop.eup %10062 }
 0xb0d   : > { %9489 = vmatmul.mubr.msk.f32.gmra.mxu1 %vm5774_vm1, %v10063_v33  ;;  %9543 = vmatmul.mubr.msk.f32.gmra.mxu0 %vm5774_vm1, %v10063_v33  ;;  %v10065_v11 = vpop.eup %10064 }
 0xb0e   : > { %9491 = vmatprep.mubr.msk.f32.mxu1 %vm5774_vm1, %v10065_v11  ;;  %9545 = vmatprep.mubr.msk.f32.mxu0 %vm5774_vm1, %v10065_v11  ;;  %v10067_v55 = vpop.eup %10066 }
 0xb11   : > { %9492 = vmatmul.mubr.msk.f32.gmra.mxu1 %vm5774_vm1, %v10067_v55  ;;  %9546 = vmatmul.mubr.msk.f32.gmra.mxu0 %vm5774_vm1, %v10067_v55 }
 0xb12   : > { %9554 = vmatprep.mubr.msk.f32.mxu1 %vm5774_vm1, %v12797_v42 }
 0xb15   : > { %9555 = vmatmul.mubr.msk.f32.vlgmr.msra.gmra.mxu1 %vm5774_vm1, %v12799_v46 }
 0xb16   : > { %9557 = vmatprep.mubr.msk.f32.mxu1 %vm5774_vm1, %v12814_v0 }
 0xb19   : > { %9558 = vmatmul.mubr.msk.f32.gmra.mxu1 %vm5774_vm1, %v12817_v57 }
 0xb1a   : > { %9560 = vmatprep.mubr.msk.f32.mxu1 %vm5774_vm1, %v12832_v6 }
 0xb1d   : > { %9561 = vmatmul.mubr.msk.f32.gmra.mxu1 %vm5774_vm1, %v12830_v20 }
 0xb1e   : > { %9563 = vmatprep.mubr.msk.f32.mxu1 %vm5774_vm1, %v12853_v19 }
 0xb21   : > { %9564 = vmatmul.mubr.msk.f32.gmra.mxu1 %vm5774_vm1, %v12850_v37 }
 0xb22   : > { %9566 = vmatprep.mubr.msk.f32.mxu1 %vm5774_vm1, %v12870_v44 }
 0xb25   : > { %9567 = vmatmul.mubr.msk.f32.gmra.mxu1 %vm5774_vm1, %v12867_v21 }
 0xb26   : > { %9569 = vmatprep.mubr.msk.f32.mxu1 %vm5774_vm1, %v12886_v7 }
 0xb29   : > { %9570 = vmatmul.mubr.msk.f32.gmra.mxu1 %vm5774_vm1, %v12883_v34 }
 0xb2a   : > { %9572 = vmatprep.mubr.msk.f32.mxu1 %vm5774_vm1, %v12900_v3 }
 0xb2d   : > { %9573 = vmatmul.mubr.msk.f32.gmra.mxu1 %vm5774_vm1, %v12893_v15 }
 0xb2e   : > { %9575 = vmatprep.mubr.msk.f32.mxu1 %vm5774_vm1, %v12914_v39 }
 0xb31   : > { %9576 = vmatmul.mubr.msk.f32.gmra.mxu1 %vm5774_vm1, %v12907_v22 }
 0xb32   : > { %9578 = vmatprep.mubr.msk.f32.mxu1 %vm5774_vm1, %v12926_v58 }
 0xb35   : > { %9579 = vmatmul.mubr.msk.f32.gmra.mxu1 %vm5774_vm1, %v12920_v26 }
 0xb36   : > { %9581 = vmatprep.mubr.msk.f32.mxu1 %vm5774_vm1, %v12938_v14  ;;  %v10088_v14 = vld [vmem:[%s10560_s15] sm:$0xff] }
 0xb39   : > { %9582 = vmatmul.mubr.msk.f32.gmra.mxu1 %vm5774_vm1, %v12932_v52  ;;  %v10086_v52 = vld [vmem:[%s10560_s15 + $0x8] sm:$0xff] }
 0xb3a   : > { %9584 = vmatprep.mubr.msk.f32.mxu1 %vm5774_vm1, %v12950_v27  ;;  %v10091_v27 = vld [vmem:[%s10560_s15 + $0x118] sm:$0xff] }
 0xb3d   : > { %9585 = vmatmul.mubr.msk.f32.gmra.mxu1 %vm5774_vm1, %v12944_v9  ;;  %v10090_v9 = vld [vmem:[%s10560_s15 + $0x18] sm:$0xff] }
 0xb3e   : > { %9587 = vmatprep.mubr.msk.f32.mxu1 %vm5774_vm1, %v10049_v31  ;;  %v10093_v31 = vld [vmem:[%s10560_s15 + $0x110] sm:$0xff] }
 0xb41   : > { %9588 = vmatmul.mubr.msk.f32.gmra.mxu1 %vm5774_vm1, %v10051_v59 }
 0xb42   : > { %9590 = vmatprep.mubr.msk.f32.mxu1 %vm5774_vm1, %v10053_v49  ;;  %v10095_v49 = vld [vmem:[%s10560_s15 + $0x128] sm:$0xff] }
 0xb45   : > { %9591 = vmatmul.mubr.msk.f32.gmra.mxu1 %vm5774_vm1, %v10055_v16 }
 0xb46   : > { %9593 = vmatprep.mubr.msk.f32.mxu1 %vm5774_vm1, %v10057_v8 }
 0xb49   : > { %9594 = vmatmul.mubr.msk.f32.gmra.mxu1 %vm5774_vm1, %v10059_v25  ;;  %v10096_v25 = vld [vmem:[%s10560_s15 + $0x20] sm:$0xff] }
 0xb4a   : > { %9596 = vmatprep.mubr.msk.f32.mxu1 %vm5774_vm1, %v10061_v23 }
 0xb4d   : > { %9597 = vmatmul.mubr.msk.f32.gmra.mxu1 %vm5774_vm1, %v10063_v33  ;;  %v10097_v33 = vld [vmem:[%s10560_s15 + $0x120] sm:$0xff] }
 0xb4e   : > { %9599 = vmatprep.mubr.msk.f32.mxu1 %vm5774_vm1, %v10065_v11 }
 0xb51   : > { %9600 = vmatmul.mubr.msk.f32.gmra.mxu1 %vm5774_vm1, %v10067_v55 }
 0xb7c   : > { %v9448_v42 = vpop.f32.mrf.mxu1  ;;  %v9502_v0 = vpop.f32.mrf.mxu0 }
 0xb7d   : > { %v6097_v48 = vmul.f32 %v10086_v52, %v9448_v42  ;;  %v6390_v24 = vmul.f32 %v10087_v32, %v9502_v0 }
 0xb7e   : > { %v5937_v46 = vpop.f32.mrf.mxu1  ;;  %v6230_v20 = vpop.f32.mrf.mxu0 }
 0xb7f   : > { %v6096_v63 = vmul.f32 %v10088_v14, %v5937_v46  ;;  %v6389_v12 = vmul.f32 %v10089_v43, %v6230_v20  ;;  %v13102_v42 = vadd.f32 %v10086_v52, %v6097_v48  ;;  %v13104_v46 = vadd.f32 %v10087_v32, %v6390_v24  ;;  %v10098_v32 = vld [vmem:[%s10560_s15 + $0x38] sm:$0xff] }
 0xb80   : > { %v9451_v57 = vpop.f32.mrf.mxu1  ;;  %v9505_v37 = vpop.f32.mrf.mxu0 }
 0xb81   : > { %v6099_v2 = vmul.f32 %v10090_v9, %v9451_v57  ;;  %v6392_v54 = vmul.f32 %v10091_v27, %v9505_v37  ;;  %v13106_v0 = vadd.f32 %v10088_v14, %v6096_v63  ;;  %v13108_v57 = vadd.f32 %v10089_v43, %v6389_v12  ;;  %v10099_v14 = vld [vmem:[%s10560_s15 + $0x138] sm:$0xff]  ;;  %v10100_v12 = vld [vmem:[%s10560_s15 + $0x30] sm:$0xff] }
 0xb82   : > { %v5947_v6 = vpop.f32.mrf.mxu1  ;;  %v6240_v21 = vpop.f32.mrf.mxu0 }
 0xb83   : > { %v6098_v60 = vmul.f32 %v10092_v18, %v5947_v6  ;;  %v6391_v38 = vmul.f32 %v10093_v31, %v6240_v21  ;;  %v13110_v20 = vadd.f32 %v10090_v9, %v6099_v2  ;;  %v13112_v6 = vadd.f32 %v10091_v27, %v6392_v54  ;;  %v10101_v2 = vld [vmem:[%s10560_s15 + $0x130] sm:$0xff]  ;;  %v10102_v54 = vld [vmem:[%s10560_s15 + $0x48] sm:$0xff] }
 0xb84   : > { %v9454_v19 = vpop.f32.mrf.mxu1  ;;  %v9508_v34 = vpop.f32.mrf.mxu0 }
 0xb85   : > { %v6101_v59 = vmul.f32 %v10094_v47, %v9454_v19  ;;  %v6394_v16 = vmul.f32 %v10095_v49, %v9508_v34  ;;  %v13116_v19 = vadd.f32 %v10092_v18, %v6098_v60  ;;  %v13118_v21 = vadd.f32 %v10093_v31, %v6391_v38  ;;  %v10103_v60 = vld [vmem:[%s10560_s15 + $0x148] sm:$0xff]  ;;  %v10104_v38 = vld [vmem:[%s10560_s15 + $0x40] sm:$0xff] }
 0xb86   : > { %v5957_v44 = vpop.f32.mrf.mxu1  ;;  %v6250_v15 = vpop.f32.mrf.mxu0 }
 0xb87   : > { %v6100_v23 = vmul.f32 %v10096_v25, %v5957_v44  ;;  %v6393_v11 = vmul.f32 %v10097_v33, %v6250_v15  ;;  %v13120_v44 = vadd.f32 %v10094_v47, %v6101_v59  ;;  %v13122_v34 = vadd.f32 %v10095_v49, %v6394_v16  ;;  %v10106_v47 = vld [vmem:[%s10560_s15 + $0x58] sm:$0xff]  ;;  %v10109_v59 = vld [vmem:[%s10560_s15 + $0x150] sm:$0xff] }
 0xb89   : > { %v13126_v52 = vadd.f32 %v10096_v25, %v6100_v23  ;;  %v13128_v48 = vadd.f32 %v10097_v33, %v6393_v11  ;;  %v10105_v33 = vld [vmem:[%s10560_s15 + $0x140] sm:$0xff] }
 0xb96   : > { %v13034_v7 = vpop.f32.mrf.mxu1  ;;  %v13038_v10 = vpop.f32.mrf.mxu0 }
 0xb97   : > { %v6103_v24 = vmul.f32 %v10098_v32, %v13034_v7  ;;  %v6396_v63 = vmul.f32 %v10099_v14, %v13038_v10 }
 0xb98   : > { %v13036_v41 = vpop.f32.mrf.mxu1  ;;  %v13042_v1 = vpop.f32.mrf.mxu0 }
 0xb99   : > { %v6102_v9 = vmul.f32 %v10100_v12, %v13036_v41  ;;  %v6395_v27 = vmul.f32 %v10101_v2, %v13042_v1  ;;  %v13162_v49 = vadd.f32 %v10098_v32, %v6103_v24  ;;  %v13164_v16 = vadd.f32 %v10099_v14, %v6396_v63  ;;  %v10114_v41 = vld [vmem:[%s10560_s15 + $0x78] sm:$0xff] }
 0xb9b   : > { %v13168_v23 = vadd.f32 %v10100_v12, %v6102_v9  ;;  %v13176_v24 = vadd.f32 %v10101_v2, %v6395_v27  ;;  %v10111_v27 = vld [vmem:[%s10560_s15 + $0x168] sm:$0xff] }
 0xba0   : > { %v13040_v3 = vpop.f32.mrf.mxu1  ;;  %v13046_v5 = vpop.f32.mrf.mxu0 }
 0xba1   : > { %v6105_v18 = vmul.f32 %v10102_v54, %v13040_v3  ;;  %v6398_v31 = vmul.f32 %v10103_v60, %v13046_v5  ;;  %v10107_v3 = vld [vmem:[%s10560_s15 + $0x158] sm:$0xff] }
 0xba2   : > { %v13044_v45 = vpop.f32.mrf.mxu1  ;;  %v13050_v28 = vpop.f32.mrf.mxu0 }
 0xba3   : > { %v6104_v7 = vmul.f32 %v10104_v38, %v13044_v45  ;;  %v6397_v11 = vmul.f32 %v10105_v33, %v13050_v28  ;;  %v13178_v14 = vadd.f32 %v10102_v54, %v6105_v18  ;;  %v13180_v63 = vadd.f32 %v10103_v60, %v6398_v31  ;;  %v10108_v28 = vld [vmem:[%s10560_s15 + $0x50] sm:$0xff]  ;;  %v10112_v60 = vld [vmem:[%s10560_s15 + $0x60] sm:$0xff] }
 0xba5   : > { %v13182_v12 = vadd.f32 %v10104_v38, %v6104_v7  ;;  %v10113_v38 = vld [vmem:[%s10560_s15 + $0x160] sm:$0xff] }
 0xba8   : > { %v13048_v51 = vpop.f32.mrf.mxu1  ;;  %v13056_v17 = vpop.f32.mrf.mxu0 }
 0xba9   : > { %v6107_v45 = vmul.f32 %v10106_v47, %v13048_v51  ;;  %v6400_v32 = vmul.f32 %v10107_v3, %v13056_v17  ;;  %v10110_v17 = vld [vmem:[%s10560_s15 + $0x68] sm:$0xff] }
 0xbaa   : > { %v13052_v22 = vpop.f32.mrf.mxu1  ;;  %v13062_v30 = vpop.f32.mrf.mxu0 }
 0xbab   : > { %v6106_v51 = vmul.f32 %v10108_v28, %v13052_v22  ;;  %v6399_v1 = vmul.f32 %v10109_v59, %v13062_v30 }
 0xbac   : > { %v13054_v29 = vpop.f32.mrf.mxu1  ;;  %v13068_v36 = vpop.f32.mrf.mxu0 }
 0xbad   : > { %v6109_v2 = vmul.f32 %v10110_v17, %v13054_v29  ;;  %v6402_v54 = vmul.f32 %v10111_v27, %v13068_v36  ;;  %v13204_v29 = vadd.f32 %v10105_v33, %v6397_v11  ;;  %v13208_v36 = vadd.f32 %v10107_v3, %v6400_v32 }
 0xbae   : > { %v13058_v62 = vpop.f32.mrf.mxu1  ;;  %v13074_v4 = vpop.f32.mrf.mxu0  ;;  %v13222_v3 = vadd.f32 %v10108_v28, %v6106_v51 }
 0xbaf   : > { %v6108_v31 = vmul.f32 %v10112_v60, %v13058_v62  ;;  %v6401_v7 = vmul.f32 %v10113_v38, %v13074_v4  ;;  %v13228_v11 = vadd.f32 %v10111_v27, %v6402_v54  ;;  %v10120_v54 = vld [vmem:[%s10560_s15 + $0x80] sm:$0xff] }
 0xbb0   : > { %v13060_v40 = vpop.f32.mrf.mxu1  ;;  %v13080_v50 = vpop.f32.mrf.mxu0 }
 0xbb1   : > { %v6111_v22 = vmul.f32 %v10114_v41, %v13060_v40  ;;  %13925 = vst [vmem:[#allocation23_spill] sm:$0xff] %v13228_v11  ;;  %v13230_v40 = vadd.f32 %v10112_v60, %v6108_v31  ;;  %v10121_v31 = vld [vmem:[%s10560_s15 + $0x180] sm:$0xff] }
 0xbb2   : > { %v13064_v39 = vpop.f32.mrf.mxu1  ;;  %v13096_v8 = vpop.f32.mrf.mxu0 }
 0xbb3   : > { %v13234_v4 = vadd.f32 %v10114_v41, %v6111_v22  ;;  %v10119_v41 = vld [vmem:[%s10560_s15 + $0x188] sm:$0xff] }
 0xbb4   : > { %v13066_v56 = vpop.f32.mrf.mxu1  ;;  %v13124_v15 = vpop.f32.mrf.mxu0 }
 0xbb6   : > { %v13070_v61 = vpop.f32.mrf.mxu1  ;;  %v13156_v5 = vpop.f32.mrf.mxu0 }
 0xbb7   : > { %v6112_v60 = vmul.f32 %v10120_v54, %v13070_v61  ;;  %v6842_v61 = vld [vmem:[%s10552_s18] sm:$0xff] }
 0xbb9   : > { %v13072_v26 = vpop.f32.mrf.mxu1  ;;  %v9529_v18 = vpop.f32.mrf.mxu0 }
 0xbbb   : > { %v13076_v13 = vpop.f32.mrf.mxu1  ;;  %v6320_v32 = vpop.f32.mrf.mxu0 }
 0xbbd   : > { %v13078_v58 = vpop.f32.mrf.mxu1 }
 0xbbf   : > { %v13082_v35 = vpop.f32.mrf.mxu1 }
 0xbc1   : > { %v13090_v53 = vpop.f32.mrf.mxu1 }
 0xbc3   : > { %v13100_v55 = vpop.f32.mrf.mxu1 }
 0xbc5   : > { %v13114_v37 = vpop.f32.mrf.mxu1 }
 0xbc6   : > { %13918 = vst [vmem:[#allocation70_spill] sm:$0xff] %v13114_v37  ;;  %v10117_v37 = vld [vmem:[%s10560_s15 + $0x170] sm:$0xff] }
 0xbc7   : > { %v13134_v43 = vpop.f32.mrf.mxu1  ;;  %v6403_v33 = vmul.f32 %v10117_v37, %v13096_v8 }
 0xbc8   : > { %13919 = vst [vmem:[#allocation73_spill] sm:$0xff] %v13134_v43  ;;  %v10116_v43 = vld [vmem:[%s10560_s15 + $0x70] sm:$0xff] }
 0xbc9   : > { %v13146_v10 = vpop.f32.mrf.mxu1  ;;  %v6110_v62 = vmul.f32 %v10116_v43, %v13064_v39  ;;  %v13226_v39 = vadd.f32 %v10110_v17, %v6109_v2  ;;  %v10118_v17 = vld [vmem:[%s10560_s15 + $0x88] sm:$0xff]  ;;  %v13248_v27 = vadd.f32 %v10117_v37, %v6403_v33  ;;  %v10122_v37 = vld [vmem:[%s10560_s15 + $0x98] sm:$0xff] }
 0xbca   : > { %13920 = vst [vmem:[#allocation72_spill] sm:$0xff] %v13146_v10  ;;  %v13206_v10 = vadd.f32 %v10106_v47, %v6107_v45  ;;  %v13224_v45 = vadd.f32 %v10109_v59, %v6399_v1  ;;  %v6113_v2 = vmul.f32 %v10118_v17, %v13066_v56  ;;  %v6115_v22 = vmul.f32 %v10122_v37, %v13072_v26  ;;  %v10124_v33 = vld [vmem:[%s10560_s15 + $0x198] sm:$0xff]  ;;  %v10125_v1 = vld [vmem:[%s10560_s15 + $0x90] sm:$0xff] }
 0xbcb   : > { %v13166_v25 = vpop.f32.mrf.mxu1  ;;  %v13244_v51 = vadd.f32 %v10116_v43, %v6110_v62  ;;  %13928 = vst [vmem:[#allocation57_spill] sm:$0xff] %v13248_v27  ;;  %v6408_v59 = vmul.f32 %v10124_v33, %v9529_v18  ;;  %v6114_v43 = vmul.f32 %v10125_v1, %v13076_v13  ;;  %v13278_v18 = vadd.f32 %v10120_v54, %v6112_v60  ;;  %v10129_v60 = vld [vmem:[%s10560_s15 + $0xa8] sm:$0xff] }
 0xbcc   : > { %13921 = vst [vmem:[#allocation24_spill] sm:$0xff] %v13166_v25  ;;  %v13270_v56 = vadd.f32 %v10118_v17, %v6113_v2  ;;  %v13282_v2 = vadd.f32 %v10122_v37, %v6115_v22  ;;  %v6843_v22 = vld [vmem:[%s10552_s18 + $0x8] sm:$0xff] }
 0xbcd   : > { %v13184_v9 = vpop.f32.mrf.mxu1  ;;  %v13290_v54 = vadd.f32 %v10125_v1, %v6114_v43  ;;  %v10132_v43 = vld [vmem:[%s10560_s15 + $0xa0] sm:$0xff] }
 0xbce   : > { %13922 = vst [vmem:[#allocation36_spill] sm:$0xff] %v13184_v9  ;;  %v10115_v9 = vld [vmem:[%s10560_s15 + $0x178] sm:$0xff] }
 0xbcf   : > { %v6404_v30 = vmul.f32 %v10115_v9, %v13080_v50  ;;  %v13202_v25 = vpop.f32.mrf.mxu1  ;;  %v13232_v50 = vadd.f32 %v10113_v38, %v6401_v7  ;;  %v6405_v38 = vmul.f32 %v10121_v31, %v13156_v5 }
 0xbd0   : > { %13923 = vst [vmem:[#allocation46_spill] sm:$0xff] %v13202_v25 }
 0xbd1   : > { %v13220_v47 = vpop.f32.mrf.mxu1  ;;  %v13236_v8 = vadd.f32 %v10115_v9, %v6404_v30  ;;  %v6406_v9 = vmul.f32 %v10119_v41, %v13124_v15  ;;  %v9532_v15 = vpop.f32.mrf.mxu0  ;;  %v10123_v30 = vld [vmem:[%s10560_s15 + $0x208] sm:$0xff]  ;;  %v13280_v13 = vadd.f32 %v10121_v31, %v6405_v38  ;;  %v6117_v31 = vmul.f32 %v10129_v60, %v13078_v58 }
 0xbd2   : > { %13924 = vst [vmem:[#allocation58_spill] sm:$0xff] %v13220_v47  ;;  %v10126_v47 = vld [vmem:[%s10560_s15 + $0x190] sm:$0xff]  ;;  %v10130_v38 = vld [vmem:[%s10560_s15 + $0x1a8] sm:$0xff] }
 0xbd3   : > { %13926 = vst [vmem:[#allocation35_spill] sm:$0xff] %v13236_v8  ;;  %v13238_v28 = vpop.f32.mrf.mxu1  ;;  %v6407_v26 = vmul.f32 %v10126_v47, %v6320_v32  ;;  %v13276_v5 = vadd.f32 %v10119_v41, %v6406_v9  ;;  %v6330_v32 = vpop.f32.mrf.mxu0  ;;  %v10128_v8 = vld [vmem:[%s10560_s15 + $0x218] sm:$0xff]  ;;  %v13288_v9 = vadd.f32 %v10124_v33, %v6408_v59  ;;  %v6410_v37 = vmul.f32 %v10130_v38, %v9532_v15  ;;  %v10133_v33 = vld [vmem:[%s10560_s15 + $0x1a0] sm:$0xff] }
 0xbd4   : > { %13927 = vst [vmem:[#allocation45_spill] sm:$0xff] %v13238_v28  ;;  %v6116_v15 = vmul.f32 %v10132_v43, %v13082_v35 }
 0xbd5   : > { %v9556_v7 = vpop.f32.mrf.mxu1  ;;  %v6470_v59 = vmax.f32 %v13270_v56, %v13276_v5  ;;  %v13324_v35 = vadd.f32 %v10130_v38, %v6410_v37  ;;  %v10163_v5 = vld [vmem:[%s10560_s15 + $0x1e8] sm:$0xff] }
 0xbd6   : > { %v6715_v62 = vmul.f32 %v10123_v30, %v9556_v7  ;;  %v10127_v7 = vld [vmem:[%s10560_s15 + $0x200] sm:$0xff]  ;;  %v13335_v37 = vadd.f32 %v10132_v43, %v6116_v15  ;;  %v10137_v15 = vld [vmem:[%s10560_s15 + $0x1b8] sm:$0xff] }
 0xbd7   : > { %v6555_v28 = vpop.f32.mrf.mxu1 }
 0xbd8   : > { %v6747_v25 = vadd.f32 %v10123_v30, %v6715_v62  ;;  %v6714_v11 = vmul.f32 %v10127_v7, %v6555_v28  ;;  %v13929_v28 = vmax.f32 %v13102_v42, %v13104_v46  ;;  %v13297_v42 = vadd.f32 %v10126_v47, %v6407_v26 }
 0xbd9   : > { %v9559_v17 = vpop.f32.mrf.mxu1  ;;  %v13930_v46 = vmax.f32 %v13106_v0, %v13108_v57  ;;  %v6469_v47 = vmax.f32 %v13278_v18, %v13280_v13  ;;  %v6409_v26 = vmul.f32 %v10133_v33, %v6330_v32  ;;  %v6844_v32 = vld [vmem:[%s10552_s18 + $0x10] sm:$0xff] }
 0xbda   : > { %v6779_v30 = vmax.f32 %v13929_v28, %v6747_v25  ;;  %v6746_v62 = vadd.f32 %v10127_v7, %v6714_v11  ;;  %v6717_v41 = vmul.f32 %v10128_v8, %v9559_v17  ;;  %v10131_v11 = vld [vmem:[%s10560_s15 + $0x210] sm:$0xff]  ;;  %v6845_v17 = vld [vmem:[%s10552_s18 + $0x18] sm:$0xff] }
 0xbdb   : > { %v6565_v27 = vpop.f32.mrf.mxu1 }
 0xbdc   : > { %6811 = vst [vmem:[%s13301_s22 + $0x8] sm:$0xff] %v6779_v30  ;;  %v6778_v25 = vmax.f32 %v13930_v46, %v6746_v62  ;;  %v6749_v58 = vadd.f32 %v10128_v8, %v6717_v41  ;;  %v6716_v1 = vmul.f32 %v10131_v11, %v6565_v27  ;;  %v6875_v0 = vsub.f32 %v6779_v30, %v6843_v22  ;;  %v10134_v30 = vld [vmem:[%s10560_s15 + $0x228] sm:$0xff] }
 0xbdd   : > { %v9562_v7 = vpop.f32.mrf.mxu1  ;;  %v13931_v8 = vmax.f32 %v13110_v20, %v13112_v6  ;;  %v6472_v62 = vmax.f32 %v13282_v2, %v13288_v9  ;;  %v13322_v41 = vadd.f32 %v10129_v60, %v6117_v31  ;;  %v9535_v6 = vpop.f32.mrf.mxu0  ;;  %v10135_v31 = vld [vmem:[%s10560_s15 + $0x220] sm:$0xff]  ;;  %v13953_v2 = vmax.f32 %v13290_v54, %v13297_v42 }
 0xbde   : > { %6810 = vst [vmem:[%s13301_s22] sm:$0xff] %v6778_v25  ;;  %v6874_v57 = vsub.f32 %v6778_v25, %v6842_v61  ;;  %v6748_v28 = vadd.f32 %v10131_v11, %v6716_v1  ;;  %v6719_v22 = vmul.f32 %v10134_v30, %v9562_v7  ;;  %v13932_v25 = vmax.f32 %v13116_v19, %v13118_v21  ;;  %v6847_v21 = vld [vmem:[%s10552_s18 + $0x28] sm:$0xff] }
 0xbdf   : > { %v6781_v27 = vmax.f32 %v13931_v8, %v6749_v58  ;;  %v6575_v46 = vpop.f32.mrf.mxu1  ;;  %v13337_v58 = vadd.f32 %v10133_v33, %v6409_v26  ;;  %v10136_v8 = vld [vmem:[%s10560_s15 + $0xb8] sm:$0xff]  ;;  %v6907_v20 = vand.u32 2147483647, %v6875_v0  ;;  %v6474_v43 = vmax.f32 %v13322_v41, %v13324_v35  ;;  %v10167_v41 = vld [vmem:[%s10560_s15 + $0x2b0] sm:$0xff] }
 0xbe0   : > { %v6906_v61 = vand.u32 2147483647, %v6874_v57  ;;  %v6780_v60 = vmax.f32 %v13932_v25, %v6748_v28  ;;  %v6718_v38 = vmul.f32 %v10135_v31, %v6575_v46  ;;  %v6751_v1 = vadd.f32 %v10134_v30, %v6719_v22  ;;  %v10138_v30 = vld [vmem:[%s10560_s15 + $0x238] sm:$0xff] }
 0xbe1   : > { %6813 = vst [vmem:[%s13301_s22 + $0x18] sm:$0xff] %v6781_v27  ;;  %v6877_v11 = vsub.f32 %v6781_v27, %v6845_v17  ;;  %v9565_v7 = vpop.f32.mrf.mxu1  ;;  %v6119_v57 = vmul.f32 %v10136_v8, %v13090_v53  ;;  %v6412_v33 = vmul.f32 %v10137_v15, %v9535_v6  ;;  %v13933_v26 = vmax.f32 %v13120_v44, %v13122_v34  ;;  %v6846_v17 = vld [vmem:[%s10552_s18 + $0x20] sm:$0xff]  ;;  %v6340_v44 = vpop.f32.mrf.mxu0 }
 0xbe2   : > { %6812 = vst [vmem:[%s13301_s22 + $0x10] sm:$0xff] %v6780_v60  ;;  %v6876_v19 = vsub.f32 %v6780_v60, %v6844_v32  ;;  %v6750_v28 = vadd.f32 %v10135_v31, %v6718_v38  ;;  %v6721_v53 = vmul.f32 %v10138_v30, %v9565_v7  ;;  %v6938_v22 = vadd.f32 %v6907_v20, %v6906_v61  ;;  %v10139_v60 = vld [vmem:[%s10560_s15 + $0x230] sm:$0xff] }
 0xbe3   : > { %v6783_v27 = vmax.f32 %v13933_v26, %v6751_v1  ;;  %v6585_v0 = vpop.f32.mrf.mxu1  ;;  %v13934_v46 = vmax.f32 %v13126_v52, %v13128_v48  ;;  %v6473_v6 = vmax.f32 %v13335_v37, %v13337_v58  ;;  %v6909_v34 = vand.u32 2147483647, %v6877_v11  ;;  %v6849_v52 = vld [vmem:[%s10552_s18 + $0x38] sm:$0xff]  ;;  %v10141_v11 = vld [vmem:[%s10560_s15 + $0xb0] sm:$0xff] }
 0xbe4   : > { %v6908_v32 = vand.u32 2147483647, %v6876_v19  ;;  %v6720_v31 = vmul.f32 %v10139_v60, %v6585_v0  ;;  %v6753_v1 = vadd.f32 %v10138_v30, %v6721_v53  ;;  %v10140_v19 = vld [vmem:[%s10560_s15 + $0x248] sm:$0xff]  ;;  %v13361_v26 = vadd.f32 %v10136_v8, %v6119_v57  ;;  %v6848_v30 = vld [vmem:[%s10552_s18 + $0x30] sm:$0xff] }
 0xbe5   : > { %v6782_v25 = vmax.f32 %v13934_v46, %v6750_v28  ;;  %6815 = vst [vmem:[%s13301_s22 + $0x28] sm:$0xff] %v6783_v27  ;;  %v6879_v38 = vsub.f32 %v6783_v27, %v6847_v21  ;;  %v9568_v7 = vpop.f32.mrf.mxu1  ;;  %v13363_v0 = vadd.f32 %v10137_v15, %v6412_v33  ;;  %v6118_v46 = vmul.f32 %v10141_v11, %v13100_v55  ;;  %v10142_v15 = vld [vmem:[%s10560_s15 + $0x1b0] sm:$0xff] }
 0xbe6   : > { %v6939_v20 = vadd.f32 %v6938_v22, %v6908_v32  ;;  %v6752_v48 = vadd.f32 %v10139_v60, %v6720_v31  ;;  %v6723_v28 = vmul.f32 %v10140_v19, %v9568_v7  ;;  %v13935_v21 = vmax.f32 %v13162_v49, %v13164_v16  ;;  %v10143_v49 = vld [vmem:[%s10560_s15 + $0x240] sm:$0xff] }
 0xbe7   : > { %6814 = vst [vmem:[%s13301_s22 + $0x20] sm:$0xff] %v6782_v25  ;;  %v6878_v61 = vsub.f32 %v6782_v25, %v6846_v17  ;;  %v6595_v17 = vpop.f32.mrf.mxu1  ;;  %v13936_v32 = vmax.f32 %v13168_v23, %v13176_v24  ;;  %v6411_v33 = vmul.f32 %v10142_v15, %v6340_v44  ;;  %v9538_v25 = vpop.f32.mrf.mxu0  ;;  %v6911_v55 = vand.u32 2147483647, %v6879_v38  ;;  %v10144_v44 = vld [vmem:[%s10560_s15 + $0x258] sm:$0xff] }
 0xbe8   : > { %v6785_v27 = vmax.f32 %v13935_v21, %v6753_v1  ;;  %v6940_v22 = vadd.f32 %v6939_v20, %v6909_v34  ;;  %v6755_v57 = vadd.f32 %v10140_v19, %v6723_v28  ;;  %v6722_v16 = vmul.f32 %v10143_v49, %v6595_v17  ;;  %v10146_v21 = vld [vmem:[%s10560_s15 + $0x1c8] sm:$0xff]  ;;  %v6850_v17 = vld [vmem:[%s10552_s18 + $0x40] sm:$0xff] }
 0xbe9   : > { %v6910_v53 = vand.u32 2147483647, %v6878_v61  ;;  %v6784_v8 = vmax.f32 %v13936_v32, %v6752_v48  ;;  %v9571_v31 = vpop.f32.mrf.mxu1  ;;  %v13937_v23 = vmax.f32 %v13178_v14, %v13180_v63  ;;  %v6476_v38 = vmax.f32 %v13361_v26, %v13363_v0  ;;  %v10145_v61 = vld [vmem:[%s10560_s15 + $0xc8] sm:$0xff] }
 0xbea   : > { %6817 = vst [vmem:[%s13301_s22 + $0x38] sm:$0xff] %v6785_v27  ;;  %v6881_v60 = vsub.f32 %v6785_v27, %v6849_v52  ;;  %v6725_v7 = vmul.f32 %v10144_v44, %v9571_v31  ;;  %v13384_v20 = vadd.f32 %v10141_v11, %v6118_v46  ;;  %v13938_v52 = vld [vmem:[#allocation70_spill] sm:$0xff]  ;;  %v6754_v19 = vadd.f32 %v10143_v49, %v6722_v16  ;;  %v10147_v11 = vld [vmem:[%s10560_s15 + $0xc0] sm:$0xff] }
 0xbeb   : > { %v6941_v1 = vadd.f32 %v6940_v22, %v6910_v53  ;;  %6816 = vst [vmem:[%s13301_s22 + $0x30] sm:$0xff] %v6784_v8  ;;  %v6880_v34 = vsub.f32 %v6784_v8, %v6848_v30  ;;  %v6787_v24 = vmax.f32 %v13937_v23, %v6755_v57  ;;  %v6121_v48 = vmul.f32 %v10145_v61, %v13938_v52  ;;  %v6605_v28 = vpop.f32.mrf.mxu1  ;;  %v6851_v63 = vld [vmem:[%s10552_s18 + $0x48] sm:$0xff]  ;;  %v13939_v46 = vld [vmem:[#allocation73_spill] sm:$0xff]  ;;  %v6350_v8 = vpop.f32.mrf.mxu0 }
 0xbec   : > { %v6414_v27 = vmul.f32 %v10146_v21, %v9538_v25  ;;  %v6757_v53 = vadd.f32 %v10144_v44, %v6725_v7  ;;  %v13392_v22 = vadd.f32 %v10142_v15, %v6411_v33  ;;  %v6120_v32 = vmul.f32 %v10147_v11, %v13939_v46  ;;  %v10148_v25 = vld [vmem:[%s10560_s15 + $0x250] sm:$0xff] }
 0xbed   : > { %v6912_v30 = vand.u32 2147483647, %v6880_v34  ;;  %v6942_v14 = vadd.f32 %v6941_v1, %v6911_v55  ;;  %6819 = vst [vmem:[%s13301_s22 + $0x48] sm:$0xff] %v6787_v24  ;;  %v13940_v57 = vmax.f32 %v13182_v12, %v13204_v29  ;;  %v6724_v16 = vmul.f32 %v10148_v25, %v6605_v28  ;;  %v9574_v55 = vpop.f32.mrf.mxu1  ;;  %v10149_v34 = vld [vmem:[%s10560_s15 + $0x268] sm:$0xff] }
 0xbee   : > { %v6913_v31 = vand.u32 2147483647, %v6881_v60  ;;  %v13941_v15 = vmax.f32 %v13206_v10, %v13208_v36  ;;  %v6727_v23 = vmul.f32 %v10149_v34, %v9574_v55  ;;  %v13404_v44 = vadd.f32 %v10145_v61, %v6121_v48  ;;  %v6853_v60 = vld [vmem:[%s10552_s18 + $0x58] sm:$0xff]  ;;  %v10151_v10 = vld [vmem:[%s10560_s15 + $0x260] sm:$0xff] }
 0xbef   : > { %v6786_v49 = vmax.f32 %v13940_v57, %v6754_v19  ;;  %v6943_v1 = vadd.f32 %v6942_v14, %v6912_v30  ;;  %v6883_v12 = vsub.f32 %v6787_v24, %v6851_v63  ;;  %v6756_v7 = vadd.f32 %v10148_v25, %v6724_v16  ;;  %v6615_v52 = vpop.f32.mrf.mxu1  ;;  %v10150_v19 = vld [vmem:[%s10560_s15 + $0x1c0] sm:$0xff]  ;;  %v6852_v30 = vld [vmem:[%s10552_s18 + $0x50] sm:$0xff]  ;;  %v9541_v57 = vpop.f32.mrf.mxu0 }
 0xbf0   : > { %v6789_v33 = vmax.f32 %v13941_v15, %v6757_v53  ;;  %v6413_v28 = vmul.f32 %v10150_v19, %v6350_v8  ;;  %v6759_v14 = vadd.f32 %v10149_v34, %v6727_v23  ;;  %v6726_v36 = vmul.f32 %v10151_v10, %v6615_v52 }
 0xbf1   : > { %6818 = vst [vmem:[%s13301_s22 + $0x40] sm:$0xff] %v6786_v49  ;;  %v6882_v29 = vsub.f32 %v6786_v49, %v6850_v17  ;;  %v6944_v46 = vadd.f32 %v6943_v1, %v6913_v31  ;;  %v6475_v61 = vmax.f32 %v13384_v20, %v13392_v22  ;;  %v13414_v24 = vadd.f32 %v10146_v21, %v6414_v27  ;;  %v9577_v53 = vpop.f32.mrf.mxu1  ;;  %v13943_v49 = vld [vmem:[#allocation23_spill] sm:$0xff]  ;;  %v10152_v31 = vld [vmem:[%s10560_s15 + $0x278] sm:$0xff] }
 0xbf2   : > { %6821 = vst [vmem:[%s13301_s22 + $0x58] sm:$0xff] %v6789_v33  ;;  %v13942_v63 = vmax.f32 %v13222_v3, %v13224_v45  ;;  %v13419_v8 = vadd.f32 %v10147_v11, %v6120_v32  ;;  %v13944_v25 = vmax.f32 %v13226_v39, %v13943_v49  ;;  %v6758_v55 = vadd.f32 %v10151_v10, %v6726_v36  ;;  %v6854_v45 = vld [vmem:[%s10552_s18 + $0x60] sm:$0xff]  ;;  %v6855_v32 = vld [vmem:[%s10552_s18 + $0x68] sm:$0xff]  ;;  %v13947_v36 = vld [vmem:[#allocation35_spill] sm:$0xff] }
 0xbf3   : > { %v6914_v48 = vand.u32 2147483647, %v6882_v29  ;;  %v6729_v21 = vmul.f32 %v10152_v31, %v9577_v53  ;;  %v6915_v27 = vand.u32 2147483647, %v6883_v12  ;;  %v6885_v15 = vsub.f32 %v6789_v33, %v6853_v60  ;;  %v6625_v34 = vpop.f32.mrf.mxu1  ;;  %v10154_v12 = vld [vmem:[%s10560_s15 + $0xd8] sm:$0xff] }
 0xbf4   : > { %v6788_v17 = vmax.f32 %v13942_v63, %v6756_v7  ;;  %v6791_v16 = vmax.f32 %v13944_v25, %v6759_v14  ;;  %v13427_v11 = vadd.f32 %v10150_v19, %v6413_v28  ;;  %v13945_v39 = vmax.f32 %v13230_v40, %v13232_v50  ;;  %v10153_v7 = vld [vmem:[%s10560_s15 + $0x270] sm:$0xff]  ;;  %v10155_v14 = vld [vmem:[%s10560_s15 + $0x1d8] sm:$0xff]  ;;  %v6360_v40 = vpop.f32.mrf.mxu0 }
 0xbf5   : > { %v6945_v1 = vadd.f32 %v6944_v46, %v6914_v48  ;;  %v6761_v29 = vadd.f32 %v10152_v31, %v6729_v21  ;;  %v6728_v52 = vmul.f32 %v10153_v7, %v6625_v34  ;;  %v6478_v33 = vmax.f32 %v13404_v44, %v13414_v24  ;;  %v13946_v46 = vld [vmem:[#allocation72_spill] sm:$0xff]  ;;  %v10156_v31 = vld [vmem:[%s10560_s15 + $0x288] sm:$0xff]  ;;  %v10175_v24 = vld [vmem:[%s10560_s15 + $0x2d0] sm:$0xff] }
 0xbf6   : > { %6820 = vst [vmem:[%s13301_s22 + $0x50] sm:$0xff] %v6788_v17  ;;  %v6884_v3 = vsub.f32 %v6788_v17, %v6852_v30  ;;  %6823 = vst [vmem:[%s13301_s22 + $0x68] sm:$0xff] %v6791_v16  ;;  %v6790_v23 = vmax.f32 %v13945_v39, %v6758_v55  ;;  %v6123_v60 = vmul.f32 %v10154_v12, %v13946_v46  ;;  %v9580_v30 = vpop.f32.mrf.mxu1  ;;  %v6917_v53 = vand.u32 2147483647, %v6885_v15  ;;  %v6856_v55 = vld [vmem:[%s10552_s18 + $0x70] sm:$0xff]  ;;  %v10157_v15 = vld [vmem:[%s10560_s15 + $0x280] sm:$0xff] }
 0xbf7   : > { %v6946_v28 = vadd.f32 %v6945_v1, %v6915_v27  ;;  %v6416_v10 = vmul.f32 %v10155_v14, %v9541_v57  ;;  %v13948_v48 = vmax.f32 %v13234_v4, %v13947_v36  ;;  %v6760_v17 = vadd.f32 %v10153_v7, %v6728_v52  ;;  %v13949_v4 = vld [vmem:[#allocation57_spill] sm:$0xff]  ;;  %v10160_v36 = vld [vmem:[%s10560_s15 + $0x298] sm:$0xff] }
 0xbf8   : > { %v6916_v19 = vand.u32 2147483647, %v6884_v3  ;;  %6822 = vst [vmem:[%s13301_s22 + $0x60] sm:$0xff] %v6790_v23  ;;  %v6886_v50 = vsub.f32 %v6790_v23, %v6854_v45  ;;  %v6887_v25 = vsub.f32 %v6791_v16, %v6855_v32  ;;  %v6731_v21 = vmul.f32 %v10156_v31, %v9580_v30  ;;  %v6635_v27 = vpop.f32.mrf.mxu1  ;;  %v6857_v3 = vld [vmem:[%s10552_s18 + $0x78] sm:$0xff]  ;;  %v10158_v32 = vld [vmem:[%s10560_s15 + $0xd0] sm:$0xff]  ;;  %v9544_v30 = vpop.f32.mrf.mxu0 }
 0xbf9   : > { %v6793_v63 = vmax.f32 %v13948_v48, %v6761_v29  ;;  %v6477_v57 = vmax.f32 %v13419_v8, %v13427_v11  ;;  %v13950_v45 = vmax.f32 %v13244_v51, %v13949_v4  ;;  %v6730_v39 = vmul.f32 %v10157_v15, %v6635_v27  ;;  %v13951_v23 = vld [vmem:[#allocation24_spill] sm:$0xff]  ;;  %v10161_v4 = vld [vmem:[%s10560_s15 + $0x290] sm:$0xff] }
 0xbfa   : > { %v6947_v49 = vadd.f32 %v6946_v28, %v6916_v19  ;;  %v6918_v1 = vand.u32 2147483647, %v6886_v50  ;;  %v13454_v16 = vadd.f32 %v10154_v12, %v6123_v60  ;;  %v6122_v29 = vmul.f32 %v10158_v32, %v13951_v23  ;;  %v9583_v46 = vpop.f32.mrf.mxu1  ;;  %v10159_v19 = vld [vmem:[%s10560_s15 + $0x1d0] sm:$0xff] }
 0xbfb   : > { %6825 = vst [vmem:[%s13301_s22 + $0x78] sm:$0xff] %v6793_v63  ;;  %v6792_v34 = vmax.f32 %v13950_v45, %v6760_v17  ;;  %v6763_v52 = vadd.f32 %v10156_v31, %v6731_v21  ;;  %v6415_v28 = vmul.f32 %v10159_v19, %v6360_v40  ;;  %v6762_v50 = vadd.f32 %v10157_v15, %v6730_v39  ;;  %v6859_v21 = vld [vmem:[%s10552_s18 + $0x88] sm:$0xff] }
 0xbfc   : > { %v6948_v7 = vadd.f32 %v6947_v49, %v6917_v53  ;;  %v6733_v48 = vmul.f32 %v10160_v36, %v9583_v46  ;;  %v6919_v12 = vand.u32 2147483647, %v6887_v25  ;;  %v6889_v17 = vsub.f32 %v6793_v63, %v6857_v3  ;;  %v6858_v49 = vld [vmem:[%s10552_s18 + $0x80] sm:$0xff]  ;;  %v6645_v40 = vpop.f32.mrf.mxu1  ;;  %v10162_v63 = vld [vmem:[%s10560_s15 + $0xe8] sm:$0xff]  ;;  %v13952_v3 = vld [vmem:[#allocation36_spill] sm:$0xff] }
 0xbfd   : > { %6824 = vst [vmem:[%s13301_s22 + $0x70] sm:$0xff] %v6792_v34  ;;  %v6888_v51 = vsub.f32 %v6792_v34, %v6856_v55  ;;  %v6795_v53 = vmax.f32 %v6470_v59, %v6763_v52  ;;  %v6794_v55 = vmax.f32 %v6469_v47, %v6762_v50  ;;  %v6732_v25 = vmul.f32 %v10161_v4, %v6645_v40  ;;  %v6860_v52 = vld [vmem:[%s10552_s18 + $0x90] sm:$0xff]  ;;  %v6861_v50 = vld [vmem:[%s10552_s18 + $0x98] sm:$0xff] }
 0xbfe   : > { %v6949_v60 = vadd.f32 %v6948_v7, %v6918_v1  ;;  %v6765_v27 = vadd.f32 %v10160_v36, %v6733_v48  ;;  %v13470_v1 = vadd.f32 %v10155_v14, %v6416_v10  ;;  %v6125_v56 = vmul.f32 %v10162_v63, %v13952_v3  ;;  %v9586_v34 = vpop.f32.mrf.mxu1  ;;  %v10164_v14 = vld [vmem:[%s10560_s15 + $0x2a8] sm:$0xff]  ;;  %v10165_v48 = vld [vmem:[%s10560_s15 + $0x2a0] sm:$0xff] }
 0xbff   : > { %v6920_v31 = vand.u32 2147483647, %v6888_v51  ;;  %v6418_v59 = vmul.f32 %v10163_v5, %v9544_v30  ;;  %6827 = vst [vmem:[%s13301_s22 + $0x88] sm:$0xff] %v6795_v53  ;;  %6826 = vst [vmem:[%s13301_s22 + $0x80] sm:$0xff] %v6794_v55  ;;  %v6890_v18 = vsub.f32 %v6794_v55, %v6858_v49  ;;  %v6764_v47 = vadd.f32 %v10161_v4, %v6732_v25  ;;  %v6863_v25 = vld [vmem:[%s10552_s18 + $0xa8] sm:$0xff] }
 0xc00   : > { %v6950_v45 = vadd.f32 %v6949_v60, %v6919_v12  ;;  %v6797_v13 = vmax.f32 %v6472_v62, %v6765_v27  ;;  %v6735_v10 = vmul.f32 %v10164_v14, %v9586_v34  ;;  %v13481_v15 = vadd.f32 %v10158_v32, %v6122_v29  ;;  %v6655_v46 = vpop.f32.mrf.mxu1  ;;  %v6370_v60 = vpop.f32.mrf.mxu0 }
 0xc01   : > { %v6921_v39 = vand.u32 2147483647, %v6889_v17  ;;  %v6891_v7 = vsub.f32 %v6795_v53, %v6859_v21  ;;  %v13484_v30 = vadd.f32 %v10159_v19, %v6415_v28  ;;  %v6922_v51 = vand.u32 2147483647, %v6890_v18  ;;  %v10166_v17 = vld [vmem:[%s10560_s15 + $0x2b8] sm:$0xff] }
 0xc02   : > { %v6951_v23 = vadd.f32 %v6950_v45, %v6920_v31  ;;  %6829 = vst [vmem:[%s13301_s22 + $0x98] sm:$0xff] %v6797_v13  ;;  %v6796_v9 = vmax.f32 %v13953_v2, %v6764_v47  ;;  %v6767_v62 = vadd.f32 %v10164_v14, %v6735_v10  ;;  %v6480_v32 = vmax.f32 %v13454_v16, %v13470_v1  ;;  %v9589_v19 = vpop.f32.mrf.mxu1  ;;  %v9547_v14 = vpop.f32.mrf.mxu0  ;;  %v13955_v2 = vld [vmem:[#allocation58_spill] sm:$0xff] }
 0xc03   : > { %v13493_v29 = vadd.f32 %v10162_v63, %v6125_v56  ;;  %v6734_v12 = vmul.f32 %v10165_v48, %v6655_v46  ;;  %v13496_v28 = vadd.f32 %v10163_v5, %v6418_v59  ;;  %v6737_v53 = vmul.f32 %v10166_v17, %v9589_v19  ;;  %v6862_v63 = vld [vmem:[%s10552_s18 + $0xa0] sm:$0xff]  ;;  %v13954_v56 = vld [vmem:[#allocation46_spill] sm:$0xff]  ;;  %v6864_v46 = vld [vmem:[%s10552_s18 + $0xb0] sm:$0xff] }
 0xc04   : > { %v6952_v36 = vadd.f32 %v6951_v23, %v6921_v39  ;;  %6828 = vst [vmem:[%s13301_s22 + $0x90] sm:$0xff] %v6796_v9  ;;  %v6892_v54 = vsub.f32 %v6796_v9, %v6860_v52  ;;  %v6799_v42 = vmax.f32 %v6474_v43, %v6767_v62  ;;  %v6923_v49 = vand.u32 2147483647, %v6891_v7  ;;  %v6665_v55 = vpop.f32.mrf.mxu1  ;;  %v10168_v43 = vld [vmem:[%s10560_s15 + $0xe0] sm:$0xff]  ;;  %v10170_v23 = vld [vmem:[%s10560_s15 + $0x2c8] sm:$0xff]  ;;  %v6865_v62 = vld [vmem:[%s10552_s18 + $0xb8] sm:$0xff] }
 0xc05   : > { %v6893_v31 = vsub.f32 %v6797_v13, %v6861_v50  ;;  %v6766_v21 = vadd.f32 %v10165_v48, %v6734_v12  ;;  %v6479_v27 = vmax.f32 %v13481_v15, %v13484_v30  ;;  %v6769_v3 = vadd.f32 %v10166_v17, %v6737_v53  ;;  %v10169_v59 = vld [vmem:[%s10560_s15 + $0x1e0] sm:$0xff]  ;;  %v10171_v50 = vld [vmem:[%s10560_s15 + $0xf8] sm:$0xff]  ;;  %v6380_v53 = vpop.f32.mrf.mxu0 }
 0xc06   : > { %v6953_v40 = vadd.f32 %v6952_v36, %v6922_v51  ;;  %v6924_v4 = vand.u32 2147483647, %v6892_v54  ;;  %6831 = vst [vmem:[%s13301_s22 + $0xa8] sm:$0xff] %v6799_v42  ;;  %v6736_v35 = vmul.f32 %v10167_v41, %v6665_v55  ;;  %v6124_v5 = vmul.f32 %v10168_v43, %v13954_v56  ;;  %v9592_v13 = vpop.f32.mrf.mxu1  ;;  %v10173_v12 = vld [vmem:[%s10560_s15 + $0x1f8] sm:$0xff] }
 0xc07   : > { %v6417_v45 = vmul.f32 %v10169_v59, %v6370_v60  ;;  %v6798_v18 = vmax.f32 %v6473_v6, %v6766_v21  ;;  %v6482_v47 = vmax.f32 %v13493_v29, %v13496_v28  ;;  %v6801_v10 = vmax.f32 %v6476_v38, %v6769_v3  ;;  %v10172_v38 = vld [vmem:[%s10560_s15 + $0x2c0] sm:$0xff]  ;;  %v10174_v55 = vld [vmem:[%s10560_s15 + $0x2d8] sm:$0xff] }
 0xc08   : > { %v6954_v34 = vadd.f32 %v6953_v40, %v6923_v49  ;;  %v6768_v39 = vadd.f32 %v10167_v41, %v6736_v35  ;;  %v6739_v7 = vmul.f32 %v10170_v23, %v9592_v13  ;;  %v6925_v52 = vand.u32 2147483647, %v6893_v31  ;;  %v6675_v51 = vpop.f32.mrf.mxu1  ;;  %v6866_v21 = vld [vmem:[%s10552_s18 + $0xc0] sm:$0xff]  ;;  %v6867_v41 = vld [vmem:[%s10552_s18 + $0xc8] sm:$0xff]  ;;  %v10176_v35 = vld [vmem:[%s10560_s15 + $0xf0] sm:$0xff] }
 0xc09   : > { %v6895_v58 = vsub.f32 %v6799_v42, %v6863_v25  ;;  %6830 = vst [vmem:[%s13301_s22 + $0xa0] sm:$0xff] %v6798_v18  ;;  %v6894_v6 = vsub.f32 %v6798_v18, %v6862_v63  ;;  %v6127_v9 = vmul.f32 %v10171_v50, %v13955_v2  ;;  %6833 = vst [vmem:[%s13301_s22 + $0xb8] sm:$0xff] %v6801_v10 }
 0xc0a   : > { %v6955_v37 = vadd.f32 %v6954_v34, %v6924_v4  ;;  %v6800_v26 = vmax.f32 %v6475_v61, %v6768_v39  ;;  %v6771_v0 = vadd.f32 %v10170_v23, %v6739_v7  ;;  %v6738_v36 = vmul.f32 %v10172_v38, %v6675_v51  ;;  %v9595_v42 = vpop.f32.mrf.mxu1  ;;  %v10178_v39 = vld [vmem:[%s10560_s15 + $0x2e8] sm:$0xff] }
 0xc0b   : > { %v13531_v48 = vadd.f32 %v10168_v43, %v6124_v5  ;;  %v6420_v19 = vmul.f32 %v10173_v12, %v9547_v14  ;;  %v6926_v60 = vand.u32 2147483647, %v6894_v6  ;;  %v13534_v17 = vadd.f32 %v10169_v59, %v6417_v45  ;;  %v13956_v43 = vld [vmem:[#allocation45_spill] sm:$0xff]  ;;  %v10177_v5 = vld [vmem:[%s10560_s15 + $0x1f0] sm:$0xff]  ;;  %v6869_v6 = vld [vmem:[%s10552_s18 + $0xd8] sm:$0xff] }
 0xc0c   : > { %v6956_v54 = vadd.f32 %v6955_v37, %v6925_v52  ;;  %6832 = vst [vmem:[%s13301_s22 + $0xb0] sm:$0xff] %v6800_v26  ;;  %v6896_v20 = vsub.f32 %v6800_v26, %v6864_v46  ;;  %v6803_v22 = vmax.f32 %v6478_v33, %v6771_v0  ;;  %v6770_v61 = vadd.f32 %v10172_v38, %v6738_v36  ;;  %v6685_v25 = vpop.f32.mrf.mxu1  ;;  %v6868_v52 = vld [vmem:[%s10552_s18 + $0xd0] sm:$0xff] }
 0xc0d   : > { %v6927_v49 = vand.u32 2147483647, %v6895_v58  ;;  %v6897_v31 = vsub.f32 %v6801_v10, %v6865_v62  ;;  %v6741_v4 = vmul.f32 %v10174_v55, %v9595_v42  ;;  %v13542_v63 = vadd.f32 %v10171_v50, %v6127_v9  ;;  %v10179_v50 = vld [vmem:[%s10560_s15 + $0x2e0] sm:$0xff]  ;;  %v6871_v42 = vld [vmem:[%s10552_s18 + $0xe8] sm:$0xff] }
 0xc0e   : > { %v6957_v40 = vadd.f32 %v6956_v54, %v6926_v60  ;;  %v6928_v3 = vand.u32 2147483647, %v6896_v20  ;;  %6835 = vst [vmem:[%s13301_s22 + $0xc8] sm:$0xff] %v6803_v22  ;;  %v6802_v44 = vmax.f32 %v6477_v57, %v6770_v61  ;;  %v6740_v33 = vmul.f32 %v10175_v24, %v6685_v25  ;;  %v9598_v18 = vpop.f32.mrf.mxu1  ;;  %v6872_v25 = vld [vmem:[%s10552_s18 + $0xf0] sm:$0xff] }
 0xc0f   : > { %v6126_v56 = vmul.f32 %v10176_v35, %v13956_v43  ;;  %v6419_v59 = vmul.f32 %v10177_v5, %v6380_v53  ;;  %v6773_v34 = vadd.f32 %v10174_v55, %v6741_v4  ;;  %v6452_v13 = vadd.f32 %v10173_v12, %v6420_v19  ;;  %v6870_v12 = vld [vmem:[%s10552_s18 + $0xe0] sm:$0xff]  ;;  %v6873_v4 = vld [vmem:[%s10552_s18 + $0xf8] sm:$0xff]  ;;  %s10350_s18 = smov [#allocation8]  }
 0xc10   : > { %v6958_v45 = vadd.f32 %v6957_v40, %v6927_v49  ;;  %6834 = vst [vmem:[%s13301_s22 + $0xc0] sm:$0xff] %v6802_v44  ;;  %v6898_v14 = vsub.f32 %v6802_v44, %v6866_v21  ;;  %v6772_v10 = vadd.f32 %v10175_v24, %v6740_v33  ;;  %v6743_v8 = vmul.f32 %v10178_v39, %v9598_v18  ;;  %v6695_v37 = vpop.f32.mrf.mxu1  ;;  %s10238_s20 = sshll.u32 %s10350_s18, 4  ;;  %s10239_s20 = int_to_ptr.vmem [resolvable:$false] %s10238_s20 }
 0xc11   : > { %v6929_v11 = vand.u32 2147483647, %v6897_v31  ;;  %v6899_v23 = vsub.f32 %v6803_v22, %v6867_v41  ;;  %v6805_v7 = vmax.f32 %v6480_v32, %v6773_v34  ;;  %v6742_v2 = vmul.f32 %v10179_v50, %v6695_v37  ;;  %s10240_s21 = scalar_lea.vmem %s10239_s20, 8192  ;;  %p10241_p0 = scmp.lt.s32.totalorder %s13588_s5, %s10239_s20 }
 0xc12   : > { %v6959_v57 = vadd.f32 %v6958_v45, %v6928_v3  ;;  %v6930_v58 = vand.u32 2147483647, %v6898_v14  ;;  %v6804_v46 = vmax.f32 %v6479_v27, %v6772_v10  ;;  %v6775_v51 = vadd.f32 %v10178_v39, %v6743_v8  ;;  %v9601_v32 = vpop.f32.mrf.mxu1  ;;  %v10180_v27 = vld [vmem:[%s10560_s15 + $0x2f8] sm:$0xff]  ;;  %p10242_p7 = scmp.lt.s32.totalorder %s10240_s21, %s10234_s26 }
 0xc13   : > { %v6481_v9 = vmax.f32 %v13531_v48, %v13534_v17  ;;  %v6158_v62 = vadd.f32 %v10176_v35, %v6126_v56  ;;  %v6451_v16 = vadd.f32 %v10177_v5, %v6419_v59  ;;  %6837 = vst [vmem:[%s13301_s22 + $0xd8] sm:$0xff] %v6805_v7  ;;  %v6774_v30 = vadd.f32 %v10179_v50, %v6742_v2 }
 0xc14   : > { %v6960_v1 = vadd.f32 %v6959_v57, %v6929_v11  ;;  %6836 = vst [vmem:[%s13301_s22 + $0xd0] sm:$0xff] %v6804_v46  ;;  %v6900_v26 = vsub.f32 %v6804_v46, %v6868_v52  ;;  %v6807_v15 = vmax.f32 %v6482_v47, %v6775_v51  ;;  %v6745_v0 = vmul.f32 %v10180_v27, %v9601_v32  ;;  %v6705_v19 = vpop.f32.mrf.mxu1  ;;  %v10181_v47 = vld [vmem:[%s10560_s15 + $0x2f0] sm:$0xff]  ;;  %s7154_s15 = sshll.u32 %s10546_s0, 3  ;;  %p10243_p3 = por %p10242_p7, %p10241_p0 }
 0xc15   : > { %v6931_v38 = vand.u32 2147483647, %v6899_v23  ;;  %v6901_v48 = vsub.f32 %v6805_v7, %v6869_v6  ;;  %v6484_v60 = vmax.f32 %v13542_v63, %v6452_v13  ;;  %v6806_v17 = vmax.f32 %v6481_v9, %v6774_v30 }
 0xc16   : > { %v6961_v36 = vadd.f32 %v6960_v1, %v6930_v58  ;;  %v6932_v54 = vand.u32 2147483647, %v6900_v26  ;;  %6839 = vst [vmem:[%s13301_s22 + $0xe8] sm:$0xff] %v6807_v15  ;;  %v6777_v29 = vadd.f32 %v10180_v27, %v6745_v0  ;;  %v6744_v53 = vmul.f32 %v10181_v47, %v6705_v19  ;;  %p10244_p8 = pnand %p10243_p3, %p10237_p2 }
 0xc17   : > { %v6483_v20 = vmax.f32 %v6158_v62, %v6451_v16  ;;  %6838 = vst [vmem:[%s13301_s22 + $0xe0] sm:$0xff] %v6806_v17  ;;  %v6902_v22 = vsub.f32 %v6806_v17, %v6870_v12  ;;  %v6933_v49 = vand.u32 2147483647, %v6901_v48  ;;  %v6903_v31 = vsub.f32 %v6807_v15, %v6871_v42 }
 0xc18   : > { %v6962_v28 = vadd.f32 %v6961_v36, %v6931_v38  ;;  %v6809_v61 = vmax.f32 %v6484_v60, %v6777_v29  ;;  %v6776_v21 = vadd.f32 %v10181_v47, %v6744_v53 }
 0xc19   : > { %v6934_v55 = vand.u32 2147483647, %v6902_v22  ;;  %v6935_v41 = vand.u32 2147483647, %v6903_v31 }
 0xc1a   : > { %v6963_v40 = vadd.f32 %v6962_v28, %v6932_v54  ;;  %6841 = vst [vmem:[%s13301_s22 + $0xf8] sm:$0xff] %v6809_v61  ;;  %v6808_v3 = vmax.f32 %v6483_v20, %v6776_v21  ;;  %v6905_v24 = vsub.f32 %v6809_v61, %v6873_v4 }
 0xc1c   : > { %v6964_v63 = vadd.f32 %v6963_v40, %v6933_v49  ;;  %6840 = vst [vmem:[%s13301_s22 + $0xf0] sm:$0xff] %v6808_v3  ;;  %v6904_v33 = vsub.f32 %v6808_v3, %v6872_v25 }
 0xc1e   : > { %v6965_v44 = vadd.f32 %v6964_v63, %v6934_v55 }
 0xc1f   : > { %10247 = shalt.err (!%p10244_p8)
}
 0xc20   : > { %s10248_s28 = scalar_lea.hbm %s13583_s27, 4096  ;;  %s10252_s30 = scalar_lea.hbm %s13661_s9, 8192 }
 0xc21   : > { %p10249_p9 = scmp.ne.s32.totalorder %s13583_s27, %s10248_s28  ;;  %p10253_p4 = scmp.lt.s32.totalorder %s13583_s27, %s13661_s9 }
 0xc22   : > { %p10254_p5 = scmp.lt.s32.totalorder %s10252_s30, %s10248_s28 }
 0xc23   : > { %p10250_p6 = pnand %p10249_p9, %p13957_p12 }
 0xc24   : > { %p10255_p13 = por %p10254_p5, %p10253_p4 }
 0xc25   : > { %p10251_p11 = pneg %p10250_p6 }
 0xc27   : > { %p10256_p10 = pnand %p10255_p13, %p10251_p11 }
 0xc29   : > { %10259 = shalt.err (!%p10256_p10)
}
 0xc2a   : > { %s10351_s12 = smov 128   ;;  %s10352_s23 = smov 8   ;;  %v6936_v35 = vand.u32 2147483647, %v6904_v33  ;;  %v6966_v43 = vadd.f32 %v6965_v44, %v6935_v41  ;;  %v6937_v56 = vand.u32 2147483647, %v6905_v24 }
 0xc2b   : > { %9621 = dma.vmem_to_hbm [thread:$0]  (%p13957_p12), %s13588_s5, 4096, %s13583_s27, %s6971_s19, %s10351_s12, %s10351_s12, %s10352_s23  }
 0xc2c   : > { %s7551_s26 = sshll.u32 %s10430_s17, 7  ;;  %s467_s18 = scalar_lea.vmem [#allocation9], %s7154_s15  ;;  %v6967_v5 = vadd.f32 %v6966_v43, %v6936_v35 }
 0xc2d   : > { %s7005_s20 = sshll.u32 %s467_s18, 4  ;;  %s7003_s24 = scalar_lea.hbm %s13662_s10, %s7551_s26  ;;  %s7006_s20 = int_to_ptr.vmem [resolvable:$true] %s7005_s20 }
 0xc2e   : > { %v6968_v59 = vadd.f32 %v6967_v5, %v6937_v56  ;;  %s6976_s11 = scalar_lea.sflag [#allocation10], %s10546_s0  ;;  %s10260_s30 = scalar_lea.vmem %s7006_s20, 128 }
 0xc2f   : > { %p10261_p1 = scmp.ne.s32.totalorder %s7006_s20, %s10260_s30  ;;  %s10353_s5 = smov [#allocation9]  }
 0xc30   : > { %6969 = vst [vmem:[%s467_s18] sm:$0xff] %v6968_v59  ;;  %s10264_s17 = sshll.u32 %s10353_s5, 4  ;;  %s10265_s17 = int_to_ptr.vmem [resolvable:$false] %s10264_s17 }
 0xc31   : > { %p10262_p2 = pnand %p10261_p1, %p13957_p12  ;;  %s10266_s27 = scalar_lea.vmem %s10265_s17, 256 }
 0xc32   : > { %p10267_p7 = scmp.lt.s32.totalorder %s7006_s20, %s10265_s17  ;;  %p10268_p3 = scmp.lt.s32.totalorder %s10266_s27, %s10260_s30 }
 0xc33   : > { %p10263_p0 = pneg %p10262_p2 }
 0xc34   : > { %p10269_p8 = por %p10268_p3, %p10267_p7 }
 0xc36   : > { %p10270_p9 = pnand %p10269_p8, %p10263_p0 }
 0xc38   : > { %10273 = shalt.err (!%p10270_p9)
}
 0xc39   : > { %s10274_s15 = scalar_lea.hbm %s7003_s24, 128  ;;  %s10278_s22 = scalar_lea.hbm %s13662_s10, 256 }
 0xc3a   : > { %p10275_p6 = scmp.ne.s32.totalorder %s7003_s24, %s10274_s15  ;;  %p10279_p5 = scmp.lt.s32.totalorder %s7003_s24, %s13662_s10 }
 0xc3b   : > { %p10280_p13 = scmp.lt.s32.totalorder %s10278_s22, %s10274_s15 }
 0xc3c   : > { %p10276_p11 = pnand %p10275_p6, %p13957_p12 }
 0xc3d   : > { %p10281_p10 = por %p10280_p13, %p10279_p5 }
 0xc3e   : > { %p10277_p4 = pneg %p10276_p11 }
 0xc40   : > { %p10282_p1 = pnand %p10281_p10, %p10277_p4 }
 0xc42   : > { %10285 = shalt.err (!%p10282_p1)
}
 0xc43   : > { %9622 = dma.vmem_to_hbm [thread:$0]  (%p13957_p12), %s7006_s20, 128, %s7003_s24, %s6976_s11  }
 0xc44 PF: > { %s13958_s23 = sld [smem:[#allocation22_spill]]  ;;  %s7017_s26 = sand.u32 1, %s10324_s13  }
 0xc45   : > { %p13960_p0 = scmp.ge.s32.totalorder %s10336_s16, 2  ;;  %s7018_s18 = scalar_lea.sflag [#allocation4], %s7017_s26 }
 0xc4a   : > { %p13959_p2 = scmp.ne.s32.totalorder %s13958_s23, 0 }
 0xc4c   : > { %p9630_p7 = pnand %p13960_p0, %p13959_p2 }
 0xc4e   : > { %p9631_p3 = pneg %p9630_p7 }
 0xc50   : > { %10315 = dma.done.wait (%p9631_p3), %s7018_s18, 4096  }
 0xc51   : > { %10317 = vsyncadd (%p9631_p3), %s7018_s18, 4294963200  ;;  %s7027_s21 = scalar_lea.sflag [#allocation10], %s7017_s26 }
 0xc52   : > { %10319 = dma.done.wait (%p9631_p3), %s7027_s21, 128  }
 0xc53   : > { %10321 = vsyncadd (%p9631_p3), %s7027_s21, 4294967168  ;;  %s13961_s16 = sld [smem:[#allocation20_spill]]  ;;  %s13964_s13 = smov %s10328_s14 }
 0xc54   : > { %s13962_s28 = sld [smem:[#allocation19_spill]] }
 0xc55   : > { %s13963_s15 = sld [smem:[#allocation21_spill]] }
 0xc59   : > { %p30_p12 = scmp.ge.s32.totalorder %s13961_s16, 4  }
 0xc5a   : > { %s13965_s14 = smov %s13962_s28 }
 0xc5b   :  { %32 = sbr.rel (!%p30_p12) target bundleno = 12 (0xc), region = 146 }
 0xc60   :  { %7032 = vsyncpa [#allocation3], 1 }
 0xc61   :  { %7034 = vsyncpa [#allocation3 + $0x1], 1 }
 0xc62   :  { %7035 = vsyncpa [#allocation6], 1 }
 0xc63   :  { %7037 = vsyncpa [#allocation6 + $0x1], 1 }
 0xc64   :  { %7038 = vsyncpa [#allocation4], 1 }
 0xc65   :  { %7040 = vsyncpa [#allocation4 + $0x1], 1 }
 0xc66   :  { %7041 = vsyncpa [#allocation10], 1 }
 0xc67   :  { %7043 = vsyncpa [#allocation10 + $0x1], 1 }

</bundles_post_ra>
